<compile_context>
chip_gen: v6e
topology: v6e:2x2x1
jax: 0.10.0
libtpu: 0.0.40
codegen_flags: <defaults>
</compile_context>

<pallas_src>
import jax
import jax.numpy as jnp
from jax.experimental import pallas as pl
from jax.experimental.pallas import tpu as pltpu

N_EMBD = 384
N_HEAD = 6
HEAD_SIZE = N_EMBD // N_HEAD   # 64
LN_EPS = 1e-5


def _layernorm(v, gamma, beta):
    mu = jnp.mean(v, axis=-1, keepdims=True)
    var = jnp.mean((v - mu) ** 2, axis=-1, keepdims=True)
    return (v - mu) * jax.lax.rsqrt(var + LN_EPS) * gamma + beta


def block_kernel(x_ref,
                 wq_ref, wk_ref, wv_ref, wproj_ref, bproj_ref,
                 g1_ref, b1_ref, g2_ref, b2_ref,
                 wff1_ref, bff1_ref, wff2_ref, bff2_ref,
                 out_ref):
    BB, T, C = x_ref.shape
    x = x_ref[...].reshape(BB * T, C)                     # (M, C) f32

    # ---- ln1 + multi-head causal self-attention -------------------------
    xn = _layernorm(x, g1_ref[0], b1_ref[0])
    xn_bf = xn.astype(jnp.bfloat16)

    # wq already carries the 1/sqrt(head_size) scale (baked in the wrapper).
    q = jnp.dot(xn_bf, wq_ref[...], preferred_element_type=jnp.float32)
    k = jnp.dot(xn_bf, wk_ref[...], preferred_element_type=jnp.float32)
    v = jnp.dot(xn_bf, wv_ref[...], preferred_element_type=jnp.float32)

    row = jax.lax.broadcasted_iota(jnp.int32, (1, T, T), 1)
    col = jax.lax.broadcasted_iota(jnp.int32, (1, T, T), 2)
    causal = col <= row                                   # (1, T, T)

    wproj = wproj_ref[...]                                # (C, C) bf16
    sa = jnp.zeros((BB * T, C), jnp.float32)
    for h in range(N_HEAD):                               # static unroll, 6 heads
        sl = slice(h * HEAD_SIZE, (h + 1) * HEAD_SIZE)
        qh = q[:, sl].reshape(BB, T, HEAD_SIZE).astype(jnp.bfloat16)
        kh = k[:, sl].reshape(BB, T, HEAD_SIZE).astype(jnp.bfloat16)
        vh = v[:, sl].reshape(BB, T, HEAD_SIZE).astype(jnp.bfloat16)

        s = jnp.einsum('bqd,bkd->bqk', qh, kh,
                       preferred_element_type=jnp.float32)   # (BB, T, T) f32
        s = jnp.where(causal, s, -jnp.inf)
        m = jnp.max(s, axis=-1, keepdims=True)
        e = jnp.exp(s - m)
        wei = e * pl.reciprocal(jnp.sum(e, axis=-1, keepdims=True), approx=True)

        oh = jnp.einsum('bqk,bkd->bqd', wei.astype(jnp.bfloat16), vh,
                        preferred_element_type=jnp.float32)   # (BB, T, D)
        # Fold this head straight into the output projection (avoids the
        # lane-dim concatenate of six head outputs).
        sa = sa + jnp.dot(oh.reshape(BB * T, HEAD_SIZE).astype(jnp.bfloat16),
                          wproj[sl, :], preferred_element_type=jnp.float32)

    x1 = x + sa + bproj_ref[0]                            # residual 1

    # ---- ln2 + feed-forward ---------------------------------------------
    xn2 = _layernorm(x1, g2_ref[0], b2_ref[0])
    h1 = jnp.dot(xn2.astype(jnp.bfloat16), wff1_ref[...],
                 preferred_element_type=jnp.float32) + bff1_ref[0]
    h1 = jnp.maximum(h1, 0.0)                             # ReLU
    y = jnp.dot(h1.astype(jnp.bfloat16), wff2_ref[...],
                preferred_element_type=jnp.float32) + bff2_ref[0]

    out_ref[...] = (x1 + y).reshape(BB, T, C)             # residual 2


def _pick_block_batch(B, T, target_rows=256):
    """Largest divisor of B such that BB*T stays near the MXU-friendly target."""
    bb = 1
    for cand in range(1, B + 1):
        if B % cand == 0 and cand * T <= max(target_rows, T):
            bb = cand
    return bb


def transformer_block(x, params):
    """x: (B, T, C) float32; params in the order produced by init_params."""
    B, T, C = x.shape
    (wq, wk, wv, wproj, bproj, g1, b1, g2, b2,
     wff1, bff1, wff2, bff2) = params

    scale = HEAD_SIZE ** -0.5
    bf = lambda a: a.astype(jnp.bfloat16)
    # bf16 matmul operands (f32 accumulation in-kernel); scale baked into wq.
    args = (x,
            bf(wq * scale), bf(wk), bf(wv), bf(wproj), bproj,
            g1, b1, g2, b2,
            bf(wff1), bff1, bf(wff2), bff2)

    BB = _pick_block_batch(B, T)
    grid = (B // BB,)

    def full_spec(shape):
        # Constant index_map: block never changes across the grid, so Pallas
        # only DMAs the weights once.  (On v7x one could additionally
        # single-buffer these resident blocks to reclaim VMEM headroom.)
        return pl.BlockSpec(shape, lambda b, _n=len(shape): (0,) * _n)

    in_specs = [pl.BlockSpec((BB, T, C), lambda b: (b, 0, 0))]
    in_specs += [full_spec(a.shape) for a in args[1:]]
    out_spec = pl.BlockSpec((BB, T, C), lambda b: (b, 0, 0))

    return pl.pallas_call(
        block_kernel,
        out_shape=jax.ShapeDtypeStruct((B, T, C), jnp.float32),
        grid=grid,
        in_specs=in_specs,
        out_specs=out_spec,
        compiler_params=pltpu.CompilerParams(
            dimension_semantics=("parallel",),
            vmem_limit_bytes=32 << 20),
    )(*args)


def reference_block(x, params):
    """Pure-f32 JAX reference matching the PyTorch module (eval mode)."""
    (wq, wk, wv, wproj, bproj, g1, b1, g2, b2,
     wff1, bff1, wff2, bff2) = params

    def ln(v, g, b):
        mu = jnp.mean(v, -1, keepdims=True)
        var = jnp.mean((v - mu) ** 2, -1, keepdims=True)
        return (v - mu) * jax.lax.rsqrt(var + LN_EPS) * g + b

    xn = ln(x, g1[0], b1[0])
    q, k, v = xn @ wq, xn @ wk, xn @ wv
    B, T, C = x.shape
    qh = q.reshape(B, T, N_HEAD, HEAD_SIZE).transpose(0, 2, 1, 3)
    kh = k.reshape(B, T, N_HEAD, HEAD_SIZE).transpose(0, 2, 1, 3)
    vh = v.reshape(B, T, N_HEAD, HEAD_SIZE).transpose(0, 2, 1, 3)
    s = jnp.einsum('bhqd,bhkd->bhqk', qh, kh) * HEAD_SIZE ** -0.5
    mask = jnp.tril(jnp.ones((T, T), bool))
    s = jnp.where(mask, s, -jnp.inf)
    w = jax.nn.softmax(s, axis=-1)
    o = jnp.einsum('bhqk,bhkd->bhqd', w, vh).transpose(0, 2, 1, 3).reshape(B, T, C)
    x1 = x + (o @ wproj + bproj[0])
    xn2 = ln(x1, g2[0], b2[0])
    y = jnp.maximum(xn2 @ wff1 + bff1[0], 0.0) @ wff2 + bff2[0]
    return x1 + y


def init_params(key):
    ks = jax.random.split(key, 8)

    def w(k, shape, scale=0.02):
        return (scale * jax.random.normal(k, shape)).astype(jnp.float32)

    params = [
        w(ks[0], (N_EMBD, N_EMBD)),             # wq  (all heads concat on cols)
        w(ks[1], (N_EMBD, N_EMBD)),             # wk
        w(ks[2], (N_EMBD, N_EMBD)),             # wv
        w(ks[3], (N_EMBD, N_EMBD)),             # wproj
        w(ks[4], (1, N_EMBD)),                  # bproj
        jnp.ones((1, N_EMBD), jnp.float32),     # ln1 gamma
        jnp.zeros((1, N_EMBD), jnp.float32),    # ln1 beta
        jnp.ones((1, N_EMBD), jnp.float32),     # ln2 gamma
        jnp.zeros((1, N_EMBD), jnp.float32),    # ln2 beta
        w(ks[5], (N_EMBD, 4 * N_EMBD)),         # ffn W1
        jnp.zeros((1, 4 * N_EMBD), jnp.float32),
        w(ks[6], (4 * N_EMBD, N_EMBD)),         # ffn W2
        jnp.zeros((1, N_EMBD), jnp.float32),
    ]
    return params


if __name__ == "__main__":
    key = jax.random.PRNGKey(0)
    kx, kp = jax.random.split(key)

    B, T = 2, 8                               # small seq; n_embd fixed by module
    x = jax.random.normal(kx, (B, T, N_EMBD), dtype=jnp.float32)
    params = init_params(kp)

    out = jax.block_until_ready(transformer_block(x, params))
    ref = reference_block(x, params)

    assert out.shape == (B, T, N_EMBD)
    max_err = float(jnp.max(jnp.abs(out - ref)))
    # bf16 matmul operands (f32 accumulation) vs pure-f32 reference.
    assert jnp.allclose(out, ref, rtol=2e-2, atol=2e-2), \
        f"mismatch vs reference, max abs err {max_err}"

    print("KERNEL_OK")
</pallas_src>

<mosaic_0001>
module attributes {stable_mosaic.version = 11 : i64} {
  func.func @block_kernel(%arg0: i32, %arg1: memref<2x8x384xf32, #tpu.memory_space<vmem>>, %arg2: memref<384x384xbf16, #tpu.memory_space<vmem>>, %arg3: memref<384x384xbf16, #tpu.memory_space<vmem>>, %arg4: memref<384x384xbf16, #tpu.memory_space<vmem>>, %arg5: memref<384x384xbf16, #tpu.memory_space<vmem>>, %arg6: memref<1x384xf32, #tpu.memory_space<vmem>>, %arg7: memref<1x384xf32, #tpu.memory_space<vmem>>, %arg8: memref<1x384xf32, #tpu.memory_space<vmem>>, %arg9: memref<1x384xf32, #tpu.memory_space<vmem>>, %arg10: memref<1x384xf32, #tpu.memory_space<vmem>>, %arg11: memref<384x1536xbf16, #tpu.memory_space<vmem>>, %arg12: memref<1x1536xf32, #tpu.memory_space<vmem>>, %arg13: memref<1536x384xbf16, #tpu.memory_space<vmem>>, %arg14: memref<1x384xf32, #tpu.memory_space<vmem>>, %arg15: memref<2x8x384xf32, #tpu.memory_space<vmem>>) attributes {dimension_semantics = [#tpu.dimension_semantics<parallel>], iteration_bounds = array<i64: 1>, scalar_prefetch = 0 : i64, scratch_operands = 0 : i64, tpu.core_type = #tpu.core_type<tc>, window_params = [{transform_indices = @transform_0, window_bounds = array<i64: 2, 8, 384>}, {pipeline_mode = #tpu.pipeline_mode<synchronous>, transform_indices = @transform_1, window_bounds = array<i64: 384, 384>}, {pipeline_mode = #tpu.pipeline_mode<synchronous>, transform_indices = @transform_2, window_bounds = array<i64: 384, 384>}, {pipeline_mode = #tpu.pipeline_mode<synchronous>, transform_indices = @transform_3, window_bounds = array<i64: 384, 384>}, {pipeline_mode = #tpu.pipeline_mode<synchronous>, transform_indices = @transform_4, window_bounds = array<i64: 384, 384>}, {pipeline_mode = #tpu.pipeline_mode<synchronous>, transform_indices = @transform_5, window_bounds = array<i64: 1, 384>}, {pipeline_mode = #tpu.pipeline_mode<synchronous>, transform_indices = @transform_6, window_bounds = array<i64: 1, 384>}, {pipeline_mode = #tpu.pipeline_mode<synchronous>, transform_indices = @transform_7, window_bounds = array<i64: 1, 384>}, {pipeline_mode = #tpu.pipeline_mode<synchronous>, transform_indices = @transform_8, window_bounds = array<i64: 1, 384>}, {pipeline_mode = #tpu.pipeline_mode<synchronous>, transform_indices = @transform_9, window_bounds = array<i64: 1, 384>}, {pipeline_mode = #tpu.pipeline_mode<synchronous>, transform_indices = @transform_10, window_bounds = array<i64: 384, 1536>}, {pipeline_mode = #tpu.pipeline_mode<synchronous>, transform_indices = @transform_11, window_bounds = array<i64: 1, 1536>}, {pipeline_mode = #tpu.pipeline_mode<synchronous>, transform_indices = @transform_12, window_bounds = array<i64: 1536, 384>}, {pipeline_mode = #tpu.pipeline_mode<synchronous>, transform_indices = @transform_13, window_bounds = array<i64: 1, 384>}, {transform_indices = @transform_14, window_bounds = array<i64: 2, 8, 384>}]} {
    %c0 = arith.constant 0 : index
    %c0_0 = arith.constant 0 : index
    %c0_1 = arith.constant 0 : index
    %0 = vector.load %arg1[%c0, %c0_0, %c0_1] : memref<2x8x384xf32, #tpu.memory_space<vmem>>, vector<2x8x384xf32>
    %1 = vector.shape_cast %0 : vector<2x8x384xf32> to vector<16x384xf32>
    %c0_2 = arith.constant 0 : index
    %c0_3 = arith.constant 0 : index
    %2 = vector.load %arg7[%c0_2, %c0_3] : memref<1x384xf32, #tpu.memory_space<vmem>>, vector<1x384xf32>
    %3 = vector.shape_cast %2 : vector<1x384xf32> to vector<384xf32>
    %c0_4 = arith.constant 0 : index
    %c0_5 = arith.constant 0 : index
    %4 = vector.load %arg8[%c0_4, %c0_5] : memref<1x384xf32, #tpu.memory_space<vmem>>, vector<1x384xf32>
    %5 = vector.shape_cast %4 : vector<1x384xf32> to vector<384xf32>
    %cst = arith.constant dense<0.000000e+00> : vector<16xf32>
    %6 = vector.multi_reduction <add>, %1, %cst [1] : vector<16x384xf32> to vector<16xf32>
    %7 = vector.shape_cast %6 : vector<16xf32> to vector<16x1xf32>
    %cst_6 = arith.constant 3.840000e+02 : f32
    %8 = vector.broadcast %cst_6 : f32 to vector<16x1xf32>
    %9 = arith.divf %7, %8 : vector<16x1xf32>
    %10 = vector.broadcast %9 : vector<16x1xf32> to vector<16x384xf32>
    %11 = arith.subf %1, %10 : vector<16x384xf32>
    %12 = arith.mulf %11, %11 : vector<16x384xf32>
    %cst_7 = arith.constant dense<0.000000e+00> : vector<16xf32>
    %13 = vector.multi_reduction <add>, %12, %cst_7 [1] : vector<16x384xf32> to vector<16xf32>
    %14 = vector.shape_cast %13 : vector<16xf32> to vector<16x1xf32>
    %cst_8 = arith.constant 3.840000e+02 : f32
    %15 = vector.broadcast %cst_8 : f32 to vector<16x1xf32>
    %16 = arith.divf %14, %15 : vector<16x1xf32>
    %17 = vector.broadcast %9 : vector<16x1xf32> to vector<16x384xf32>
    %18 = arith.subf %1, %17 : vector<16x384xf32>
    %cst_9 = arith.constant 9.99999974E-6 : f32
    %19 = vector.broadcast %cst_9 : f32 to vector<16x1xf32>
    %20 = arith.addf %16, %19 : vector<16x1xf32>
    %21 = math.rsqrt %20 : vector<16x1xf32>
    %22 = vector.broadcast %21 : vector<16x1xf32> to vector<16x384xf32>
    %23 = arith.mulf %18, %22 : vector<16x384xf32>
    %24 = vector.shape_cast %3 : vector<384xf32> to vector<1x384xf32>
    %25 = vector.broadcast %24 : vector<1x384xf32> to vector<16x384xf32>
    %26 = arith.mulf %23, %25 : vector<16x384xf32>
    %27 = vector.shape_cast %5 : vector<384xf32> to vector<1x384xf32>
    %28 = vector.broadcast %27 : vector<1x384xf32> to vector<16x384xf32>
    %29 = arith.addf %26, %28 : vector<16x384xf32>
    %30 = arith.truncf %29 : vector<16x384xf32> to vector<16x384xbf16>
    %c0_10 = arith.constant 0 : index
    %c0_11 = arith.constant 0 : index
    %31 = vector.load %arg2[%c0_10, %c0_11] : memref<384x384xbf16, #tpu.memory_space<vmem>>, vector<384x384xbf16>
    %cst_12 = arith.constant dense<0.000000e+00> : vector<16x384xf32>
    %32 = tpu.matmul %30, %31, %cst_12 {dimension_numbers = #tpu.dot_dimension_numbers<[1], [0], [0], [1], [0, 0, 1, 1], [], []>} : vector<16x384xbf16>, vector<384x384xbf16>, vector<16x384xf32> -> vector<16x384xf32>
    %c0_13 = arith.constant 0 : index
    %c0_14 = arith.constant 0 : index
    %33 = vector.load %arg3[%c0_13, %c0_14] : memref<384x384xbf16, #tpu.memory_space<vmem>>, vector<384x384xbf16>
    %cst_15 = arith.constant dense<0.000000e+00> : vector<16x384xf32>
    %34 = tpu.matmul %30, %33, %cst_15 {dimension_numbers = #tpu.dot_dimension_numbers<[1], [0], [0], [1], [0, 0, 1, 1], [], []>} : vector<16x384xbf16>, vector<384x384xbf16>, vector<16x384xf32> -> vector<16x384xf32>
    %c0_16 = arith.constant 0 : index
    %c0_17 = arith.constant 0 : index
    %35 = vector.load %arg4[%c0_16, %c0_17] : memref<384x384xbf16, #tpu.memory_space<vmem>>, vector<384x384xbf16>
    %cst_18 = arith.constant dense<0.000000e+00> : vector<16x384xf32>
    %36 = tpu.matmul %30, %35, %cst_18 {dimension_numbers = #tpu.dot_dimension_numbers<[1], [0], [0], [1], [0, 0, 1, 1], [], []>} : vector<16x384xbf16>, vector<384x384xbf16>, vector<16x384xf32> -> vector<16x384xf32>
    %37 = tpu.iota {dimensions = array<i32: 1>} : vector<1x8x8xi32>
    %38 = tpu.iota {dimensions = array<i32: 2>} : vector<1x8x8xi32>
    %39 = arith.cmpi sle, %38, %37 : vector<1x8x8xi32>
    %c0_19 = arith.constant 0 : index
    %c0_20 = arith.constant 0 : index
    %40 = vector.load %arg5[%c0_19, %c0_20] : memref<384x384xbf16, #tpu.memory_space<vmem>>, vector<384x384xbf16>
    %cst_21 = arith.constant 0.000000e+00 : f32
    %41 = vector.broadcast %cst_21 : f32 to vector<16x384xf32>
    %42 = vector.extract_strided_slice %32 {offsets = [0, 0], sizes = [16, 64], strides = [1, 1]} : vector<16x384xf32> to vector<16x64xf32>
    %43 = vector.shape_cast %42 : vector<16x64xf32> to vector<2x8x64xf32>
    %44 = arith.truncf %43 : vector<2x8x64xf32> to vector<2x8x64xbf16>
    %45 = vector.extract_strided_slice %34 {offsets = [0, 0], sizes = [16, 64], strides = [1, 1]} : vector<16x384xf32> to vector<16x64xf32>
    %46 = vector.shape_cast %45 : vector<16x64xf32> to vector<2x8x64xf32>
    %47 = arith.truncf %46 : vector<2x8x64xf32> to vector<2x8x64xbf16>
    %48 = vector.extract_strided_slice %36 {offsets = [0, 0], sizes = [16, 64], strides = [1, 1]} : vector<16x384xf32> to vector<16x64xf32>
    %49 = vector.shape_cast %48 : vector<16x64xf32> to vector<2x8x64xf32>
    %50 = arith.truncf %49 : vector<2x8x64xf32> to vector<2x8x64xbf16>
    "tpu.trace_start"() <{level = 10 : i32, message = "bqd,bkd->bqk"}> : () -> ()
    %cst_22 = arith.constant dense<0.000000e+00> : vector<2x8x8xf32>
    %51 = tpu.matmul %44, %47, %cst_22 {dimension_numbers = #tpu.dot_dimension_numbers<[2], [2], [1], [1], [0, 0, 0, 1, 1, 1], [0], [0]>} : vector<2x8x64xbf16>, vector<2x8x64xbf16>, vector<2x8x8xf32> -> vector<2x8x8xf32>
    %cst_23 = arith.constant 0xFF800000 : f32
    "tpu.trace_stop"() : () -> ()
    %52 = vector.shape_cast %39 : vector<1x8x8xi1> to vector<1x8x8xi1>
    %53 = vector.broadcast %52 : vector<1x8x8xi1> to vector<2x8x8xi1>
    %54 = vector.broadcast %cst_23 : f32 to vector<2x8x8xf32>
    %55 = arith.select %53, %51, %54 : vector<2x8x8xi1>, vector<2x8x8xf32>
    %cst_24 = arith.constant dense<0xFF800000> : vector<2x8xf32>
    %56 = vector.multi_reduction <maximumf>, %55, %cst_24 [2] : vector<2x8x8xf32> to vector<2x8xf32>
    %57 = vector.shape_cast %56 : vector<2x8xf32> to vector<2x8x1xf32>
    %58 = vector.broadcast %57 : vector<2x8x1xf32> to vector<2x8x8xf32>
    %59 = arith.subf %55, %58 : vector<2x8x8xf32>
    %60 = math.exp %59 : vector<2x8x8xf32>
    %cst_25 = arith.constant dense<0.000000e+00> : vector<2x8xf32>
    %61 = vector.multi_reduction <add>, %60, %cst_25 [2] : vector<2x8x8xf32> to vector<2x8xf32>
    %62 = vector.shape_cast %61 : vector<2x8xf32> to vector<2x8x1xf32>
    %63 = tpu.reciprocal %62 {approx = true} : vector<2x8x1xf32> -> vector<2x8x1xf32>
    %64 = vector.broadcast %63 : vector<2x8x1xf32> to vector<2x8x8xf32>
    %65 = arith.mulf %60, %64 : vector<2x8x8xf32>
    %66 = arith.truncf %65 : vector<2x8x8xf32> to vector<2x8x8xbf16>
    "tpu.trace_start"() <{level = 10 : i32, message = "bqk,bkd->bqd"}> : () -> ()
    %cst_26 = arith.constant dense<0.000000e+00> : vector<2x8x64xf32>
    %67 = tpu.matmul %66, %50, %cst_26 {dimension_numbers = #tpu.dot_dimension_numbers<[2], [1], [1], [2], [0, 0, 0, 1, 1, 2], [0], [0]>} : vector<2x8x8xbf16>, vector<2x8x64xbf16>, vector<2x8x64xf32> -> vector<2x8x64xf32>
    "tpu.trace_stop"() : () -> ()
    %68 = vector.shape_cast %67 : vector<2x8x64xf32> to vector<16x64xf32>
    %69 = arith.truncf %68 : vector<16x64xf32> to vector<16x64xbf16>
    %70 = vector.extract_strided_slice %40 {offsets = [0, 0], sizes = [64, 384], strides = [1, 1]} : vector<384x384xbf16> to vector<64x384xbf16>
    %cst_27 = arith.constant dense<0.000000e+00> : vector<16x384xf32>
    %71 = tpu.matmul %69, %70, %cst_27 {dimension_numbers = #tpu.dot_dimension_numbers<[1], [0], [0], [1], [0, 0, 1, 1], [], []>} : vector<16x64xbf16>, vector<64x384xbf16>, vector<16x384xf32> -> vector<16x384xf32>
    %72 = arith.addf %41, %71 : vector<16x384xf32>
    %73 = vector.extract_strided_slice %32 {offsets = [0, 64], sizes = [16, 64], strides = [1, 1]} : vector<16x384xf32> to vector<16x64xf32>
    %74 = vector.shape_cast %73 : vector<16x64xf32> to vector<2x8x64xf32>
    %75 = arith.truncf %74 : vector<2x8x64xf32> to vector<2x8x64xbf16>
    %76 = vector.extract_strided_slice %34 {offsets = [0, 64], sizes = [16, 64], strides = [1, 1]} : vector<16x384xf32> to vector<16x64xf32>
    %77 = vector.shape_cast %76 : vector<16x64xf32> to vector<2x8x64xf32>
    %78 = arith.truncf %77 : vector<2x8x64xf32> to vector<2x8x64xbf16>
    %79 = vector.extract_strided_slice %36 {offsets = [0, 64], sizes = [16, 64], strides = [1, 1]} : vector<16x384xf32> to vector<16x64xf32>
    %80 = vector.shape_cast %79 : vector<16x64xf32> to vector<2x8x64xf32>
    %81 = arith.truncf %80 : vector<2x8x64xf32> to vector<2x8x64xbf16>
    "tpu.trace_start"() <{level = 10 : i32, message = "bqd,bkd->bqk"}> : () -> ()
    %cst_28 = arith.constant dense<0.000000e+00> : vector<2x8x8xf32>
    %82 = tpu.matmul %75, %78, %cst_28 {dimension_numbers = #tpu.dot_dimension_numbers<[2], [2], [1], [1], [0, 0, 0, 1, 1, 1], [0], [0]>} : vector<2x8x64xbf16>, vector<2x8x64xbf16>, vector<2x8x8xf32> -> vector<2x8x8xf32>
    %cst_29 = arith.constant 0xFF800000 : f32
    "tpu.trace_stop"() : () -> ()
    %83 = vector.shape_cast %39 : vector<1x8x8xi1> to vector<1x8x8xi1>
    %84 = vector.broadcast %83 : vector<1x8x8xi1> to vector<2x8x8xi1>
    %85 = vector.broadcast %cst_29 : f32 to vector<2x8x8xf32>
    %86 = arith.select %84, %82, %85 : vector<2x8x8xi1>, vector<2x8x8xf32>
    %cst_30 = arith.constant dense<0xFF800000> : vector<2x8xf32>
    %87 = vector.multi_reduction <maximumf>, %86, %cst_30 [2] : vector<2x8x8xf32> to vector<2x8xf32>
    %88 = vector.shape_cast %87 : vector<2x8xf32> to vector<2x8x1xf32>
    %89 = vector.broadcast %88 : vector<2x8x1xf32> to vector<2x8x8xf32>
    %90 = arith.subf %86, %89 : vector<2x8x8xf32>
    %91 = math.exp %90 : vector<2x8x8xf32>
    %cst_31 = arith.constant dense<0.000000e+00> : vector<2x8xf32>
    %92 = vector.multi_reduction <add>, %91, %cst_31 [2] : vector<2x8x8xf32> to vector<2x8xf32>
    %93 = vector.shape_cast %92 : vector<2x8xf32> to vector<2x8x1xf32>
    %94 = tpu.reciprocal %93 {approx = true} : vector<2x8x1xf32> -> vector<2x8x1xf32>
    %95 = vector.broadcast %94 : vector<2x8x1xf32> to vector<2x8x8xf32>
    %96 = arith.mulf %91, %95 : vector<2x8x8xf32>
    %97 = arith.truncf %96 : vector<2x8x8xf32> to vector<2x8x8xbf16>
    "tpu.trace_start"() <{level = 10 : i32, message = "bqk,bkd->bqd"}> : () -> ()
    %cst_32 = arith.constant dense<0.000000e+00> : vector<2x8x64xf32>
    %98 = tpu.matmul %97, %81, %cst_32 {dimension_numbers = #tpu.dot_dimension_numbers<[2], [1], [1], [2], [0, 0, 0, 1, 1, 2], [0], [0]>} : vector<2x8x8xbf16>, vector<2x8x64xbf16>, vector<2x8x64xf32> -> vector<2x8x64xf32>
    "tpu.trace_stop"() : () -> ()
    %99 = vector.shape_cast %98 : vector<2x8x64xf32> to vector<16x64xf32>
    %100 = arith.truncf %99 : vector<16x64xf32> to vector<16x64xbf16>
    %101 = vector.extract_strided_slice %40 {offsets = [64, 0], sizes = [64, 384], strides = [1, 1]} : vector<384x384xbf16> to vector<64x384xbf16>
    %cst_33 = arith.constant dense<0.000000e+00> : vector<16x384xf32>
    %102 = tpu.matmul %100, %101, %cst_33 {dimension_numbers = #tpu.dot_dimension_numbers<[1], [0], [0], [1], [0, 0, 1, 1], [], []>} : vector<16x64xbf16>, vector<64x384xbf16>, vector<16x384xf32> -> vector<16x384xf32>
    %103 = arith.addf %72, %102 : vector<16x384xf32>
    %104 = vector.extract_strided_slice %32 {offsets = [0, 128], sizes = [16, 64], strides = [1, 1]} : vector<16x384xf32> to vector<16x64xf32>
    %105 = vector.shape_cast %104 : vector<16x64xf32> to vector<2x8x64xf32>
    %106 = arith.truncf %105 : vector<2x8x64xf32> to vector<2x8x64xbf16>
    %107 = vector.extract_strided_slice %34 {offsets = [0, 128], sizes = [16, 64], strides = [1, 1]} : vector<16x384xf32> to vector<16x64xf32>
    %108 = vector.shape_cast %107 : vector<16x64xf32> to vector<2x8x64xf32>
    %109 = arith.truncf %108 : vector<2x8x64xf32> to vector<2x8x64xbf16>
    %110 = vector.extract_strided_slice %36 {offsets = [0, 128], sizes = [16, 64], strides = [1, 1]} : vector<16x384xf32> to vector<16x64xf32>
    %111 = vector.shape_cast %110 : vector<16x64xf32> to vector<2x8x64xf32>
    %112 = arith.truncf %111 : vector<2x8x64xf32> to vector<2x8x64xbf16>
    "tpu.trace_start"() <{level = 10 : i32, message = "bqd,bkd->bqk"}> : () -> ()
    %cst_34 = arith.constant dense<0.000000e+00> : vector<2x8x8xf32>
    %113 = tpu.matmul %106, %109, %cst_34 {dimension_numbers = #tpu.dot_dimension_numbers<[2], [2], [1], [1], [0, 0, 0, 1, 1, 1], [0], [0]>} : vector<2x8x64xbf16>, vector<2x8x64xbf16>, vector<2x8x8xf32> -> vector<2x8x8xf32>
    %cst_35 = arith.constant 0xFF800000 : f32
    "tpu.trace_stop"() : () -> ()
    %114 = vector.shape_cast %39 : vector<1x8x8xi1> to vector<1x8x8xi1>
    %115 = vector.broadcast %114 : vector<1x8x8xi1> to vector<2x8x8xi1>
    %116 = vector.broadcast %cst_35 : f32 to vector<2x8x8xf32>
    %117 = arith.select %115, %113, %116 : vector<2x8x8xi1>, vector<2x8x8xf32>
    %cst_36 = arith.constant dense<0xFF800000> : vector<2x8xf32>
    %118 = vector.multi_reduction <maximumf>, %117, %cst_36 [2] : vector<2x8x8xf32> to vector<2x8xf32>
    %119 = vector.shape_cast %118 : vector<2x8xf32> to vector<2x8x1xf32>
    %120 = vector.broadcast %119 : vector<2x8x1xf32> to vector<2x8x8xf32>
    %121 = arith.subf %117, %120 : vector<2x8x8xf32>
    %122 = math.exp %121 : vector<2x8x8xf32>
    %cst_37 = arith.constant dense<0.000000e+00> : vector<2x8xf32>
    %123 = vector.multi_reduction <add>, %122, %cst_37 [2] : vector<2x8x8xf32> to vector<2x8xf32>
    %124 = vector.shape_cast %123 : vector<2x8xf32> to vector<2x8x1xf32>
    %125 = tpu.reciprocal %124 {approx = true} : vector<2x8x1xf32> -> vector<2x8x1xf32>
    %126 = vector.broadcast %125 : vector<2x8x1xf32> to vector<2x8x8xf32>
    %127 = arith.mulf %122, %126 : vector<2x8x8xf32>
    %128 = arith.truncf %127 : vector<2x8x8xf32> to vector<2x8x8xbf16>
    "tpu.trace_start"() <{level = 10 : i32, message = "bqk,bkd->bqd"}> : () -> ()
    %cst_38 = arith.constant dense<0.000000e+00> : vector<2x8x64xf32>
    %129 = tpu.matmul %128, %112, %cst_38 {dimension_numbers = #tpu.dot_dimension_numbers<[2], [1], [1], [2], [0, 0, 0, 1, 1, 2], [0], [0]>} : vector<2x8x8xbf16>, vector<2x8x64xbf16>, vector<2x8x64xf32> -> vector<2x8x64xf32>
    "tpu.trace_stop"() : () -> ()
    %130 = vector.shape_cast %129 : vector<2x8x64xf32> to vector<16x64xf32>
    %131 = arith.truncf %130 : vector<16x64xf32> to vector<16x64xbf16>
    %132 = vector.extract_strided_slice %40 {offsets = [128, 0], sizes = [64, 384], strides = [1, 1]} : vector<384x384xbf16> to vector<64x384xbf16>
    %cst_39 = arith.constant dense<0.000000e+00> : vector<16x384xf32>
    %133 = tpu.matmul %131, %132, %cst_39 {dimension_numbers = #tpu.dot_dimension_numbers<[1], [0], [0], [1], [0, 0, 1, 1], [], []>} : vector<16x64xbf16>, vector<64x384xbf16>, vector<16x384xf32> -> vector<16x384xf32>
    %134 = arith.addf %103, %133 : vector<16x384xf32>
    %135 = vector.extract_strided_slice %32 {offsets = [0, 192], sizes = [16, 64], strides = [1, 1]} : vector<16x384xf32> to vector<16x64xf32>
    %136 = vector.shape_cast %135 : vector<16x64xf32> to vector<2x8x64xf32>
    %137 = arith.truncf %136 : vector<2x8x64xf32> to vector<2x8x64xbf16>
    %138 = vector.extract_strided_slice %34 {offsets = [0, 192], sizes = [16, 64], strides = [1, 1]} : vector<16x384xf32> to vector<16x64xf32>
    %139 = vector.shape_cast %138 : vector<16x64xf32> to vector<2x8x64xf32>
    %140 = arith.truncf %139 : vector<2x8x64xf32> to vector<2x8x64xbf16>
    %141 = vector.extract_strided_slice %36 {offsets = [0, 192], sizes = [16, 64], strides = [1, 1]} : vector<16x384xf32> to vector<16x64xf32>
    %142 = vector.shape_cast %141 : vector<16x64xf32> to vector<2x8x64xf32>
    %143 = arith.truncf %142 : vector<2x8x64xf32> to vector<2x8x64xbf16>
    "tpu.trace_start"() <{level = 10 : i32, message = "bqd,bkd->bqk"}> : () -> ()
    %cst_40 = arith.constant dense<0.000000e+00> : vector<2x8x8xf32>
    %144 = tpu.matmul %137, %140, %cst_40 {dimension_numbers = #tpu.dot_dimension_numbers<[2], [2], [1], [1], [0, 0, 0, 1, 1, 1], [0], [0]>} : vector<2x8x64xbf16>, vector<2x8x64xbf16>, vector<2x8x8xf32> -> vector<2x8x8xf32>
    %cst_41 = arith.constant 0xFF800000 : f32
    "tpu.trace_stop"() : () -> ()
    %145 = vector.shape_cast %39 : vector<1x8x8xi1> to vector<1x8x8xi1>
    %146 = vector.broadcast %145 : vector<1x8x8xi1> to vector<2x8x8xi1>
    %147 = vector.broadcast %cst_41 : f32 to vector<2x8x8xf32>
    %148 = arith.select %146, %144, %147 : vector<2x8x8xi1>, vector<2x8x8xf32>
    %cst_42 = arith.constant dense<0xFF800000> : vector<2x8xf32>
    %149 = vector.multi_reduction <maximumf>, %148, %cst_42 [2] : vector<2x8x8xf32> to vector<2x8xf32>
    %150 = vector.shape_cast %149 : vector<2x8xf32> to vector<2x8x1xf32>
    %151 = vector.broadcast %150 : vector<2x8x1xf32> to vector<2x8x8xf32>
    %152 = arith.subf %148, %151 : vector<2x8x8xf32>
    %153 = math.exp %152 : vector<2x8x8xf32>
    %cst_43 = arith.constant dense<0.000000e+00> : vector<2x8xf32>
    %154 = vector.multi_reduction <add>, %153, %cst_43 [2] : vector<2x8x8xf32> to vector<2x8xf32>
    %155 = vector.shape_cast %154 : vector<2x8xf32> to vector<2x8x1xf32>
    %156 = tpu.reciprocal %155 {approx = true} : vector<2x8x1xf32> -> vector<2x8x1xf32>
    %157 = vector.broadcast %156 : vector<2x8x1xf32> to vector<2x8x8xf32>
    %158 = arith.mulf %153, %157 : vector<2x8x8xf32>
    %159 = arith.truncf %158 : vector<2x8x8xf32> to vector<2x8x8xbf16>
    "tpu.trace_start"() <{level = 10 : i32, message = "bqk,bkd->bqd"}> : () -> ()
    %cst_44 = arith.constant dense<0.000000e+00> : vector<2x8x64xf32>
    %160 = tpu.matmul %159, %143, %cst_44 {dimension_numbers = #tpu.dot_dimension_numbers<[2], [1], [1], [2], [0, 0, 0, 1, 1, 2], [0], [0]>} : vector<2x8x8xbf16>, vector<2x8x64xbf16>, vector<2x8x64xf32> -> vector<2x8x64xf32>
    "tpu.trace_stop"() : () -> ()
    %161 = vector.shape_cast %160 : vector<2x8x64xf32> to vector<16x64xf32>
    %162 = arith.truncf %161 : vector<16x64xf32> to vector<16x64xbf16>
    %163 = vector.extract_strided_slice %40 {offsets = [192, 0], sizes = [64, 384], strides = [1, 1]} : vector<384x384xbf16> to vector<64x384xbf16>
    %cst_45 = arith.constant dense<0.000000e+00> : vector<16x384xf32>
    %164 = tpu.matmul %162, %163, %cst_45 {dimension_numbers = #tpu.dot_dimension_numbers<[1], [0], [0], [1], [0, 0, 1, 1], [], []>} : vector<16x64xbf16>, vector<64x384xbf16>, vector<16x384xf32> -> vector<16x384xf32>
    %165 = arith.addf %134, %164 : vector<16x384xf32>
    %166 = vector.extract_strided_slice %32 {offsets = [0, 256], sizes = [16, 64], strides = [1, 1]} : vector<16x384xf32> to vector<16x64xf32>
    %167 = vector.shape_cast %166 : vector<16x64xf32> to vector<2x8x64xf32>
    %168 = arith.truncf %167 : vector<2x8x64xf32> to vector<2x8x64xbf16>
    %169 = vector.extract_strided_slice %34 {offsets = [0, 256], sizes = [16, 64], strides = [1, 1]} : vector<16x384xf32> to vector<16x64xf32>
    %170 = vector.shape_cast %169 : vector<16x64xf32> to vector<2x8x64xf32>
    %171 = arith.truncf %170 : vector<2x8x64xf32> to vector<2x8x64xbf16>
    %172 = vector.extract_strided_slice %36 {offsets = [0, 256], sizes = [16, 64], strides = [1, 1]} : vector<16x384xf32> to vector<16x64xf32>
    %173 = vector.shape_cast %172 : vector<16x64xf32> to vector<2x8x64xf32>
    %174 = arith.truncf %173 : vector<2x8x64xf32> to vector<2x8x64xbf16>
    "tpu.trace_start"() <{level = 10 : i32, message = "bqd,bkd->bqk"}> : () -> ()
    %cst_46 = arith.constant dense<0.000000e+00> : vector<2x8x8xf32>
    %175 = tpu.matmul %168, %171, %cst_46 {dimension_numbers = #tpu.dot_dimension_numbers<[2], [2], [1], [1], [0, 0, 0, 1, 1, 1], [0], [0]>} : vector<2x8x64xbf16>, vector<2x8x64xbf16>, vector<2x8x8xf32> -> vector<2x8x8xf32>
    %cst_47 = arith.constant 0xFF800000 : f32
    "tpu.trace_stop"() : () -> ()
    %176 = vector.shape_cast %39 : vector<1x8x8xi1> to vector<1x8x8xi1>
    %177 = vector.broadcast %176 : vector<1x8x8xi1> to vector<2x8x8xi1>
    %178 = vector.broadcast %cst_47 : f32 to vector<2x8x8xf32>
    %179 = arith.select %177, %175, %178 : vector<2x8x8xi1>, vector<2x8x8xf32>
    %cst_48 = arith.constant dense<0xFF800000> : vector<2x8xf32>
    %180 = vector.multi_reduction <maximumf>, %179, %cst_48 [2] : vector<2x8x8xf32> to vector<2x8xf32>
    %181 = vector.shape_cast %180 : vector<2x8xf32> to vector<2x8x1xf32>
    %182 = vector.broadcast %181 : vector<2x8x1xf32> to vector<2x8x8xf32>
    %183 = arith.subf %179, %182 : vector<2x8x8xf32>
    %184 = math.exp %183 : vector<2x8x8xf32>
    %cst_49 = arith.constant dense<0.000000e+00> : vector<2x8xf32>
    %185 = vector.multi_reduction <add>, %184, %cst_49 [2] : vector<2x8x8xf32> to vector<2x8xf32>
    %186 = vector.shape_cast %185 : vector<2x8xf32> to vector<2x8x1xf32>
    %187 = tpu.reciprocal %186 {approx = true} : vector<2x8x1xf32> -> vector<2x8x1xf32>
    %188 = vector.broadcast %187 : vector<2x8x1xf32> to vector<2x8x8xf32>
    %189 = arith.mulf %184, %188 : vector<2x8x8xf32>
    %190 = arith.truncf %189 : vector<2x8x8xf32> to vector<2x8x8xbf16>
    "tpu.trace_start"() <{level = 10 : i32, message = "bqk,bkd->bqd"}> : () -> ()
    %cst_50 = arith.constant dense<0.000000e+00> : vector<2x8x64xf32>
    %191 = tpu.matmul %190, %174, %cst_50 {dimension_numbers = #tpu.dot_dimension_numbers<[2], [1], [1], [2], [0, 0, 0, 1, 1, 2], [0], [0]>} : vector<2x8x8xbf16>, vector<2x8x64xbf16>, vector<2x8x64xf32> -> vector<2x8x64xf32>
    "tpu.trace_stop"() : () -> ()
    %192 = vector.shape_cast %191 : vector<2x8x64xf32> to vector<16x64xf32>
    %193 = arith.truncf %192 : vector<16x64xf32> to vector<16x64xbf16>
    %194 = vector.extract_strided_slice %40 {offsets = [256, 0], sizes = [64, 384], strides = [1, 1]} : vector<384x384xbf16> to vector<64x384xbf16>
    %cst_51 = arith.constant dense<0.000000e+00> : vector<16x384xf32>
    %195 = tpu.matmul %193, %194, %cst_51 {dimension_numbers = #tpu.dot_dimension_numbers<[1], [0], [0], [1], [0, 0, 1, 1], [], []>} : vector<16x64xbf16>, vector<64x384xbf16>, vector<16x384xf32> -> vector<16x384xf32>
    %196 = arith.addf %165, %195 : vector<16x384xf32>
    %197 = vector.extract_strided_slice %32 {offsets = [0, 320], sizes = [16, 64], strides = [1, 1]} : vector<16x384xf32> to vector<16x64xf32>
    %198 = vector.shape_cast %197 : vector<16x64xf32> to vector<2x8x64xf32>
    %199 = arith.truncf %198 : vector<2x8x64xf32> to vector<2x8x64xbf16>
    %200 = vector.extract_strided_slice %34 {offsets = [0, 320], sizes = [16, 64], strides = [1, 1]} : vector<16x384xf32> to vector<16x64xf32>
    %201 = vector.shape_cast %200 : vector<16x64xf32> to vector<2x8x64xf32>
    %202 = arith.truncf %201 : vector<2x8x64xf32> to vector<2x8x64xbf16>
    %203 = vector.extract_strided_slice %36 {offsets = [0, 320], sizes = [16, 64], strides = [1, 1]} : vector<16x384xf32> to vector<16x64xf32>
    %204 = vector.shape_cast %203 : vector<16x64xf32> to vector<2x8x64xf32>
    %205 = arith.truncf %204 : vector<2x8x64xf32> to vector<2x8x64xbf16>
    "tpu.trace_start"() <{level = 10 : i32, message = "bqd,bkd->bqk"}> : () -> ()
    %cst_52 = arith.constant dense<0.000000e+00> : vector<2x8x8xf32>
    %206 = tpu.matmul %199, %202, %cst_52 {dimension_numbers = #tpu.dot_dimension_numbers<[2], [2], [1], [1], [0, 0, 0, 1, 1, 1], [0], [0]>} : vector<2x8x64xbf16>, vector<2x8x64xbf16>, vector<2x8x8xf32> -> vector<2x8x8xf32>
    %cst_53 = arith.constant 0xFF800000 : f32
    "tpu.trace_stop"() : () -> ()
    %207 = vector.shape_cast %39 : vector<1x8x8xi1> to vector<1x8x8xi1>
    %208 = vector.broadcast %207 : vector<1x8x8xi1> to vector<2x8x8xi1>
    %209 = vector.broadcast %cst_53 : f32 to vector<2x8x8xf32>
    %210 = arith.select %208, %206, %209 : vector<2x8x8xi1>, vector<2x8x8xf32>
    %cst_54 = arith.constant dense<0xFF800000> : vector<2x8xf32>
    %211 = vector.multi_reduction <maximumf>, %210, %cst_54 [2] : vector<2x8x8xf32> to vector<2x8xf32>
    %212 = vector.shape_cast %211 : vector<2x8xf32> to vector<2x8x1xf32>
    %213 = vector.broadcast %212 : vector<2x8x1xf32> to vector<2x8x8xf32>
    %214 = arith.subf %210, %213 : vector<2x8x8xf32>
    %215 = math.exp %214 : vector<2x8x8xf32>
    %cst_55 = arith.constant dense<0.000000e+00> : vector<2x8xf32>
    %216 = vector.multi_reduction <add>, %215, %cst_55 [2] : vector<2x8x8xf32> to vector<2x8xf32>
    %217 = vector.shape_cast %216 : vector<2x8xf32> to vector<2x8x1xf32>
    %218 = tpu.reciprocal %217 {approx = true} : vector<2x8x1xf32> -> vector<2x8x1xf32>
    %219 = vector.broadcast %218 : vector<2x8x1xf32> to vector<2x8x8xf32>
    %220 = arith.mulf %215, %219 : vector<2x8x8xf32>
    %221 = arith.truncf %220 : vector<2x8x8xf32> to vector<2x8x8xbf16>
    "tpu.trace_start"() <{level = 10 : i32, message = "bqk,bkd->bqd"}> : () -> ()
    %cst_56 = arith.constant dense<0.000000e+00> : vector<2x8x64xf32>
    %222 = tpu.matmul %221, %205, %cst_56 {dimension_numbers = #tpu.dot_dimension_numbers<[2], [1], [1], [2], [0, 0, 0, 1, 1, 2], [0], [0]>} : vector<2x8x8xbf16>, vector<2x8x64xbf16>, vector<2x8x64xf32> -> vector<2x8x64xf32>
    "tpu.trace_stop"() : () -> ()
    %223 = vector.shape_cast %222 : vector<2x8x64xf32> to vector<16x64xf32>
    %224 = arith.truncf %223 : vector<16x64xf32> to vector<16x64xbf16>
    %225 = vector.extract_strided_slice %40 {offsets = [320, 0], sizes = [64, 384], strides = [1, 1]} : vector<384x384xbf16> to vector<64x384xbf16>
    %cst_57 = arith.constant dense<0.000000e+00> : vector<16x384xf32>
    %226 = tpu.matmul %224, %225, %cst_57 {dimension_numbers = #tpu.dot_dimension_numbers<[1], [0], [0], [1], [0, 0, 1, 1], [], []>} : vector<16x64xbf16>, vector<64x384xbf16>, vector<16x384xf32> -> vector<16x384xf32>
    %227 = arith.addf %196, %226 : vector<16x384xf32>
    %228 = arith.addf %1, %227 : vector<16x384xf32>
    %c0_58 = arith.constant 0 : index
    %c0_59 = arith.constant 0 : index
    %229 = vector.load %arg6[%c0_58, %c0_59] : memref<1x384xf32, #tpu.memory_space<vmem>>, vector<1x384xf32>
    %230 = vector.shape_cast %229 : vector<1x384xf32> to vector<384xf32>
    %231 = vector.shape_cast %230 : vector<384xf32> to vector<1x384xf32>
    %232 = vector.broadcast %231 : vector<1x384xf32> to vector<16x384xf32>
    %233 = arith.addf %228, %232 : vector<16x384xf32>
    %c0_60 = arith.constant 0 : index
    %c0_61 = arith.constant 0 : index
    %234 = vector.load %arg9[%c0_60, %c0_61] : memref<1x384xf32, #tpu.memory_space<vmem>>, vector<1x384xf32>
    %235 = vector.shape_cast %234 : vector<1x384xf32> to vector<384xf32>
    %c0_62 = arith.constant 0 : index
    %c0_63 = arith.constant 0 : index
    %236 = vector.load %arg10[%c0_62, %c0_63] : memref<1x384xf32, #tpu.memory_space<vmem>>, vector<1x384xf32>
    %237 = vector.shape_cast %236 : vector<1x384xf32> to vector<384xf32>
    %cst_64 = arith.constant dense<0.000000e+00> : vector<16xf32>
    %238 = vector.multi_reduction <add>, %233, %cst_64 [1] : vector<16x384xf32> to vector<16xf32>
    %239 = vector.shape_cast %238 : vector<16xf32> to vector<16x1xf32>
    %cst_65 = arith.constant 3.840000e+02 : f32
    %240 = vector.broadcast %cst_65 : f32 to vector<16x1xf32>
    %241 = arith.divf %239, %240 : vector<16x1xf32>
    %242 = vector.broadcast %241 : vector<16x1xf32> to vector<16x384xf32>
    %243 = arith.subf %233, %242 : vector<16x384xf32>
    %244 = arith.mulf %243, %243 : vector<16x384xf32>
    %cst_66 = arith.constant dense<0.000000e+00> : vector<16xf32>
    %245 = vector.multi_reduction <add>, %244, %cst_66 [1] : vector<16x384xf32> to vector<16xf32>
    %246 = vector.shape_cast %245 : vector<16xf32> to vector<16x1xf32>
    %cst_67 = arith.constant 3.840000e+02 : f32
    %247 = vector.broadcast %cst_67 : f32 to vector<16x1xf32>
    %248 = arith.divf %246, %247 : vector<16x1xf32>
    %249 = vector.broadcast %241 : vector<16x1xf32> to vector<16x384xf32>
    %250 = arith.subf %233, %249 : vector<16x384xf32>
    %cst_68 = arith.constant 9.99999974E-6 : f32
    %251 = vector.broadcast %cst_68 : f32 to vector<16x1xf32>
    %252 = arith.addf %248, %251 : vector<16x1xf32>
    %253 = math.rsqrt %252 : vector<16x1xf32>
    %254 = vector.broadcast %253 : vector<16x1xf32> to vector<16x384xf32>
    %255 = arith.mulf %250, %254 : vector<16x384xf32>
    %256 = vector.shape_cast %235 : vector<384xf32> to vector<1x384xf32>
    %257 = vector.broadcast %256 : vector<1x384xf32> to vector<16x384xf32>
    %258 = arith.mulf %255, %257 : vector<16x384xf32>
    %259 = vector.shape_cast %237 : vector<384xf32> to vector<1x384xf32>
    %260 = vector.broadcast %259 : vector<1x384xf32> to vector<16x384xf32>
    %261 = arith.addf %258, %260 : vector<16x384xf32>
    %262 = arith.truncf %261 : vector<16x384xf32> to vector<16x384xbf16>
    %c0_69 = arith.constant 0 : index
    %c0_70 = arith.constant 0 : index
    %263 = vector.load %arg11[%c0_69, %c0_70] : memref<384x1536xbf16, #tpu.memory_space<vmem>>, vector<384x1536xbf16>
    %cst_71 = arith.constant dense<0.000000e+00> : vector<16x1536xf32>
    %264 = tpu.matmul %262, %263, %cst_71 {dimension_numbers = #tpu.dot_dimension_numbers<[1], [0], [0], [1], [0, 0, 1, 1], [], []>} : vector<16x384xbf16>, vector<384x1536xbf16>, vector<16x1536xf32> -> vector<16x1536xf32>
    %c0_72 = arith.constant 0 : index
    %c0_73 = arith.constant 0 : index
    %265 = vector.load %arg12[%c0_72, %c0_73] : memref<1x1536xf32, #tpu.memory_space<vmem>>, vector<1x1536xf32>
    %266 = vector.shape_cast %265 : vector<1x1536xf32> to vector<1536xf32>
    %267 = vector.shape_cast %266 : vector<1536xf32> to vector<1x1536xf32>
    %268 = vector.broadcast %267 : vector<1x1536xf32> to vector<16x1536xf32>
    %269 = arith.addf %264, %268 : vector<16x1536xf32>
    %cst_74 = arith.constant 0.000000e+00 : f32
    %270 = vector.broadcast %cst_74 : f32 to vector<16x1536xf32>
    %271 = arith.maximumf %269, %270 : vector<16x1536xf32>
    %272 = arith.truncf %271 : vector<16x1536xf32> to vector<16x1536xbf16>
    %c0_75 = arith.constant 0 : index
    %c0_76 = arith.constant 0 : index
    %273 = vector.load %arg13[%c0_75, %c0_76] : memref<1536x384xbf16, #tpu.memory_space<vmem>>, vector<1536x384xbf16>
    %cst_77 = arith.constant dense<0.000000e+00> : vector<16x384xf32>
    %274 = tpu.matmul %272, %273, %cst_77 {dimension_numbers = #tpu.dot_dimension_numbers<[1], [0], [0], [1], [0, 0, 1, 1], [], []>} : vector<16x1536xbf16>, vector<1536x384xbf16>, vector<16x384xf32> -> vector<16x384xf32>
    %c0_78 = arith.constant 0 : index
    %c0_79 = arith.constant 0 : index
    %275 = vector.load %arg14[%c0_78, %c0_79] : memref<1x384xf32, #tpu.memory_space<vmem>>, vector<1x384xf32>
    %276 = vector.shape_cast %275 : vector<1x384xf32> to vector<384xf32>
    %277 = vector.shape_cast %276 : vector<384xf32> to vector<1x384xf32>
    %278 = vector.broadcast %277 : vector<1x384xf32> to vector<16x384xf32>
    %279 = arith.addf %274, %278 : vector<16x384xf32>
    %280 = arith.addf %233, %279 : vector<16x384xf32>
    %281 = vector.shape_cast %280 : vector<16x384xf32> to vector<2x8x384xf32>
    %c0_80 = arith.constant 0 : index
    %c0_81 = arith.constant 0 : index
    %c0_82 = arith.constant 0 : index
    %282 = vector.load %arg15[%c0_80, %c0_81, %c0_82] : memref<2x8x384xf32, #tpu.memory_space<vmem>>, vector<2x8x384xf32>
    tpu.vector_store %arg15[%c0_80, %c0_81, %c0_82], %281 {strides = array<i32>} : memref<2x8x384xf32, #tpu.memory_space<vmem>>, vector<2x8x384xf32>,
    return
  }
  func.func @transform_0(%arg0: i32) -> (i32, i32, i32) {
    %c0_i32 = arith.constant 0 : i32
    %c0_i32_0 = arith.constant 0 : i32
    %c0_i32_1 = arith.constant 0 : i32
    return %arg0, %c0_i32, %c0_i32_0 : i32, i32, i32
  }
  func.func @transform_1(%arg0: i32) -> (i32, i32) {
    %c0_i32 = arith.constant 0 : i32
    %c0_i32_0 = arith.constant 0 : i32
    %c0_i32_1 = arith.constant 0 : i32
    return %c0_i32, %c0_i32_0 : i32, i32
  }
  func.func @transform_2(%arg0: i32) -> (i32, i32) {
    %c0_i32 = arith.constant 0 : i32
    %c0_i32_0 = arith.constant 0 : i32
    %c0_i32_1 = arith.constant 0 : i32
    return %c0_i32, %c0_i32_0 : i32, i32
  }
  func.func @transform_3(%arg0: i32) -> (i32, i32) {
    %c0_i32 = arith.constant 0 : i32
    %c0_i32_0 = arith.constant 0 : i32
    %c0_i32_1 = arith.constant 0 : i32
    return %c0_i32, %c0_i32_0 : i32, i32
  }
  func.func @transform_4(%arg0: i32) -> (i32, i32) {
    %c0_i32 = arith.constant 0 : i32
    %c0_i32_0 = arith.constant 0 : i32
    %c0_i32_1 = arith.constant 0 : i32
    return %c0_i32, %c0_i32_0 : i32, i32
  }
  func.func @transform_5(%arg0: i32) -> (i32, i32) {
    %c0_i32 = arith.constant 0 : i32
    %c0_i32_0 = arith.constant 0 : i32
    %c0_i32_1 = arith.constant 0 : i32
    return %c0_i32, %c0_i32_0 : i32, i32
  }
  func.func @transform_6(%arg0: i32) -> (i32, i32) {
    %c0_i32 = arith.constant 0 : i32
    %c0_i32_0 = arith.constant 0 : i32
    %c0_i32_1 = arith.constant 0 : i32
    return %c0_i32, %c0_i32_0 : i32, i32
  }
  func.func @transform_7(%arg0: i32) -> (i32, i32) {
    %c0_i32 = arith.constant 0 : i32
    %c0_i32_0 = arith.constant 0 : i32
    %c0_i32_1 = arith.constant 0 : i32
    return %c0_i32, %c0_i32_0 : i32, i32
  }
  func.func @transform_8(%arg0: i32) -> (i32, i32) {
    %c0_i32 = arith.constant 0 : i32
    %c0_i32_0 = arith.constant 0 : i32
    %c0_i32_1 = arith.constant 0 : i32
    return %c0_i32, %c0_i32_0 : i32, i32
  }
  func.func @transform_9(%arg0: i32) -> (i32, i32) {
    %c0_i32 = arith.constant 0 : i32
    %c0_i32_0 = arith.constant 0 : i32
    %c0_i32_1 = arith.constant 0 : i32
    return %c0_i32, %c0_i32_0 : i32, i32
  }
  func.func @transform_10(%arg0: i32) -> (i32, i32) {
    %c0_i32 = arith.constant 0 : i32
    %c0_i32_0 = arith.constant 0 : i32
    %c0_i32_1 = arith.constant 0 : i32
    return %c0_i32, %c0_i32_0 : i32, i32
  }
  func.func @transform_11(%arg0: i32) -> (i32, i32) {
    %c0_i32 = arith.constant 0 : i32
    %c0_i32_0 = arith.constant 0 : i32
    %c0_i32_1 = arith.constant 0 : i32
    return %c0_i32, %c0_i32_0 : i32, i32
  }
  func.func @transform_12(%arg0: i32) -> (i32, i32) {
    %c0_i32 = arith.constant 0 : i32
    %c0_i32_0 = arith.constant 0 : i32
    %c0_i32_1 = arith.constant 0 : i32
    return %c0_i32, %c0_i32_0 : i32, i32
  }
  func.func @transform_13(%arg0: i32) -> (i32, i32) {
    %c0_i32 = arith.constant 0 : i32
    %c0_i32_0 = arith.constant 0 : i32
    %c0_i32_1 = arith.constant 0 : i32
    return %c0_i32, %c0_i32_0 : i32, i32
  }
  func.func @transform_14(%arg0: i32) -> (i32, i32, i32) {
    %c0_i32 = arith.constant 0 : i32
    %c0_i32_0 = arith.constant 0 : i32
    %c0_i32_1 = arith.constant 0 : i32
    return %arg0, %c0_i32, %c0_i32_0 : i32, i32, i32
  }
}

</mosaic_0001>

<bundles_post_ra>
// kernel: tpu_custom_call.1
= control target key start
LH: loop header
LB: loop body
LE: loop exit
PB: predicated region body
PF: predicated region fallthrough
CT: control target
= control target key end

     0   :  { %19 = vsyncpa [#allocation3], 0  ;;  %s13580_s0 = inlined_call_operand.hbm [shape: f32[2,8,384], index: 0, kind: input, shape index: {}]   ;;  %s13581_s1 = inlined_call_operand.hbm [shape: bf16[384,384], index: 1, kind: input, shape index: {}]   ;;  %s13582_s2 = inlined_call_operand.hbm [shape: bf16[384,384], index: 2, kind: input, shape index: {}]   ;;  %s13583_s3 = inlined_call_operand.hbm [shape: bf16[384,384], index: 3, kind: input, shape index: {}]   ;;  %s13584_s4 = inlined_call_operand.hbm [shape: bf16[384,384], index: 4, kind: input, shape index: {}]   ;;  %s13585_s5 = inlined_call_operand.hbm [shape: f32[1,384], index: 5, kind: input, shape index: {}]   ;;  %s13586_s6 = inlined_call_operand.hbm [shape: f32[1,384], index: 6, kind: input, shape index: {}]   ;;  %s13587_s7 = inlined_call_operand.hbm [shape: f32[1,384], index: 7, kind: input, shape index: {}]   ;;  %s13588_s8 = inlined_call_operand.hbm [shape: f32[1,384], index: 8, kind: input, shape index: {}]   ;;  %s13589_s9 = inlined_call_operand.hbm [shape: f32[1,384], index: 9, kind: input, shape index: {}]   ;;  %s13590_s10 = inlined_call_operand.hbm [shape: bf16[384,1536], index: 10, kind: input, shape index: {}]   ;;  %s13591_s11 = inlined_call_operand.hbm [shape: f32[1,1536], index: 11, kind: input, shape index: {}]   ;;  %s13592_s12 = inlined_call_operand.hbm [shape: bf16[1536,384], index: 12, kind: input, shape index: {}]   ;;  %s13593_s13 = inlined_call_operand.hbm [shape: f32[1,384], index: 13, kind: input, shape index: {}]   ;;  %s13594_s14 = inlined_call_operand.hbm [shape: f32[2,8,384], index: 14, kind: output, shape index: {}]  }
   0x1   :  { %20 = vsyncpa [#allocation6], 0 }
   0x2   :  { %21 = vsyncpa [#allocation9], 0 }
   0x3   :  { %22 = vsyncpa [#allocation12], 0 }
   0x4   :  { %23 = vsyncpa [#allocation15], 0 }
   0x5   :  { %24 = vsyncpa [#allocation18], 0 }
   0x6   :  { %25 = vsyncpa [#allocation21], 0 }
   0x7   :  { %26 = vsyncpa [#allocation24], 0 }
   0x8   :  { %27 = vsyncpa [#allocation4], 0  ;;  %s12666_s29 = smov [#allocation5]  }
   0x9   :  { %s45_s30 = sshll.u32 %s12666_s29, 4  ;;  %s46_s30 = int_to_ptr.vmem [resolvable:$true] %s45_s30 }
   0xa   :  { %s12356_s15 = scalar_lea.vmem %s46_s30, 9216  ;;  %p12361_p1 = scmp.lt.s32.totalorder %s46_s30, %s46_s30 }
   0xb   :  { %p12357_p0 = scmp.ne.s32.totalorder %s46_s30, %s12356_s15  ;;  %p12362_p2 = scmp.lt.s32.totalorder %s12356_s15, %s12356_s15 }
   0xd   :  { %p12363_p3 = por %p12362_p2, %p12361_p1 }
   0xf   :  { %p12364_p4 = pnand %p12363_p3, %p12357_p0 }
  0x11   :  { %12367 = shalt.err (!%p12364_p4)
}
  0x12   :  { %s12667_s16 = smov 192   ;;  %s12668_s17 = smov 12  }
  0x13   :  { %51 = dma.hbm_to_vmem [thread:$0]  %s13581_s1, 9216, %s46_s30, [#allocation6], %s12667_s16, %s12667_s16, %s12668_s17  }
  0x14   :  { %s12669_s20 = smov [#allocation8]   ;;  %s12670_s22 = smov [#allocation11]  }
  0x15   :  { %s69_s21 = sshll.u32 %s12669_s20, 4  ;;  %s94_s23 = sshll.u32 %s12670_s22, 4  ;;  %s70_s21 = int_to_ptr.vmem [resolvable:$true] %s69_s21  ;;  %s95_s23 = int_to_ptr.vmem [resolvable:$true] %s94_s23 }
  0x16   :  { %s12376_s24 = scalar_lea.vmem %s70_s21, 9216  ;;  %p12381_p6 = scmp.lt.s32.totalorder %s70_s21, %s70_s21 }
  0x17   :  { %p12377_p5 = scmp.ne.s32.totalorder %s70_s21, %s12376_s24  ;;  %p12382_p7 = scmp.lt.s32.totalorder %s12376_s24, %s12376_s24 }
  0x19   :  { %p12383_p8 = por %p12382_p7, %p12381_p6 }
  0x1b   :  { %p12384_p9 = pnand %p12383_p8, %p12377_p5 }
  0x1d   :  { %12387 = shalt.err (!%p12384_p9)
}
  0x1e   :  { %75 = dma.hbm_to_vmem [thread:$0]  %s13583_s3, 9216, %s70_s21, [#allocation9], %s12667_s16, %s12667_s16, %s12668_s17  }
  0x1f   :  { %s12396_s1 = scalar_lea.vmem %s95_s23, 48  ;;  %s12400_s27 = scalar_lea.vmem %s95_s23, 64 }
  0x20   :  { %p12397_p10 = scmp.ne.s32.totalorder %s95_s23, %s12396_s1  ;;  %p12401_p11 = scmp.lt.s32.totalorder %s95_s23, %s95_s23 }
  0x21   :  { %p12402_p12 = scmp.lt.s32.totalorder %s12400_s27, %s12396_s1 }
  0x23   :  { %p12403_p13 = por %p12402_p12, %p12401_p11 }
  0x25   :  { %p12404_p0 = pnand %p12403_p13, %p12397_p10 }
  0x27   :  { %12407 = shalt.err (!%p12404_p0)
}
  0x28   :  { %97 = dma.hbm_to_vmem [thread:$0]  %s13585_s5, 48, %s95_s23, [#allocation12]  }
  0x29   :  { %s12671_s30 = smov [#allocation14]   ;;  %s12672_s18 = smov [#allocation17]  }
  0x2a   :  { %s114_s15 = sshll.u32 %s12671_s30, 4  ;;  %s134_s19 = sshll.u32 %s12672_s18, 4  ;;  %s115_s15 = int_to_ptr.vmem [resolvable:$true] %s114_s15  ;;  %s135_s19 = int_to_ptr.vmem [resolvable:$true] %s134_s19 }
  0x2b   :  { %s12416_s20 = scalar_lea.vmem %s115_s15, 48  ;;  %s12420_s3 = scalar_lea.vmem %s115_s15, 64 }
  0x2c   :  { %p12417_p1 = scmp.ne.s32.totalorder %s115_s15, %s12416_s20  ;;  %p12421_p2 = scmp.lt.s32.totalorder %s115_s15, %s115_s15 }
  0x2d   :  { %p12422_p3 = scmp.lt.s32.totalorder %s12420_s3, %s12416_s20 }
  0x2f   :  { %p12423_p4 = por %p12422_p3, %p12421_p2 }
  0x31   :  { %p12424_p5 = pnand %p12423_p4, %p12417_p1 }
  0x33   :  { %12427 = shalt.err (!%p12424_p5)
}
  0x34   :  { %117 = dma.hbm_to_vmem [thread:$0]  %s13587_s7, 48, %s115_s15, [#allocation15]  }
  0x35   :  { %s12436_s24 = scalar_lea.vmem %s135_s19, 48  ;;  %s12440_s5 = scalar_lea.vmem %s135_s19, 64 }
  0x36   :  { %p12437_p6 = scmp.ne.s32.totalorder %s135_s19, %s12436_s24  ;;  %p12441_p7 = scmp.lt.s32.totalorder %s135_s19, %s135_s19 }
  0x37   :  { %p12442_p8 = scmp.lt.s32.totalorder %s12440_s5, %s12436_s24 }
  0x39   :  { %p12443_p9 = por %p12442_p8, %p12441_p7 }
  0x3b   :  { %p12444_p10 = pnand %p12443_p9, %p12437_p6 }
  0x3d   :  { %12447 = shalt.err (!%p12444_p10)
}
  0x3e   :  { %137 = dma.hbm_to_vmem [thread:$0]  %s13589_s9, 48, %s135_s19, [#allocation18]  }
  0x3f   :  { %s12673_s26 = smov [#allocation20]   ;;  %s12674_s27 = smov [#allocation2]  }
  0x40   :  { %s156_s1 = sshll.u32 %s12673_s26, 4  ;;  %s33_s28 = sshll.u32 %s12674_s27, 4  ;;  %s157_s1 = int_to_ptr.vmem [resolvable:$true] %s156_s1  ;;  %s34_s28 = int_to_ptr.vmem [resolvable:$true] %s33_s28 }
  0x41   :  { %s12456_s29 = scalar_lea.vmem %s157_s1, 192  ;;  %p12461_p12 = scmp.lt.s32.totalorder %s157_s1, %s157_s1 }
  0x42   :  { %p12457_p11 = scmp.ne.s32.totalorder %s157_s1, %s12456_s29  ;;  %p12462_p13 = scmp.lt.s32.totalorder %s12456_s29, %s12456_s29 }
  0x44   :  { %p12463_p0 = por %p12462_p13, %p12461_p12 }
  0x46   :  { %p12464_p1 = pnand %p12463_p0, %p12457_p11 }
  0x48   :  { %12467 = shalt.err (!%p12464_p1)
}
  0x49   :  { %159 = dma.hbm_to_vmem [thread:$0]  %s13591_s11, 192, %s157_s1, [#allocation21]  }
  0x4a   :  { %s12476_s15 = scalar_lea.vmem %s34_s28, 768  ;;  %p12481_p3 = scmp.lt.s32.totalorder %s34_s28, %s34_s28 }
  0x4b   :  { %p12477_p2 = scmp.ne.s32.totalorder %s34_s28, %s12476_s15  ;;  %p12482_p4 = scmp.lt.s32.totalorder %s12476_s15, %s12476_s15 }
  0x4d   :  { %p12483_p5 = por %p12482_p4, %p12481_p3 }
  0x4f   :  { %p12484_p6 = pnand %p12483_p5, %p12477_p2 }
  0x51   :  { %12487 = shalt.err (!%p12484_p6)
}
  0x52   :  { %s12675_s9 = smov 384   ;;  %s12676_s18 = smov 24  }
  0x53   :  { %39 = dma.hbm_to_vmem [thread:$0]  %s13580_s0, 768, %s34_s28, [#allocation3], %s12675_s9, %s12675_s9, %s12676_s18  }
  0x54   :  { %s12677_s3 = smov [#allocation7]   ;;  %s12678_s11 = smov [#allocation10]  }
  0x55   :  { %s57_s21 = sshll.u32 %s12677_s3, 4  ;;  %s81_s22 = sshll.u32 %s12678_s11, 4  ;;  %s58_s21 = int_to_ptr.vmem [resolvable:$true] %s57_s21  ;;  %s82_s22 = int_to_ptr.vmem [resolvable:$true] %s81_s22 }
  0x56   :  { %s12496_s24 = scalar_lea.vmem %s58_s21, 9216  ;;  %p12501_p8 = scmp.lt.s32.totalorder %s58_s21, %s58_s21 }
  0x57   :  { %p12497_p7 = scmp.ne.s32.totalorder %s58_s21, %s12496_s24  ;;  %p12502_p9 = scmp.lt.s32.totalorder %s12496_s24, %s12496_s24 }
  0x59   :  { %p12503_p10 = por %p12502_p9, %p12501_p8 }
  0x5b   :  { %p12504_p11 = pnand %p12503_p10, %p12497_p7 }
  0x5d   :  { %12507 = shalt.err (!%p12504_p11)
}
  0x5e   :  { %63 = dma.hbm_to_vmem [thread:$0]  %s13582_s2, 9216, %s58_s21, [#allocation6], %s12667_s16, %s12667_s16, %s12668_s17  }
  0x5f   :  { %s12516_s0 = scalar_lea.vmem %s82_s22, 9216  ;;  %p12521_p13 = scmp.lt.s32.totalorder %s82_s22, %s82_s22 }
  0x60   :  { %p12517_p12 = scmp.ne.s32.totalorder %s82_s22, %s12516_s0  ;;  %p12522_p0 = scmp.lt.s32.totalorder %s12516_s0, %s12516_s0 }
  0x62   :  { %p12523_p1 = por %p12522_p0, %p12521_p13 }
  0x64   :  { %p12524_p2 = pnand %p12523_p1, %p12517_p12 }
  0x66   :  { %12527 = shalt.err (!%p12524_p2)
}
  0x67   :  { %87 = dma.hbm_to_vmem [thread:$0]  %s13584_s4, 9216, %s82_s22, [#allocation9], %s12667_s16, %s12667_s16, %s12668_s17  }
  0x68   :  { %s12679_s1 = smov [#allocation13]   ;;  %s12680_s28 = smov [#allocation16]  }
  0x69   :  { %s104_s27 = sshll.u32 %s12679_s1, 4  ;;  %s124_s2 = sshll.u32 %s12680_s28, 4  ;;  %s105_s27 = int_to_ptr.vmem [resolvable:$true] %s104_s27  ;;  %s125_s2 = int_to_ptr.vmem [resolvable:$true] %s124_s2 }
  0x6a   :  { %s12536_s29 = scalar_lea.vmem %s105_s27, 48  ;;  %s12540_s7 = scalar_lea.vmem %s105_s27, 64 }
  0x6b   :  { %p12537_p3 = scmp.ne.s32.totalorder %s105_s27, %s12536_s29  ;;  %p12541_p4 = scmp.lt.s32.totalorder %s105_s27, %s105_s27 }
  0x6c   :  { %p12542_p5 = scmp.lt.s32.totalorder %s12540_s7, %s12536_s29 }
  0x6e   :  { %p12543_p6 = por %p12542_p5, %p12541_p4 }
  0x70   :  { %p12544_p7 = pnand %p12543_p6, %p12537_p3 }
  0x72   :  { %12547 = shalt.err (!%p12544_p7)
}
  0x73   :  { %107 = dma.hbm_to_vmem [thread:$0]  %s13586_s6, 48, %s105_s27, [#allocation12]  }
  0x74   :  { %s12556_s19 = scalar_lea.vmem %s125_s2, 48  ;;  %s12560_s4 = scalar_lea.vmem %s125_s2, 64 }
  0x75   :  { %p12557_p8 = scmp.ne.s32.totalorder %s125_s2, %s12556_s19  ;;  %p12561_p9 = scmp.lt.s32.totalorder %s125_s2, %s125_s2 }
  0x76   :  { %p12562_p10 = scmp.lt.s32.totalorder %s12560_s4, %s12556_s19 }
  0x78   :  { %p12563_p11 = por %p12562_p10, %p12561_p9 }
  0x7a   :  { %p12564_p12 = pnand %p12563_p11, %p12557_p8 }
  0x7c   :  { %12567 = shalt.err (!%p12564_p12)
}
  0x7d   :  { %127 = dma.hbm_to_vmem [thread:$0]  %s13588_s8, 48, %s125_s2, [#allocation15]  }
  0x7e   :  { %s12681_s21 = smov [#allocation19]  }
  0x7f   :  { %s143_s11 = sshll.u32 %s12681_s21, 4  ;;  %s144_s11 = int_to_ptr.vmem [resolvable:$true] %s143_s11 }
  0x80   :  { %s12576_s22 = scalar_lea.vmem %s144_s11, 36864  ;;  %p12581_p0 = scmp.lt.s32.totalorder %s144_s11, %s144_s11 }
  0x81   :  { %p12577_p13 = scmp.ne.s32.totalorder %s144_s11, %s12576_s22  ;;  %p12582_p1 = scmp.lt.s32.totalorder %s12576_s22, %s12576_s22 }
  0x83   :  { %p12583_p2 = por %p12582_p1, %p12581_p0 }
  0x85   :  { %p12584_p3 = pnand %p12583_p2, %p12577_p13 }
  0x87   :  { %12587 = shalt.err (!%p12584_p3)
}
  0x88   :  { %s12682_s6 = smov 768   ;;  %s12683_s24 = smov 48  }
  0x89   :  { %149 = dma.hbm_to_vmem [thread:$0]  %s13590_s10, 36864, %s144_s11, [#allocation18], %s12682_s6, %s12682_s6, %s12683_s24  }
  0x8a   :  { %s12684_s0 = smov [#allocation22]   ;;  %s12685_s26 = smov [#allocation23]  }
  0x8b   :  { %s165_s25 = sshll.u32 %s12684_s0, 4  ;;  %s178_s8 = sshll.u32 %s12685_s26, 4  ;;  %s166_s25 = int_to_ptr.vmem [resolvable:$true] %s165_s25  ;;  %s179_s8 = int_to_ptr.vmem [resolvable:$true] %s178_s8 }
  0x8c   :  { %s12596_s1 = scalar_lea.vmem %s166_s25, 36864  ;;  %p12601_p5 = scmp.lt.s32.totalorder %s166_s25, %s166_s25 }
  0x8d   :  { %p12597_p4 = scmp.ne.s32.totalorder %s166_s25, %s12596_s1  ;;  %p12602_p6 = scmp.lt.s32.totalorder %s12596_s1, %s12596_s1 }
  0x8f   :  { %p12603_p7 = por %p12602_p6, %p12601_p5 }
  0x91   :  { %p12604_p8 = pnand %p12603_p7, %p12597_p4 }
  0x93   :  { %12607 = shalt.err (!%p12604_p8)
}
  0x94   :  { %171 = dma.hbm_to_vmem [thread:$0]  %s13592_s12, 36864, %s166_s25, [#allocation21], %s12667_s16, %s12667_s16, %s12668_s17  }
  0x95   :  { %s12616_s10 = scalar_lea.vmem %s179_s8, 48  ;;  %s12620_s2 = scalar_lea.vmem %s179_s8, 64 }
  0x96   :  { %p12617_p9 = scmp.ne.s32.totalorder %s179_s8, %s12616_s10  ;;  %p12621_p10 = scmp.lt.s32.totalorder %s179_s8, %s179_s8 }
  0x97   :  { %p12622_p11 = scmp.lt.s32.totalorder %s12620_s2, %s12616_s10 }
  0x99   :  { %p12623_p12 = por %p12622_p11, %p12621_p10 }
  0x9b   :  { %p12624_p13 = pnand %p12623_p12, %p12617_p9 }
  0x9d   :  { %12627 = shalt.err (!%p12624_p13)
}
  0x9e   :  { %181 = dma.hbm_to_vmem [thread:$0]  %s13593_s13, 48, %s179_s8, [#allocation24]  }
  0x9f   :  { %12648 = dma.done.wait [#allocation3], 768  }
  0xa0   :  { %12649 = vsyncadd [#allocation3], 4294966528 }
  0xa1   :  { %12650 = dma.done.wait [#allocation6], 18432  }
  0xa2   :  { %12651 = vsyncadd [#allocation6], 4294948864 }
  0xa3   :  { %12652 = dma.done.wait [#allocation9], 18432  }
  0xa4   :  { %12653 = vsyncadd [#allocation9], 4294948864 }
  0xa5   :  { %12654 = dma.done.wait [#allocation12], 96  }
  0xa6   :  { %12655 = vsyncadd [#allocation12], 4294967200 }
  0xa7   :  { %12656 = dma.done.wait [#allocation15], 96  }
  0xa8   :  { %12657 = vsyncadd [#allocation15], 4294967200 }
  0xa9   :  { %12658 = dma.done.wait [#allocation18], 36912  }
  0xaa   :  { %12659 = vsyncadd [#allocation18], 4294930384 }
  0xab   :  { %12660 = dma.done.wait [#allocation21], 37056  }
  0xac   :  { %12661 = vsyncadd [#allocation21], 4294930240 }
  0xad   :  { %12662 = dma.done.wait [#allocation24], 48  }
  0xae   :  { %12663 = vsyncadd [#allocation24], 4294967248  ;;  %v225_v0 = vld [vmem:[#allocation2] sm:$0xff]  ;;  %v226_v1 = vld [vmem:[#allocation2 + $0x8] sm:$0xff]  ;;  %vm12688_vm0 = vmmov 0   ;;  %vm2374_vm1 = vcmask 523264  }
  0xaf   :  { %v227_v2 = vld [vmem:[#allocation2 + $0x10] sm:$0xff]  ;;  %v233_v3 = vadd.f32 %v226_v1, %v225_v0  ;;  %v228_v4 = vld [vmem:[#allocation2 + $0x18] sm:$0xff]  ;;  %v229_v5 = vld [vmem:[#allocation2 + $0x20] sm:$0xff]  ;;  %vm2499_vm2 = vcmask 1043456   ;;  %vm2471_vm4 = vcmask 64512   ;;  %s12689_s12 = smov 64  }
  0xb0   :  { %v230_v6 = vld [vmem:[#allocation2 + $0x28] sm:$0xff]  ;;  %v237_v7 = vadd.f32 %v229_v5, %v228_v4  ;;  %v11088_v11 = vld [vmem:[#allocation5 + $0xa8] ss:$12 sps:$4 sm:$0xff]   ;;  %v11095_v17 = vld [vmem:[#allocation5 + $0x64] ss:$12 sps:$4 sm:$0xff]   ;;  %s12690_s13 = smov [#allocation25]  }
  0xb1   :  { %v234_v8 = vadd.f32 %v233_v3, %v227_v2  ;;  %v11086_v10 = vld [vmem:[#allocation5 + $0xac] ss:$12 sps:$4 sm:$0xff]   ;;  %v11089_v12 = vld [vmem:[#allocation5 + $0x94] ss:$12 sps:$4 sm:$0xff]   ;;  %v11091_v13 = vld [vmem:[#allocation5 + $0x90] ss:$12 sps:$4 sm:$0xff]  }
  0xb2   :  { %v238_v9 = vadd.f32 %v237_v7, %v230_v6  ;;  %803 = vmatprep.subr.bf16.mxu0 %v11086_v10  ;;  %v11092_v14 = vld [vmem:[#allocation5 + $0x7c] ss:$12 sps:$4 sm:$0xff]   ;;  %v11094_v15 = vld [vmem:[#allocation5 + $0x78] ss:$12 sps:$4 sm:$0xff]   ;;  %v11097_v19 = vld [vmem:[#allocation5 + $0x60] ss:$12 sps:$4 sm:$0xff]  }
  0xb3   :  { %235 = vadd.xlane.f32.xlu0 %v234_v8  ;;  %804 = vmatpush1.bf16.msra.mxu0 %v11088_v11  ;;  %v11110_v16 = vld [vmem:[#allocation5 + $0x22c] ss:$12 sps:$4 sm:$0xff]   ;;  %v11114_v18 = vld [vmem:[#allocation5 + $0x228] ss:$12 sps:$4 sm:$0xff]   ;;  %v11103_v23 = vld [vmem:[#allocation5 + $0x30] ss:$12 sps:$4 sm:$0xff]  }
  0xb4   :  { %805 = vmatprep.subr.bf16.mxu0 %v11089_v12  ;;  %846 = vmatprep.subr.bf16.mxu1 %v11110_v16  ;;  %v11098_v20 = vld [vmem:[#allocation5 + $0x4c] ss:$12 sps:$4 sm:$0xff]   ;;  %v11100_v21 = vld [vmem:[#allocation5 + $0x48] ss:$12 sps:$4 sm:$0xff]   ;;  %v11107_v26 = vld [vmem:[#allocation5 + $0x4] ss:$12 sps:$4 sm:$0xff]  }
  0xb5   :  { %847 = vmatpush1.bf16.msra.mxu1 %v11114_v18  ;;  %v11101_v22 = vld [vmem:[#allocation5 + $0x34] ss:$12 sps:$4 sm:$0xff]   ;;  %v11104_v24 = vld [vmem:[#allocation5 + $0x1c] ss:$12 sps:$4 sm:$0xff]   ;;  %v11106_v25 = vld [vmem:[#allocation5 + $0x18] ss:$12 sps:$4 sm:$0xff]  }
  0xb6   :  { %v11109_v27 = vld [vmem:[#allocation5] ss:$12 sps:$4 sm:$0xff]   ;;  %v11115_v29 = vld [vmem:[#allocation5 + $0x168] ss:$12 sps:$4 sm:$0xff]   ;;  %v11120_v52 = vld [vmem:[#allocation5 + $0x210] ss:$12 sps:$4 sm:$0xff]  }
  0xb7   :  { %239 = vadd.xlane.f32.xlu0 %v238_v9  ;;  %806 = vmatpush1.bf16.msra.mxu0 %v11091_v13  ;;  %v11112_v28 = vld [vmem:[#allocation5 + $0x16c] ss:$12 sps:$4 sm:$0xff]   ;;  %v11116_v50 = vld [vmem:[#allocation5 + $0x214] ss:$12 sps:$4 sm:$0xff]   ;;  %v11121_v53 = vld [vmem:[#allocation5 + $0x150] ss:$12 sps:$4 sm:$0xff]  }
  0xb8   :  { %807 = vmatprep.subr.bf16.mxu0 %v11092_v14  ;;  %v11118_v51 = vld [vmem:[#allocation5 + $0x154] ss:$12 sps:$4 sm:$0xff]   ;;  %848 = vmatprep.subr.bf16.mxu1 %v11116_v50  ;;  %v11122_v54 = vld [vmem:[#allocation5 + $0x1fc] ss:$12 sps:$4 sm:$0xff]   ;;  %v11126_v56 = vld [vmem:[#allocation5 + $0x1f8] ss:$12 sps:$4 sm:$0xff]  }
  0xb9   :  { %849 = vmatpush1.bf16.msra.mxu1 %v11120_v52  ;;  %v11124_v55 = vld [vmem:[#allocation5 + $0x13c] ss:$12 sps:$4 sm:$0xff]   ;;  %v11127_v57 = vld [vmem:[#allocation5 + $0x138] ss:$12 sps:$4 sm:$0xff]   ;;  %v11132_v60 = vld [vmem:[#allocation5 + $0x1e0] ss:$12 sps:$4 sm:$0xff]  }
  0xba   :  { %850 = vmatprep.subr.bf16.mxu1 %v11122_v54  ;;  %v11128_v58 = vld [vmem:[#allocation5 + $0x1e4] ss:$12 sps:$4 sm:$0xff]   ;;  %v11133_v61 = vld [vmem:[#allocation5 + $0x120] ss:$12 sps:$4 sm:$0xff]   ;;  %v11148_v7 = vld [vmem:[#allocation5 + $0xdc] ss:$12 sps:$4 sm:$0xff]  }
  0xbb   :  { %808 = vmatpush1.bf16.msra.mxu0 %v11094_v15  ;;  %v11130_v59 = vld [vmem:[#allocation5 + $0x124] ss:$12 sps:$4 sm:$0xff]   ;;  %v11134_v62 = vld [vmem:[#allocation5 + $0x1cc] ss:$12 sps:$4 sm:$0xff]   ;;  %v11142_v3 = vld [vmem:[#allocation5 + $0xf4] ss:$12 sps:$4 sm:$0xff]  }
  0xbc   :  { %809 = vmatprep.subr.bf16.mxu0 %v11095_v17  ;;  %v11136_v63 = vld [vmem:[#allocation5 + $0x10c] ss:$12 sps:$4 sm:$0xff]   ;;  %v12686_v9 = vmov 0   ;;  %v11152_v11 = vld [vmem:[#allocation5 + $0x184] ss:$12 sps:$4 sm:$0xff]   ;;  %v12687_v16 = vmov 0.0  }
  0xbd   :  { %851 = vmatpush1.bf16.msra.mxu1 %v11126_v56  ;;  %v11150_v8 = vld [vmem:[#allocation5 + $0x198] ss:$12 sps:$4 sm:$0xff]   ;;  %878 = vmatprep.mubr.bf16.mxu1 %v12686_v9  ;;  %v11156_v13 = vld [vmem:[#allocation5 + $0x180] ss:$12 sps:$4 sm:$0xff]   ;;  %v11158_v15 = vld [vmem:[#allocation5 + $0x170] ss:$12 sps:$4 sm:$0xff]  }
  0xbe   :  { %852 = vmatprep.subr.bf16.mxu1 %v11128_v58  ;;  %v11151_v10 = vld [vmem:[#allocation5 + $0xd8] ss:$12 sps:$4 sm:$0xff]   ;;  %v11157_v14 = vld [vmem:[#allocation5 + $0xc0] ss:$12 sps:$4 sm:$0xff]   ;;  %s9563_s16 = sshll.u32 %s12690_s13, 4  ;;  %s9564_s16 = int_to_ptr.vmem [resolvable:$true] %s9563_s16 }
  0xbf   :  { %810 = vmatpush1.bf16.msra.mxu0 %v11097_v19  ;;  %v11154_v12 = vld [vmem:[#allocation5 + $0xc4] ss:$12 sps:$4 sm:$0xff]   ;;  %s12628_s17 = scalar_lea.vmem %s9564_s16, 768  ;;  %p12633_p1 = scmp.lt.s32.totalorder %s9564_s16, %s9564_s16 }
  0xc0   :  { %811 = vmatprep.subr.bf16.mxu0 %v11098_v20  ;;  %p12629_p0 = scmp.ne.s32.totalorder %s9564_s16, %s12628_s17  ;;  %p12634_p2 = scmp.lt.s32.totalorder %s12628_s17, %s12628_s17 }
  0xc1   :  { %853 = vmatpush1.bf16.msra.mxu1 %v11132_v60 }
  0xc2   :  { %854 = vmatprep.subr.bf16.mxu1 %v11134_v62  ;;  %v11162_v62 = vld [vmem:[#allocation5 + $0x98] ss:$12 sps:$4 sm:$0xff]   ;;  %p12635_p3 = por %p12634_p2, %p12633_p1 }
  0xc3   :  { %812 = vmatpush1.bf16.msra.mxu0 %v11100_v21 }
  0xc4   :  { %813 = vmatprep.subr.bf16.mxu0 %v11101_v22  ;;  %p12636_p4 = pnand %p12635_p3, %p12629_p0 }
  0xc7   :  { %814 = vmatpush1.bf16.msra.mxu0 %v11103_v23  ;;  %v277_v23 = vlaneseq }
  0xc8   :  { %815 = vmatprep.subr.bf16.mxu0 %v11104_v24 }
  0xc9   :  { %v12853_v24 = vshrl.u32 %v277_v23, 7 }
  0xcb   :  { %816 = vmatpush1.bf16.msra.mxu0 %v11106_v25  ;;  %v12856_v25 = vsub.s32 1, %v12853_v24 }
  0xcc   :  { %817 = vmatprep.subr.bf16.mxu0 %v11107_v26  ;;  %v12859_v26 = vsub.s32 2, %v12853_v24 }
  0xcf   :  { %818 = vmatpush1.bf16.msra.mxu0 %v11109_v27  ;;  %v231_v27 = vld [vmem:[#allocation13] sm:$0x7] }
  0xd0   :  { %819 = vmatprep.subr.bf16.mxu0 %v11112_v28  ;;  %v12862_v28 = vsub.s32 0, %v12853_v24 }
  0xd3   :  { %820 = vmatpush2.bf16.msra.mxu0 %v11115_v29 }
  0xd4   :  { %821 = vmatprep.subr.bf16.mxu0 %v11118_v51 }
  0xd7   :  { %822 = vmatpush2.bf16.msra.mxu0 %v11121_v53 }
  0xd8   :  { %823 = vmatprep.subr.bf16.mxu0 %v11124_v55 }
  0xdb   :  { %824 = vmatpush2.bf16.msra.mxu0 %v11127_v57  ;;  %v11159_v57 = vld [vmem:[#allocation5 + $0xb0] ss:$12 sps:$4 sm:$0xff]  }
  0xdc   :  { %825 = vmatprep.subr.bf16.mxu0 %v11130_v59 }
  0xdf   :  { %826 = vmatpush2.bf16.msra.mxu0 %v11133_v61 }
  0xe0   :  { %827 = vmatprep.subr.bf16.mxu0 %v11136_v63  ;;  %v11163_v63 = vld [vmem:[#allocation5 + $0x218] ss:$12 sps:$4 sm:$0xff]  }
 0x13c   :  { %v236_v30 = vpop.xlane.xlu0 %235 }
 0x13d   :  { %v242_v31 = vmul.f32 0.0026041667, %v236_v30  ;;  %v232_v30 = vld [vmem:[#allocation14] sm:$0x7] }
 0x13e   :  { %v302_v50 = vrot.slane %v232_v30, %v12862_v28 }
 0x13f   :  { %v12826_v32 = vsub.f32 %v225_v0, %v242_v31  ;;  %v12828_v33 = vsub.f32 %v226_v1, %v242_v31  ;;  %v12830_v34 = vsub.f32 %v227_v2, %v242_v31  ;;  %v11138_v0 = vld [vmem:[#allocation5 + $0x1c8] ss:$12 sps:$4 sm:$0xff]  }
 0x140   :  { %v240_v35 = vpop.xlane.xlu0 %239  ;;  %v11139_v1 = vld [vmem:[#allocation5 + $0x108] ss:$12 sps:$4 sm:$0xff]   ;;  %855 = vmatpush1.bf16.msra.mxu1 %v11138_v0  ;;  %v11164_v0 = vld [vmem:[#allocation5 + $0x140] ss:$12 sps:$4 sm:$0xff]  }
 0x141   :  { %v243_v36 = vmul.f32 0.0026041667, %v240_v35  ;;  %v250_v37 = vmul.f32 %v12826_v32, %v12826_v32  ;;  %v251_v38 = vmul.f32 %v12828_v33, %v12828_v33  ;;  %v252_v39 = vmul.f32 %v12830_v34, %v12830_v34  ;;  %v11140_v2 = vld [vmem:[#allocation5 + $0x1b4] ss:$12 sps:$4 sm:$0xff]   ;;  %828 = vmatpush2.bf16.msra.mxu0 %v11139_v1 }
 0x142   :  { %856 = vmatprep.subr.bf16.mxu1 %v11140_v2  ;;  %829 = vmatprep.subr.bf16.mxu0 %v11142_v3  ;;  %v284_v35 = vrot.slane %v231_v27, %v12856_v25  ;;  %v11165_v1 = vld [vmem:[#allocation5 + $0x80] ss:$12 sps:$4 sm:$0xff]   ;;  %v11167_v3 = vld [vmem:[#allocation5 + $0x128] ss:$12 sps:$4 sm:$0xff]  }
 0x143   :  { %v12838_v40 = vsub.f32 %v228_v4, %v243_v36  ;;  %v12840_v41 = vsub.f32 %v229_v5, %v243_v36  ;;  %v12842_v42 = vsub.f32 %v230_v6, %v243_v36  ;;  %v256_v43 = vadd.f32 %v251_v38, %v250_v37  ;;  %v11144_v4 = vld [vmem:[#allocation5 + $0x1b0] ss:$12 sps:$4 sm:$0xff]   ;;  %v11166_v2 = vld [vmem:[#allocation5 + $0x200] ss:$12 sps:$4 sm:$0xff]  }
 0x144   :  { %v11145_v5 = vld [vmem:[#allocation5 + $0xf0] ss:$12 sps:$4 sm:$0xff]   ;;  %857 = vmatpush1.bf16.msra.mxu1 %v11144_v4  ;;  %v288_v37 = vrot.slane %v231_v27, %v12859_v26  ;;  %v11168_v4 = vld [vmem:[#allocation5 + $0x68] ss:$12 sps:$4 sm:$0xff]  }
 0x145   :  { %v257_v44 = vadd.f32 %v256_v43, %v252_v39  ;;  %v253_v45 = vmul.f32 %v12838_v40, %v12838_v40  ;;  %v254_v46 = vmul.f32 %v12840_v41, %v12840_v41  ;;  %v255_v47 = vmul.f32 %v12842_v42, %v12842_v42  ;;  %v11146_v6 = vld [vmem:[#allocation5 + $0x19c] ss:$12 sps:$4 sm:$0xff]   ;;  %830 = vmatpush2.bf16.msra.mxu0 %v11145_v5 }
 0x146   :  { %858 = vmatprep.subr.bf16.mxu1 %v11146_v6  ;;  %831 = vmatprep.subr.bf16.mxu0 %v11148_v7  ;;  %v280_v39 = vrot.slane %v231_v27, %v12862_v28  ;;  %v11169_v5 = vld [vmem:[#allocation5 + $0x1e8] ss:$12 sps:$4 sm:$0xff]   ;;  %v11170_v6 = vld [vmem:[#allocation5 + $0x110] ss:$12 sps:$4 sm:$0xff]  }
 0x147   :  { %258 = vadd.xlane.f32.xlu1 %v257_v44  ;;  %v260_v48 = vadd.f32 %v254_v46, %v253_v45  ;;  %v306_v44 = vrot.slane %v232_v30, %v12856_v25  ;;  %v310_v45 = vrot.slane %v232_v30, %v12859_v26  ;;  %v11171_v7 = vld [vmem:[#allocation5 + $0x50] ss:$12 sps:$4 sm:$0xff]   ;;  %v11185_v27 = vld [vmem:[#allocation7 + $0x228] ss:$12 sps:$4 sm:$0xff]  }
 0x148   :  { %859 = vmatpush1.bf16.msra.mxu1 %v11150_v8  ;;  %v11172_v8 = vld [vmem:[#allocation5 + $0x1d0] ss:$12 sps:$4 sm:$0xff]   ;;  %v11193_v30 = vld [vmem:[#allocation7 + $0x214] ss:$12 sps:$4 sm:$0xff]  }
 0x149   :  { %v261_v49 = vadd.f32 %v260_v48, %v255_v47  ;;  %832 = vmatpush2.bf16.msra.mxu0 %v11151_v10  ;;  %860 = vmatprep.subr.bf16.mxu1 %v11152_v11  ;;  %v11173_v10 = vld [vmem:[#allocation5 + $0xf8] ss:$12 sps:$4 sm:$0xff]  }
 0x14a   :  { %833 = vmatprep.subr.bf16.mxu0 %v11154_v12  ;;  %v11174_v11 = vld [vmem:[#allocation5 + $0x38] ss:$12 sps:$4 sm:$0xff]  }
 0x14b   :  { %262 = vadd.xlane.f32.xlu1 %v261_v49  ;;  %v11175_v12 = vld [vmem:[#allocation5 + $0x1b8] ss:$12 sps:$4 sm:$0xff]  }
 0x14c   :  { %861 = vmatpush1.bf16.msra.mxu1 %v11156_v13  ;;  %v11176_v13 = vld [vmem:[#allocation5 + $0xe0] ss:$12 sps:$4 sm:$0xff]  }
 0x14d   :  { %834 = vmatpush2.bf16.msra.mxu0 %v11157_v14  ;;  %10482 = vmatprep.subr.bf16.mxu1 %v11158_v15  ;;  %v11177_v14 = vld [vmem:[#allocation5 + $0x20] ss:$12 sps:$4 sm:$0xff]  }
 0x14e   :  { %10785 = vmatprep.subr.bf16.mxu0 %v12687_v16  ;;  %v11178_v15 = vld [vmem:[#allocation5 + $0x1a0] ss:$12 sps:$4 sm:$0xff]  }
 0x1d0   :  { %v259_v17 = vpop.xlane.xlu1 %258 }
 0x1d1   :  { %v264_v18 = vmul.f32 0.0026041667, %v259_v17  ;;  %v11179_v17 = vld [vmem:[#allocation5 + $0xc8] ss:$12 sps:$4 sm:$0xff]  }
 0x1d3   :  { %v266_v19 = vadd.f32 1e-05, %v264_v18  ;;  %v11180_v18 = vld [vmem:[#allocation5 + $0x8] ss:$12 sps:$4 sm:$0xff]  }
 0x1d4   :  { %v263_v20 = vpop.xlane.xlu1 %262 }
 0x1d5   :  { %12286 = vrsqrt.f32 %v266_v19  ;;  %v265_v21 = vmul.f32 0.0026041667, %v263_v20  ;;  %v11181_v19 = vld [vmem:[#allocation5 + $0x188] ss:$12 sps:$4 sm:$0xff]   ;;  %v11184_v20 = vld [vmem:[#allocation7 + $0xac] ss:$12 sps:$4 sm:$0xff]  }
 0x1d7   :  { %v267_v22 = vadd.f32 1e-05, %v265_v21  ;;  %v11182_v21 = vld [vmem:[#allocation7 + $0xa8] ss:$12 sps:$4 sm:$0xff]  }
 0x1d9   :  { %12288 = vrsqrt.f32 %v267_v22  ;;  %v11187_v22 = vld [vmem:[#allocation7 + $0x22c] ss:$12 sps:$4 sm:$0xff]  }
 0x1e2   :  { %v12287_v29 = vpop.eup %12286 }
 0x1e3   :  { %v271_v31 = vmul.f32 %v12287_v29, %v12828_v33  ;;  %v272_v36 = vmul.f32 %v12287_v29, %v12830_v34  ;;  %v270_v38 = vmul.f32 %v12287_v29, %v12826_v32  ;;  %v11190_v29 = vld [vmem:[#allocation7 + $0x94] ss:$12 sps:$4 sm:$0xff]  }
 0x1e5   :  { %v293_v47 = vmul.f32 %v284_v35, %v271_v31  ;;  %v294_v48 = vmul.f32 %v288_v37, %v272_v36  ;;  %v292_v34 = vmul.f32 %v280_v39, %v270_v38  ;;  %v11188_v31 = vld [vmem:[#allocation7 + $0x90] ss:$12 sps:$4 sm:$0xff]  }
 0x1e6   :  { %v12289_v43 = vpop.eup %12288  ;;  %v11196_v36 = vld [vmem:[#allocation7 + $0x7c] ss:$12 sps:$4 sm:$0xff]  }
 0x1e7   :  { %v274_v46 = vmul.f32 %v12289_v43, %v12840_v41  ;;  %v275_v33 = vmul.f32 %v12289_v43, %v12842_v42  ;;  %v273_v49 = vmul.f32 %v12289_v43, %v12838_v40  ;;  %v315_v53 = vadd.f32 %v306_v44, %v293_v47  ;;  %v11160_v41 = vld [vmem:[#allocation5 + $0x230] ss:$12 sps:$4 sm:$0xff]   ;;  %v11161_v40 = vld [vmem:[#allocation5 + $0x158] ss:$12 sps:$4 sm:$0xff]  }
 0x1e8   :  { %v316_v55 = vadd.f32 %v310_v45, %v294_v48  ;;  %v314_v58 = vadd.f32 %v302_v50, %v292_v34  ;;  %v11199_v38 = vld [vmem:[#allocation7 + $0x1fc] ss:$12 sps:$4 sm:$0xff]   ;;  %v11202_v43 = vld [vmem:[#allocation7 + $0x64] ss:$12 sps:$4 sm:$0xff]   ;;  %v11208_v47 = vld [vmem:[#allocation7 + $0x4c] ss:$12 sps:$4 sm:$0xff]  }
 0x1e9   :  { %v296_v51 = vmul.f32 %v284_v35, %v274_v46  ;;  %v297_v32 = vmul.f32 %v288_v37, %v275_v33  ;;  %v295_v52 = vmul.f32 %v280_v39, %v273_v49  ;;  %v11191_v35 = vld [vmem:[#allocation7 + $0x210] ss:$12 sps:$4 sm:$0xff]   ;;  %v11194_v37 = vld [vmem:[#allocation7 + $0x78] ss:$12 sps:$4 sm:$0xff]   ;;  %v11203_v46 = vld [vmem:[#allocation7 + $0x1e0] ss:$12 sps:$4 sm:$0xff]  }
 0x1ea   :  { %v11197_v39 = vld [vmem:[#allocation7 + $0x1f8] ss:$12 sps:$4 sm:$0xff]   ;;  %v11206_v48 = vld [vmem:[#allocation7 + $0x48] ss:$12 sps:$4 sm:$0xff]  }
 0x1eb   :  { %v318_v54 = vadd.f32 %v306_v44, %v296_v51  ;;  %v319_v56 = vadd.f32 %v310_v45, %v297_v32  ;;  %v317_v59 = vadd.f32 %v302_v50, %v295_v52  ;;  %v11205_v44 = vld [vmem:[#allocation7 + $0x1e4] ss:$12 sps:$4 sm:$0xff]   ;;  %v11200_v45 = vld [vmem:[#allocation7 + $0x60] ss:$12 sps:$4 sm:$0xff]   ;;  %v11209_v49 = vld [vmem:[#allocation7 + $0x1c8] ss:$12 sps:$4 sm:$0xff]  }
 0x1ec   :  { %v11211_v33 = vld [vmem:[#allocation7 + $0x1cc] ss:$12 sps:$4 sm:$0xff]   ;;  %v11214_v34 = vld [vmem:[#allocation7 + $0x34] ss:$12 sps:$4 sm:$0xff]   ;;  %v11212_v51 = vld [vmem:[#allocation7 + $0x30] ss:$12 sps:$4 sm:$0xff]  }
 0x1ed   :  { %v12876_v60 = vpack.c.bf16 %v318_v54, %v315_v53  ;;  %v12878_v42 = vpack.c.bf16 %v319_v56, %v316_v55  ;;  %v12880_v61 = vpack.c.bf16 %v317_v59, %v314_v58  ;;  %v11217_v50 = vld [vmem:[#allocation7 + $0x1b4] ss:$12 sps:$4 sm:$0xff]   ;;  %v11215_v32 = vld [vmem:[#allocation7 + $0x1b0] ss:$12 sps:$4 sm:$0xff]   ;;  %v11218_v54 = vld [vmem:[#allocation7 + $0x18] ss:$12 sps:$4 sm:$0xff]  }
 0x1ee   :  { %v11220_v52 = vld [vmem:[#allocation7 + $0x1c] ss:$12 sps:$4 sm:$0xff]   ;;  %v11221_v55 = vld [vmem:[#allocation7 + $0x198] ss:$12 sps:$4 sm:$0xff]   ;;  %v11224_v58 = vld [vmem:[#allocation7] ss:$12 sps:$4 sm:$0xff]  }
 0x1ef   :  { %835 = vmatprep.mubr.bf16.mxu0 %v12876_v60  ;;  %879 = vmatmul.mubr.bf16.vlgmr.msra.gmra.mxu1 %v12878_v42  ;;  %v11223_v53 = vld [vmem:[#allocation7 + $0x19c] ss:$12 sps:$4 sm:$0xff]   ;;  %v11226_v56 = vld [vmem:[#allocation7 + $0x4] ss:$12 sps:$4 sm:$0xff]   ;;  %v11227_v59 = vld [vmem:[#allocation7 + $0x180] ss:$12 sps:$4 sm:$0xff]  }
 0x1f0   :  { %10483 = vmatpush3.bf16.msra.mxu1 %v11159_v57  ;;  %836 = vmatmul.mubr.bf16.vlgmr.msra.gmra.mxu0 %v12880_v61  ;;  %v11229_v57 = vld [vmem:[#allocation7 + $0x184] ss:$12 sps:$4 sm:$0xff]  }
 0x1f1   :  { %921 = vmatprep.mubr.bf16.mxu1 %v12876_v60  ;;  %10786 = vmatpush3.bf16.msra.mxu0 %v11160_v41  ;;  %v11232_v41 = vld [vmem:[#allocation7 + $0x16c] ss:$12 sps:$4 sm:$0xff]  }
 0x1f2   :  { %10484 = vmatprep.subr.bf16.mxu1 %v11161_v40  ;;  %10787 = vmatprep.subr.bf16.mxu0 %v12687_v16  ;;  %v11233_v40 = vld [vmem:[#allocation7 + $0x170] ss:$12 sps:$4 sm:$0xff]  }
 0x1f3   :  { %10801 = vmatprep.mubr.msk.bf16.mxu0 %vm12688_vm0, %v12687_v16 }
 0x1f4   :  { %10485 = vmatpush3.bf16.msra.mxu1 %v11162_v62  ;;  %v11230_v62 = vld [vmem:[#allocation7 + $0x168] ss:$12 sps:$4 sm:$0xff]  }
 0x1f5   :  { %10788 = vmatpush3.bf16.msra.mxu0 %v11163_v63  ;;  %10486 = vmatprep.subr.bf16.mxu1 %v11164_v0  ;;  %v11234_v63 = vld [vmem:[#allocation7 + $0xb0] ss:$12 sps:$4 sm:$0xff]   ;;  %v11237_v0 = vld [vmem:[#allocation7 + $0x154] ss:$12 sps:$4 sm:$0xff]  }
 0x1f6   :  { %10789 = vmatprep.subr.bf16.mxu0 %v12687_v16 }
 0x1f8   :  { %10487 = vmatpush3.bf16.msra.mxu1 %v11165_v1  ;;  %v11238_v1 = vld [vmem:[#allocation7 + $0x158] ss:$12 sps:$4 sm:$0xff]  }
 0x1f9   :  { %10790 = vmatpush3.bf16.msra.mxu0 %v11166_v2  ;;  %10488 = vmatprep.subr.bf16.mxu1 %v11167_v3  ;;  %v11235_v2 = vld [vmem:[#allocation7 + $0x150] ss:$12 sps:$4 sm:$0xff]   ;;  %v11239_v3 = vld [vmem:[#allocation7 + $0x98] ss:$12 sps:$4 sm:$0xff]  }
 0x1fa   :  { %10791 = vmatprep.subr.bf16.mxu0 %v12687_v16 }
 0x1fc   :  { %10489 = vmatpush3.bf16.msra.mxu1 %v11168_v4  ;;  %v11242_v4 = vld [vmem:[#allocation7 + $0x13c] ss:$12 sps:$4 sm:$0xff]  }
 0x1fd   :  { %10792 = vmatpush3.bf16.msra.mxu0 %v11169_v5  ;;  %10490 = vmatprep.subr.bf16.mxu1 %v11170_v6  ;;  %v11243_v5 = vld [vmem:[#allocation7 + $0x140] ss:$12 sps:$4 sm:$0xff]   ;;  %v11240_v6 = vld [vmem:[#allocation7 + $0x138] ss:$12 sps:$4 sm:$0xff]  }
 0x1fe   :  { %10793 = vmatprep.subr.bf16.mxu0 %v12687_v16 }
 0x200   :  { %10491 = vmatpush3.bf16.msra.mxu1 %v11171_v7  ;;  %v11244_v7 = vld [vmem:[#allocation7 + $0x80] ss:$12 sps:$4 sm:$0xff]  }
 0x201   :  { %10794 = vmatpush3.bf16.msra.mxu0 %v11172_v8  ;;  %10492 = vmatprep.subr.bf16.mxu1 %v11173_v10  ;;  %v11247_v8 = vld [vmem:[#allocation7 + $0x124] ss:$12 sps:$4 sm:$0xff]   ;;  %v11248_v10 = vld [vmem:[#allocation7 + $0x128] ss:$12 sps:$4 sm:$0xff]  }
 0x202   :  { %10795 = vmatprep.subr.bf16.mxu0 %v12687_v16 }
 0x204   :  { %10493 = vmatpush3.bf16.msra.mxu1 %v11174_v11  ;;  %v11245_v11 = vld [vmem:[#allocation7 + $0x120] ss:$12 sps:$4 sm:$0xff]  }
 0x205   :  { %10796 = vmatpush3.bf16.msra.mxu0 %v11175_v12  ;;  %10494 = vmatprep.subr.bf16.mxu1 %v11176_v13  ;;  %v11249_v12 = vld [vmem:[#allocation7 + $0x68] ss:$12 sps:$4 sm:$0xff]   ;;  %v11252_v13 = vld [vmem:[#allocation7 + $0x10c] ss:$12 sps:$4 sm:$0xff]  }
 0x206   :  { %10797 = vmatprep.subr.bf16.mxu0 %v12687_v16 }
 0x208   :  { %10495 = vmatpush3.bf16.msra.mxu1 %v11177_v14  ;;  %v11253_v14 = vld [vmem:[#allocation7 + $0x110] ss:$12 sps:$4 sm:$0xff]  }
 0x209   :  { %10798 = vmatpush3.bf16.msra.mxu0 %v11178_v15  ;;  %10496 = vmatprep.subr.bf16.mxu1 %v11179_v17  ;;  %v11250_v15 = vld [vmem:[#allocation7 + $0x108] ss:$12 sps:$4 sm:$0xff]   ;;  %v11254_v17 = vld [vmem:[#allocation7 + $0x50] ss:$12 sps:$4 sm:$0xff]  }
 0x20a   :  { %10799 = vmatprep.subr.bf16.mxu0 %v12687_v16 }
 0x20c   :  { %10497 = vmatpush3.bf16.msra.mxu1 %v11180_v18  ;;  %v11257_v18 = vld [vmem:[#allocation7 + $0xf4] ss:$12 sps:$4 sm:$0xff]  }
 0x20d   :  { %10800 = vmatpush3.bf16.msra.mxu0 %v11181_v19  ;;  %1451 = vmatprep.subr.bf16.mxu1 %v11184_v20  ;;  %v11258_v19 = vld [vmem:[#allocation7 + $0xf8] ss:$12 sps:$4 sm:$0xff]   ;;  %v11255_v20 = vld [vmem:[#allocation7 + $0xf0] ss:$12 sps:$4 sm:$0xff]  }
 0x20e   :  { %1494 = vmatprep.subr.bf16.mxu0 %v11187_v22  ;;  %v11262_v22 = vld [vmem:[#allocation7 + $0xdc] ss:$12 sps:$4 sm:$0xff]  }
 0x20f   :  { %922 = vmatmul.mubr.bf16.vlgmr.msra.gmra.mxu1 %v12880_v61 }
 0x210   :  { %10802 = vmatmul.mubr.bf16.vlgmr.msra.gmra.mxu0 %v12878_v42  ;;  %1452 = vmatpush1.bf16.msra.mxu1 %v11182_v21  ;;  %v11259_v21 = vld [vmem:[#allocation7 + $0x38] ss:$12 sps:$4 sm:$0xff]  }
 0x211   :  { %1483 = vmatprep.mubr.bf16.mxu1 %v12876_v60  ;;  %1495 = vmatpush1.bf16.msra.mxu0 %v11185_v27  ;;  %v11263_v27 = vld [vmem:[#allocation7 + $0xe0] ss:$12 sps:$4 sm:$0xff]  }
 0x212   :  { %1453 = vmatprep.subr.bf16.mxu1 %v11190_v29  ;;  %1496 = vmatprep.subr.bf16.mxu0 %v11193_v30  ;;  %v11260_v29 = vld [vmem:[#allocation7 + $0xd8] ss:$12 sps:$4 sm:$0xff]   ;;  %v11264_v30 = vld [vmem:[#allocation7 + $0x20] ss:$12 sps:$4 sm:$0xff]  }
 0x213   :  { %1526 = vmatprep.mubr.bf16.mxu0 %v12686_v9 }
 0x214   :  { %1454 = vmatpush1.bf16.msra.mxu1 %v11188_v31  ;;  %v11267_v31 = vld [vmem:[#allocation7 + $0xc4] ss:$12 sps:$4 sm:$0xff]  }
 0x215   :  { %1497 = vmatpush1.bf16.msra.mxu0 %v11191_v35  ;;  %1455 = vmatprep.subr.bf16.mxu1 %v11196_v36  ;;  %v11268_v35 = vld [vmem:[#allocation7 + $0xc8] ss:$12 sps:$4 sm:$0xff]   ;;  %v11265_v36 = vld [vmem:[#allocation7 + $0xc0] ss:$12 sps:$4 sm:$0xff]  }
 0x216   :  { %1498 = vmatprep.subr.bf16.mxu0 %v11199_v38  ;;  %v11273_v38 = vld [vmem:[#allocation8 + $0xac] ss:$12 sps:$4 sm:$0xff]  }
 0x218   :  { %1456 = vmatpush1.bf16.msra.mxu1 %v11194_v37  ;;  %v11269_v37 = vld [vmem:[#allocation7 + $0x8] ss:$12 sps:$4 sm:$0xff]  }
 0x219   :  { %1499 = vmatpush1.bf16.msra.mxu0 %v11197_v39  ;;  %1457 = vmatprep.subr.bf16.mxu1 %v11202_v43  ;;  %v11270_v39 = vld [vmem:[#allocation7 + $0x230] ss:$12 sps:$4 sm:$0xff]   ;;  %v11271_v43 = vld [vmem:[#allocation8 + $0xa8] ss:$12 sps:$4 sm:$0xff]  }
 0x21a   :  { %1500 = vmatprep.subr.bf16.mxu0 %v11205_v44  ;;  %v11277_v44 = vld [vmem:[#allocation8 + $0x94] ss:$12 sps:$4 sm:$0xff]  }
 0x21c   :  { %1458 = vmatpush1.bf16.msra.mxu1 %v11200_v45  ;;  %v11274_v45 = vld [vmem:[#allocation7 + $0x218] ss:$12 sps:$4 sm:$0xff]  }
 0x21d   :  { %1501 = vmatpush1.bf16.msra.mxu0 %v11203_v46  ;;  %1459 = vmatprep.subr.bf16.mxu1 %v11208_v47  ;;  %v11275_v46 = vld [vmem:[#allocation8 + $0x90] ss:$12 sps:$4 sm:$0xff]  }
 0x21e   :  { %1502 = vmatprep.subr.bf16.mxu0 %v11211_v33  ;;  %v11281_v47 = vld [vmem:[#allocation8 + $0x7c] ss:$12 sps:$4 sm:$0xff]   ;;  %v11278_v33 = vld [vmem:[#allocation7 + $0x200] ss:$12 sps:$4 sm:$0xff]  }
 0x220   :  { %1460 = vmatpush1.bf16.msra.mxu1 %v11206_v48  ;;  %v11279_v48 = vld [vmem:[#allocation8 + $0x78] ss:$12 sps:$4 sm:$0xff]  }
 0x221   :  { %1503 = vmatpush1.bf16.msra.mxu0 %v11209_v49  ;;  %1461 = vmatprep.subr.bf16.mxu1 %v11214_v34  ;;  %v11285_v49 = vld [vmem:[#allocation8 + $0x64] ss:$12 sps:$4 sm:$0xff]   ;;  %v11282_v34 = vld [vmem:[#allocation7 + $0x1e8] ss:$12 sps:$4 sm:$0xff]  }
 0x222   :  { %1504 = vmatprep.subr.bf16.mxu0 %v11217_v50  ;;  %v11283_v50 = vld [vmem:[#allocation8 + $0x60] ss:$12 sps:$4 sm:$0xff]  }
 0x224   :  { %1462 = vmatpush1.bf16.msra.mxu1 %v11212_v51  ;;  %v11289_v51 = vld [vmem:[#allocation8 + $0x4c] ss:$12 sps:$4 sm:$0xff]  }
 0x225   :  { %1505 = vmatpush1.bf16.msra.mxu0 %v11215_v32  ;;  %1463 = vmatprep.subr.bf16.mxu1 %v11220_v52  ;;  %v11286_v32 = vld [vmem:[#allocation7 + $0x1d0] ss:$12 sps:$4 sm:$0xff]   ;;  %v11287_v52 = vld [vmem:[#allocation8 + $0x48] ss:$12 sps:$4 sm:$0xff]  }
 0x226   :  { %1506 = vmatprep.subr.bf16.mxu0 %v11223_v53  ;;  %v11293_v53 = vld [vmem:[#allocation8 + $0x34] ss:$12 sps:$4 sm:$0xff]  }
 0x228   :  { %1464 = vmatpush1.bf16.msra.mxu1 %v11218_v54  ;;  %v11290_v54 = vld [vmem:[#allocation7 + $0x1b8] ss:$12 sps:$4 sm:$0xff]  }
 0x229   :  { %1507 = vmatpush1.bf16.msra.mxu0 %v11221_v55  ;;  %1465 = vmatprep.subr.bf16.mxu1 %v11226_v56  ;;  %v11291_v55 = vld [vmem:[#allocation8 + $0x30] ss:$12 sps:$4 sm:$0xff]  }
 0x22a   :  { %1508 = vmatprep.subr.bf16.mxu0 %v11229_v57  ;;  %v11297_v56 = vld [vmem:[#allocation8 + $0x1c] ss:$12 sps:$4 sm:$0xff]   ;;  %v11294_v57 = vld [vmem:[#allocation7 + $0x1a0] ss:$12 sps:$4 sm:$0xff]  }
 0x22c   :  { %1466 = vmatpush1.bf16.msra.mxu1 %v11224_v58  ;;  %v11295_v58 = vld [vmem:[#allocation8 + $0x18] ss:$12 sps:$4 sm:$0xff]  }
 0x22d   :  { %1509 = vmatpush1.bf16.msra.mxu0 %v11227_v59  ;;  %1467 = vmatprep.subr.bf16.mxu1 %v11232_v41  ;;  %v11301_v59 = vld [vmem:[#allocation8 + $0x4] ss:$12 sps:$4 sm:$0xff]   ;;  %v11298_v41 = vld [vmem:[#allocation7 + $0x188] ss:$12 sps:$4 sm:$0xff]  }
 0x22e   :  { %10513 = vmatprep.subr.bf16.mxu0 %v11233_v40  ;;  %v11299_v40 = vld [vmem:[#allocation8] ss:$12 sps:$4 sm:$0xff]  }
 0x230   :  { %1468 = vmatpush2.bf16.msra.mxu1 %v11230_v62  ;;  %1527 = vmatmul.mubr.bf16.vlgmr.msra.gmra.mxu0 %v12878_v42  ;;  %v11304_v62 = vld [vmem:[#allocation8 + $0x22c] ss:$12 sps:$4 sm:$0xff]  }
 0x231   :  { %10514 = vmatpush3.bf16.msra.mxu0 %v11234_v63  ;;  %1569 = vmatprep.mubr.bf16.mxu0 %v12876_v60  ;;  %v11307_v63 = vld [vmem:[#allocation8 + $0x16c] ss:$12 sps:$4 sm:$0xff]  }
 0x232   :  { %1469 = vmatprep.subr.bf16.mxu1 %v11237_v0  ;;  %10515 = vmatprep.subr.bf16.mxu0 %v11238_v1  ;;  %v11302_v0 = vld [vmem:[#allocation8 + $0x228] ss:$12 sps:$4 sm:$0xff]  }
 0x233   :  { %v11305_v1 = vld [vmem:[#allocation8 + $0x168] ss:$12 sps:$4 sm:$0xff]  }
 0x234   :  { %1470 = vmatpush2.bf16.msra.mxu1 %v11235_v2  ;;  %v11310_v2 = vld [vmem:[#allocation8 + $0x214] ss:$12 sps:$4 sm:$0xff]  }
 0x235   :  { %10516 = vmatpush3.bf16.msra.mxu0 %v11239_v3  ;;  %1471 = vmatprep.subr.bf16.mxu1 %v11242_v4  ;;  %v11313_v3 = vld [vmem:[#allocation8 + $0x154] ss:$12 sps:$4 sm:$0xff]   ;;  %v11308_v4 = vld [vmem:[#allocation8 + $0x210] ss:$12 sps:$4 sm:$0xff]  }
 0x236   :  { %10517 = vmatprep.subr.bf16.mxu0 %v11243_v5  ;;  %v11311_v5 = vld [vmem:[#allocation8 + $0x150] ss:$12 sps:$4 sm:$0xff]  }
 0x238   :  { %1472 = vmatpush2.bf16.msra.mxu1 %v11240_v6  ;;  %v11316_v6 = vld [vmem:[#allocation8 + $0x1fc] ss:$12 sps:$4 sm:$0xff]  }
 0x239   :  { %10518 = vmatpush3.bf16.msra.mxu0 %v11244_v7  ;;  %1473 = vmatprep.subr.bf16.mxu1 %v11247_v8  ;;  %v11319_v7 = vld [vmem:[#allocation8 + $0x13c] ss:$12 sps:$4 sm:$0xff]   ;;  %v11314_v8 = vld [vmem:[#allocation8 + $0x1f8] ss:$12 sps:$4 sm:$0xff]  }
 0x23a   :  { %10519 = vmatprep.subr.bf16.mxu0 %v11248_v10  ;;  %v11317_v10 = vld [vmem:[#allocation8 + $0x138] ss:$12 sps:$4 sm:$0xff]  }
 0x23c   :  { %1474 = vmatpush2.bf16.msra.mxu1 %v11245_v11  ;;  %v11322_v11 = vld [vmem:[#allocation8 + $0x1e4] ss:$12 sps:$4 sm:$0xff]  }
 0x23d   :  { %10520 = vmatpush3.bf16.msra.mxu0 %v11249_v12  ;;  %1475 = vmatprep.subr.bf16.mxu1 %v11252_v13  ;;  %v11325_v12 = vld [vmem:[#allocation8 + $0x124] ss:$12 sps:$4 sm:$0xff]   ;;  %v11320_v13 = vld [vmem:[#allocation8 + $0x1e0] ss:$12 sps:$4 sm:$0xff]  }
 0x23e   :  { %10521 = vmatprep.subr.bf16.mxu0 %v11253_v14  ;;  %v11323_v14 = vld [vmem:[#allocation8 + $0x120] ss:$12 sps:$4 sm:$0xff]  }
 0x240   :  { %1476 = vmatpush2.bf16.msra.mxu1 %v11250_v15  ;;  %v11328_v15 = vld [vmem:[#allocation8 + $0x1cc] ss:$12 sps:$4 sm:$0xff]  }
 0x241   :  { %10522 = vmatpush3.bf16.msra.mxu0 %v11254_v17  ;;  %1477 = vmatprep.subr.bf16.mxu1 %v11257_v18  ;;  %v11331_v17 = vld [vmem:[#allocation8 + $0x10c] ss:$12 sps:$4 sm:$0xff]   ;;  %v11326_v18 = vld [vmem:[#allocation8 + $0x1c8] ss:$12 sps:$4 sm:$0xff]  }
 0x242   :  { %10523 = vmatprep.subr.bf16.mxu0 %v11258_v19  ;;  %v11329_v19 = vld [vmem:[#allocation8 + $0x108] ss:$12 sps:$4 sm:$0xff]  }
 0x244   :  { %1478 = vmatpush2.bf16.msra.mxu1 %v11255_v20  ;;  %v11334_v20 = vld [vmem:[#allocation8 + $0x1b4] ss:$12 sps:$4 sm:$0xff]  }
 0x245   :  { %10524 = vmatpush3.bf16.msra.mxu0 %v11259_v21  ;;  %1479 = vmatprep.subr.bf16.mxu1 %v11262_v22  ;;  %v11337_v21 = vld [vmem:[#allocation8 + $0xf4] ss:$12 sps:$4 sm:$0xff]   ;;  %v11332_v22 = vld [vmem:[#allocation8 + $0x1b0] ss:$12 sps:$4 sm:$0xff]  }
 0x246   :  { %10525 = vmatprep.subr.bf16.mxu0 %v11263_v27  ;;  %v11335_v27 = vld [vmem:[#allocation8 + $0xf0] ss:$12 sps:$4 sm:$0xff]  }
 0x248   :  { %1480 = vmatpush2.bf16.msra.mxu1 %v11260_v29  ;;  %v11340_v29 = vld [vmem:[#allocation8 + $0x19c] ss:$12 sps:$4 sm:$0xff]  }
 0x249   :  { %10526 = vmatpush3.bf16.msra.mxu0 %v11264_v30  ;;  %1481 = vmatprep.subr.bf16.mxu1 %v11267_v31  ;;  %v11343_v30 = vld [vmem:[#allocation8 + $0xdc] ss:$12 sps:$4 sm:$0xff]   ;;  %v11338_v31 = vld [vmem:[#allocation8 + $0x198] ss:$12 sps:$4 sm:$0xff]  }
 0x24a   :  { %10527 = vmatprep.subr.bf16.mxu0 %v11268_v35  ;;  %v11341_v35 = vld [vmem:[#allocation8 + $0xd8] ss:$12 sps:$4 sm:$0xff]  }
 0x24c   :  { %1482 = vmatpush2.bf16.msra.mxu1 %v11265_v36  ;;  %v11346_v36 = vld [vmem:[#allocation8 + $0x184] ss:$12 sps:$4 sm:$0xff]  }
 0x24d   :  { %10528 = vmatpush3.bf16.msra.mxu0 %v11269_v37  ;;  %10805 = vmatprep.subr.bf16.mxu1 %v12687_v16  ;;  %v11349_v37 = vld [vmem:[#allocation8 + $0xc4] ss:$12 sps:$4 sm:$0xff]  }
 0x24e   :  { %2099 = vmatprep.subr.bf16.mxu0 %v11273_v38  ;;  %v11344_v38 = vld [vmem:[#allocation8 + $0x180] ss:$12 sps:$4 sm:$0xff]  }
 0x24f   :  { %1484 = vmatmul.mubr.bf16.vlgmr.msra.gmra.mxu1 %v12880_v61 }
 0x250   :  { %1570 = vmatmul.mubr.bf16.vlgmr.msra.gmra.mxu0 %v12880_v61  ;;  %10806 = vmatpush3.bf16.msra.mxu1 %v11270_v39  ;;  %v11347_v39 = vld [vmem:[#allocation8 + $0xc0] ss:$12 sps:$4 sm:$0xff]  }
 0x251   :  { %2100 = vmatpush1.bf16.msra.mxu0 %v11271_v43  ;;  %2131 = vmatprep.mubr.bf16.mxu0 %v12876_v60  ;;  %v11350_v43 = vld [vmem:[#allocation8 + $0x170] ss:$12 sps:$4 sm:$0xff]  }
 0x252   :  { %10807 = vmatprep.subr.bf16.mxu1 %v12687_v16  ;;  %2101 = vmatprep.subr.bf16.mxu0 %v11277_v44  ;;  %v11351_v44 = vld [vmem:[#allocation8 + $0xb0] ss:$12 sps:$4 sm:$0xff]  }
 0x253   :  { %10821 = vmatprep.mubr.msk.bf16.mxu1 %vm12688_vm0, %v12687_v16 }
 0x254   :  { %10808 = vmatpush3.bf16.msra.mxu1 %v11274_v45  ;;  %v11352_v45 = vld [vmem:[#allocation8 + $0x230] ss:$12 sps:$4 sm:$0xff]  }
 0x255   :  { %2102 = vmatpush1.bf16.msra.mxu0 %v11275_v46  ;;  %10809 = vmatprep.subr.bf16.mxu1 %v12687_v16  ;;  %v11353_v46 = vld [vmem:[#allocation8 + $0x158] ss:$12 sps:$4 sm:$0xff]  }
 0x256   :  { %2103 = vmatprep.subr.bf16.mxu0 %v11281_v47  ;;  %v11354_v47 = vld [vmem:[#allocation8 + $0x98] ss:$12 sps:$4 sm:$0xff]  }
 0x258   :  { %10810 = vmatpush3.bf16.msra.mxu1 %v11278_v33  ;;  %v11355_v33 = vld [vmem:[#allocation8 + $0x218] ss:$12 sps:$4 sm:$0xff]  }
 0x259   :  { %2104 = vmatpush1.bf16.msra.mxu0 %v11279_v48  ;;  %10811 = vmatprep.subr.bf16.mxu1 %v12687_v16  ;;  %v11356_v48 = vld [vmem:[#allocation8 + $0x140] ss:$12 sps:$4 sm:$0xff]  }
 0x25a   :  { %2105 = vmatprep.subr.bf16.mxu0 %v11285_v49  ;;  %v11357_v49 = vld [vmem:[#allocation8 + $0x80] ss:$12 sps:$4 sm:$0xff]  }
 0x25c   :  { %10812 = vmatpush3.bf16.msra.mxu1 %v11282_v34  ;;  %v11358_v34 = vld [vmem:[#allocation8 + $0x200] ss:$12 sps:$4 sm:$0xff]  }
 0x25d   :  { %2106 = vmatpush1.bf16.msra.mxu0 %v11283_v50  ;;  %10813 = vmatprep.subr.bf16.mxu1 %v12687_v16  ;;  %v11359_v50 = vld [vmem:[#allocation8 + $0x128] ss:$12 sps:$4 sm:$0xff]  }
 0x25e   :  { %2107 = vmatprep.subr.bf16.mxu0 %v11289_v51  ;;  %v11360_v51 = vld [vmem:[#allocation8 + $0x68] ss:$12 sps:$4 sm:$0xff]  }
 0x260   :  { %10814 = vmatpush3.bf16.msra.mxu1 %v11286_v32  ;;  %v11362_v32 = vld [vmem:[#allocation8 + $0x110] ss:$12 sps:$4 sm:$0xff]  }
 0x261   :  { %2108 = vmatpush1.bf16.msra.mxu0 %v11287_v52  ;;  %10815 = vmatprep.subr.bf16.mxu1 %v12687_v16  ;;  %v11363_v52 = vld [vmem:[#allocation8 + $0x50] ss:$12 sps:$4 sm:$0xff]  }
 0x262   :  { %2109 = vmatprep.subr.bf16.mxu0 %v11293_v53  ;;  %v11364_v53 = vld [vmem:[#allocation8 + $0x1d0] ss:$12 sps:$4 sm:$0xff]  }
 0x264   :  { %10816 = vmatpush3.bf16.msra.mxu1 %v11290_v54  ;;  %v11365_v54 = vld [vmem:[#allocation8 + $0xf8] ss:$12 sps:$4 sm:$0xff]  }
 0x265   :  { %2110 = vmatpush1.bf16.msra.mxu0 %v11291_v55  ;;  %10817 = vmatprep.subr.bf16.mxu1 %v12687_v16  ;;  %v11366_v55 = vld [vmem:[#allocation8 + $0x38] ss:$12 sps:$4 sm:$0xff]  }
 0x266   :  { %2111 = vmatprep.subr.bf16.mxu0 %v11297_v56  ;;  %v11367_v56 = vld [vmem:[#allocation8 + $0x1b8] ss:$12 sps:$4 sm:$0xff]  }
 0x268   :  { %10818 = vmatpush3.bf16.msra.mxu1 %v11294_v57  ;;  %v11368_v57 = vld [vmem:[#allocation8 + $0xe0] ss:$12 sps:$4 sm:$0xff]  }
 0x269   :  { %2112 = vmatpush1.bf16.msra.mxu0 %v11295_v58  ;;  %10819 = vmatprep.subr.bf16.mxu1 %v12687_v16  ;;  %v11369_v58 = vld [vmem:[#allocation8 + $0x20] ss:$12 sps:$4 sm:$0xff]  }
 0x26a   :  { %2113 = vmatprep.subr.bf16.mxu0 %v11301_v59  ;;  %v11370_v59 = vld [vmem:[#allocation8 + $0x1a0] ss:$12 sps:$4 sm:$0xff]  }
 0x26c   :  { %10820 = vmatpush3.bf16.msra.mxu1 %v11298_v41  ;;  %v11371_v41 = vld [vmem:[#allocation8 + $0xc8] ss:$12 sps:$4 sm:$0xff]  }
 0x26d   :  { %2114 = vmatpush1.bf16.msra.mxu0 %v11299_v40  ;;  %2142 = vmatprep.subr.bf16.mxu1 %v11304_v62  ;;  %v11372_v40 = vld [vmem:[#allocation8 + $0x8] ss:$12 sps:$4 sm:$0xff]  }
 0x26e   :  { %2115 = vmatprep.subr.bf16.mxu0 %v11307_v63  ;;  %v11373_v62 = vld [vmem:[#allocation8 + $0x188] ss:$12 sps:$4 sm:$0xff]  }
 0x26f   :  { %10822 = vmatmul.mubr.bf16.vlgmr.msra.gmra.mxu1 %v12878_v42 }
 0x270   :  { %2143 = vmatpush1.bf16.msra.mxu1 %v11302_v0  ;;  %2174 = vmatprep.mubr.bf16.mxu1 %v12686_v9 }
 0x271   :  { %2116 = vmatpush2.bf16.msra.mxu0 %v11305_v1  ;;  %2144 = vmatprep.subr.bf16.mxu1 %v11310_v2 }
 0x272   :  { %2117 = vmatprep.subr.bf16.mxu0 %v11313_v3 }
 0x274   :  { %2145 = vmatpush1.bf16.msra.mxu1 %v11308_v4 }
 0x275   :  { %2118 = vmatpush2.bf16.msra.mxu0 %v11311_v5  ;;  %2146 = vmatprep.subr.bf16.mxu1 %v11316_v6 }
 0x276   :  { %2119 = vmatprep.subr.bf16.mxu0 %v11319_v7 }
 0x278   :  { %2147 = vmatpush1.bf16.msra.mxu1 %v11314_v8 }
 0x279   :  { %2120 = vmatpush2.bf16.msra.mxu0 %v11317_v10  ;;  %2148 = vmatprep.subr.bf16.mxu1 %v11322_v11 }
 0x27a   :  { %2121 = vmatprep.subr.bf16.mxu0 %v11325_v12 }
 0x27c   :  { %2149 = vmatpush1.bf16.msra.mxu1 %v11320_v13 }
 0x27d   :  { %2122 = vmatpush2.bf16.msra.mxu0 %v11323_v14  ;;  %2150 = vmatprep.subr.bf16.mxu1 %v11328_v15 }
 0x27e   :  { %2123 = vmatprep.subr.bf16.mxu0 %v11331_v17 }
 0x280   :  { %2151 = vmatpush1.bf16.msra.mxu1 %v11326_v18 }
 0x281   :  { %2124 = vmatpush2.bf16.msra.mxu0 %v11329_v19  ;;  %2152 = vmatprep.subr.bf16.mxu1 %v11334_v20 }
 0x282   :  { %2125 = vmatprep.subr.bf16.mxu0 %v11337_v21 }
 0x284   :  { %2153 = vmatpush1.bf16.msra.mxu1 %v11332_v22 }
 0x285   :  { %2126 = vmatpush2.bf16.msra.mxu0 %v11335_v27  ;;  %2154 = vmatprep.subr.bf16.mxu1 %v11340_v29 }
 0x286   :  { %2127 = vmatprep.subr.bf16.mxu0 %v11343_v30 }
 0x288   :  { %2155 = vmatpush1.bf16.msra.mxu1 %v11338_v31 }
 0x289   :  { %2128 = vmatpush2.bf16.msra.mxu0 %v11341_v35  ;;  %2156 = vmatprep.subr.bf16.mxu1 %v11346_v36 }
 0x28a   :  { %2129 = vmatprep.subr.bf16.mxu0 %v11349_v37 }
 0x28c   :  { %2157 = vmatpush1.bf16.msra.mxu1 %v11344_v38 }
 0x28d   :  { %2130 = vmatpush2.bf16.msra.mxu0 %v11347_v39  ;;  %10544 = vmatprep.subr.bf16.mxu1 %v11350_v43 }
 0x28e   :  { %10825 = vmatprep.subr.bf16.mxu0 %v12687_v16 }
 0x28f   :  { %2175 = vmatmul.mubr.bf16.vlgmr.msra.gmra.mxu1 %v12878_v42 }
 0x290   :  { %2132 = vmatmul.mubr.bf16.vlgmr.msra.gmra.mxu0 %v12880_v61  ;;  %10545 = vmatpush3.bf16.msra.mxu1 %v11351_v44 }
 0x291   :  { %2217 = vmatprep.mubr.bf16.mxu1 %v12876_v60  ;;  %10826 = vmatpush3.bf16.msra.mxu0 %v11352_v45  ;;  %v11361_v60 = vld [vmem:[#allocation8 + $0x1e8] ss:$12 sps:$4 sm:$0xff]  }
 0x292   :  { %10546 = vmatprep.subr.bf16.mxu1 %v11353_v46  ;;  %10827 = vmatprep.subr.bf16.mxu0 %v12687_v16 }
 0x293   :  { %10841 = vmatprep.mubr.msk.bf16.mxu0 %vm12688_vm0, %v12687_v16 }
 0x294   :  { %10547 = vmatpush3.bf16.msra.mxu1 %v11354_v47 }
 0x295   :  { %10828 = vmatpush3.bf16.msra.mxu0 %v11355_v33  ;;  %10548 = vmatprep.subr.bf16.mxu1 %v11356_v48 }
 0x296   :  { %10829 = vmatprep.subr.bf16.mxu0 %v12687_v16 }
 0x298   :  { %10549 = vmatpush3.bf16.msra.mxu1 %v11357_v49 }
 0x299   :  { %10830 = vmatpush3.bf16.msra.mxu0 %v11358_v34  ;;  %10550 = vmatprep.subr.bf16.mxu1 %v11359_v50 }
 0x29a   :  { %10831 = vmatprep.subr.bf16.mxu0 %v12687_v16 }
 0x29c   :  { %10551 = vmatpush3.bf16.msra.mxu1 %v11360_v51 }
 0x29d   :  { %10832 = vmatpush3.bf16.msra.mxu0 %v11361_v60  ;;  %10552 = vmatprep.subr.bf16.mxu1 %v11362_v32 }
 0x29e   :  { %10833 = vmatprep.subr.bf16.mxu0 %v12687_v16 }
 0x2a0   :  { %10553 = vmatpush3.bf16.msra.mxu1 %v11363_v52 }
 0x2a1   :  { %10834 = vmatpush3.bf16.msra.mxu0 %v11364_v53  ;;  %10554 = vmatprep.subr.bf16.mxu1 %v11365_v54 }
 0x2a2   :  { %10835 = vmatprep.subr.bf16.mxu0 %v12687_v16 }
 0x2a4   :  { %10555 = vmatpush3.bf16.msra.mxu1 %v11366_v55 }
 0x2a5   :  { %10836 = vmatpush3.bf16.msra.mxu0 %v11367_v56  ;;  %10556 = vmatprep.subr.bf16.mxu1 %v11368_v57 }
 0x2a6   :  { %10837 = vmatprep.subr.bf16.mxu0 %v12687_v16 }
 0x2a8   :  { %10557 = vmatpush3.bf16.msra.mxu1 %v11369_v58 }
 0x2a9   :  { %10838 = vmatpush3.bf16.msra.mxu0 %v11370_v59  ;;  %10558 = vmatprep.subr.bf16.mxu1 %v11371_v41 }
 0x2aa   :  { %10839 = vmatprep.subr.bf16.mxu0 %v12687_v16 }
 0x2ac   :  { %10559 = vmatpush3.bf16.msra.mxu1 %v11372_v40 }
 0x2ad   :  { %10840 = vmatpush3.bf16.msra.mxu0 %v11373_v62  ;;  %10845 = vmatprep.subr.bf16.mxu1 %v12687_v16 }
 0x2ae   :  { %10869 = vmatprep.subr.bf16.mxu0 %v12687_v16 }
 0x2af   :  { %2218 = vmatmul.mubr.bf16.vlgmr.msra.gmra.mxu1 %v12880_v61  ;;  %v880_v63 = vpop.f32.mrf.mxu1 }
 0x2b0   :  { %10842 = vmatmul.mubr.bf16.vlgmr.msra.gmra.mxu0 %v12878_v42  ;;  %v837_v0 = vpop.f32.mrf.mxu0  ;;  %10847 = vmatprep.mubr.msk.bf16.mxu1 %vm12688_vm0, %v12687_v16 }
 0x2b1   :  { %v882_v1 = vpop.f32.mrf.mxu1  ;;  %10871 = vmatprep.mubr.msk.bf16.mxu0 %vm12688_vm0, %v12687_v16  ;;  %v881_v46 = vadd.f32 %v880_v63, %v837_v0 }
 0x2b2   :  { %v839_v2 = vpop.f32.mrf.mxu0 }
 0x2b3   :  { %v12937_v3 = vadd.f32 %v882_v1, %v839_v2  ;;  %v884_v4 = vpop.f32.mrf.mxu1  ;;  %v12958_v33 = vpack.c.bf16 %v881_v46, %v881_v46 }
 0x2b4   :  { %v841_v5 = vpop.f32.mrf.mxu0 }
 0x2b5   :  { %v12939_v6 = vpop.f32.mrf.mxu1  ;;  %v885_v49 = vadd.f32 %v884_v4, %v841_v5 }
 0x2b6   :  { %v12941_v7 = vpop.f32.mrf.mxu0 }
 0x2b7   :  { %v12967_v34 = vpack.c.bf16 %v885_v49, %v885_v49 }
 0x2cf   :  { %v10498_v61 = vpop.f32.mrf.mxu1 }
 0x2d0   :  { %v964_v8 = vpop.f32.mrf.mxu0 }
 0x2d1   :  { %v10499_v42 = vpop.f32.mrf.mxu1 }
 0x2d2   :  { %v10500_v10 = vadd.f32 %v10499_v42, %v10498_v61  ;;  %v10803_v11 = vpop.f32.mrf.mxu0 }
 0x2d3   :  { %v10501_v12 = vpop.f32.mrf.mxu1 }
 0x2d4   :  { %v12943_v13 = vadd.f32 %v10500_v10, %v964_v8  ;;  %v967_v14 = vpop.f32.mrf.mxu0 }
 0x2d5   :  { %v10502_v15 = vpop.f32.mrf.mxu1 }
 0x2d6   :  { %v10503_v17 = vadd.f32 %v10502_v15, %v10501_v12  ;;  %v10804_v18 = vpop.f32.mrf.mxu0 }
 0x2d8   :  { %v12945_v19 = vadd.f32 %v10503_v17, %v967_v14 }
 0x2f0   :  { %v1528_v20 = vpop.f32.mrf.mxu0 }
 0x2f2   :  { %v1530_v21 = vpop.f32.mrf.mxu0 }
 0x2f4   :  { %v1532_v22 = vpop.f32.mrf.mxu0 }
 0x2f6   :  { %v12947_v27 = vpop.f32.mrf.mxu0 }
 0x30f   :  { %v1485_v29 = vpop.f32.mrf.mxu1 }
 0x310   :  { %v1529_v30 = vadd.f32 %v1528_v20, %v1485_v29  ;;  %v10529_v31 = vpop.f32.mrf.mxu0 }
 0x311   :  { %v1487_v35 = vpop.f32.mrf.mxu1 }
 0x312   :  { %v12949_v36 = vpack.c.bf16 %v1529_v30, %v1529_v30  ;;  %v12951_v37 = vadd.f32 %v1530_v21, %v1487_v35  ;;  %v10530_v38 = vpop.f32.mrf.mxu0  ;;  %v2270_v30 = vand.u32 127, %v277_v23 }
 0x313   :  { %v10531_v39 = vadd.f32 %v10530_v38, %v10529_v31  ;;  %v1489_v43 = vpop.f32.mrf.mxu1 }
 0x314   :  { %v2379_v44 = vsel %vm2374_vm1, %v12949_v36, 0  ;;  %v1533_v45 = vadd.f32 %v1532_v22, %v1489_v43  ;;  %v10532_v50 = vpop.f32.mrf.mxu0  ;;  %vm12998_vm3 = vcmp.le.s32.totalorder %v2270_v30, %v12853_v24 }
 0x315   :  { %10846 = vmatpush3.bf16.xpose.msra.mxu1 %v2379_v44  ;;  %v12973_v51 = vpop.f32.mrf.mxu1 }
 0x316   :  { %10851 = vmatprep.subr.bf16.mxu1 %v12687_v16  ;;  %v12956_v47 = vpack.c.bf16 %v1533_v45, %v1533_v45  ;;  %v10533_v60 = vpop.f32.mrf.mxu0 }
 0x317   :  { %v10534_v54 = vadd.f32 %v10533_v60, %v10532_v50 }
 0x318   :  { %v2425_v48 = vsel %vm2374_vm1, %v12956_v47, 0 }
 0x31c   :  { %10848 = vmatmul.mubr.msk.bf16.vlgmr.msra.gmra.mxu1 %vm2374_vm1, %v12958_v33 }
 0x31d   :  { %10852 = vmatpush3.bf16.xpose.msra.mxu1 %v2425_v48  ;;  %10853 = vmatprep.mubr.msk.bf16.mxu1 %vm12688_vm0, %v12687_v16 }
 0x31e   :  { %10857 = vmatprep.subr.bf16.mxu1 %v12687_v16 }
 0x324   :  { %10854 = vmatmul.mubr.msk.bf16.vlgmr.msra.gmra.mxu1 %vm2374_vm1, %v12967_v34 }
 0x325   :  { %10859 = vmatprep.mubr.msk.bf16.mxu1 %vm12688_vm0, %v12687_v16 }
 0x32f   :  { %v1612_v32 = vpop.f32.mrf.mxu1 }
 0x330   :  { %v12975_v52 = vadd.f32 %v10531_v39, %v1612_v32 }
 0x331   :  { %v10823_v53 = vpop.f32.mrf.mxu1 }
 0x333   :  { %v1615_v55 = vpop.f32.mrf.mxu1 }
 0x334   :  { %v12977_v56 = vadd.f32 %v10534_v54, %v1615_v55 }
 0x335   :  { %v10824_v57 = vpop.f32.mrf.mxu1 }
 0x34f   :  { %v2176_v58 = vpop.f32.mrf.mxu1 }
 0x350   :  { %v2133_v59 = vpop.f32.mrf.mxu0 }
 0x351   :  { %v2177_v41 = vadd.f32 %v2176_v58, %v2133_v59  ;;  %v2178_v40 = vpop.f32.mrf.mxu1 }
 0x352   :  { %v2135_v62 = vpop.f32.mrf.mxu0 }
 0x353   :  { %v12979_v63 = vpack.c.bf16 %v2177_v41, %v2177_v41  ;;  %v12981_v0 = vadd.f32 %v2178_v40, %v2135_v62  ;;  %v2180_v1 = vpop.f32.mrf.mxu1 }
 0x354   :  { %v2137_v2 = vpop.f32.mrf.mxu0 }
 0x355   :  { %v2501_v4 = vsel %vm2499_vm2, %v12979_v63, 0  ;;  %v12985_v5 = vadd.f32 %v2180_v1, %v2137_v2  ;;  %v12988_v61 = vpop.f32.mrf.mxu1 }
 0x356   :  { %10858 = vmatpush3.bf16.msra.mxu1 %v2501_v4  ;;  %v12990_v8 = vpop.f32.mrf.mxu0 }
 0x357   :  { %10863 = vmatprep.subr.bf16.mxu1 %v12687_v16 }
 0x36f   :  { %v10560_v42 = vpop.f32.mrf.mxu1 }
 0x370   :  { %v2260_v10 = vpop.f32.mrf.mxu0 }
 0x371   :  { %v10561_v11 = vpop.f32.mrf.mxu1 }
 0x372   :  { %v10562_v12 = vadd.f32 %v10561_v11, %v10560_v42  ;;  %v10843_v14 = vpop.f32.mrf.mxu0 }
 0x373   :  { %v10563_v15 = vpop.f32.mrf.mxu1 }
 0x374   :  { %v12992_v17 = vadd.f32 %v10562_v12, %v2260_v10  ;;  %v2263_v18 = vpop.f32.mrf.mxu0 }
 0x375   :  { %v10564_v20 = vpop.f32.mrf.mxu1 }
 0x376   :  { %v10565_v21 = vadd.f32 %v10564_v20, %v10563_v15  ;;  %v10844_v22 = vpop.f32.mrf.mxu0 }
 0x378   :  { %v12994_v29 = vadd.f32 %v10565_v21, %v2263_v18 }
 0x3dc   :  { %v2415_v35 = vpop.f32.mrf.mxu1 }
 0x3dd   :  { %v2469_v38 = vsel %vm12998_vm3, %v2415_v35, -inf }
 0x3de   :  { %v10849_v39 = vpop.f32.mrf.mxu1  ;;  %v2472_v43 = vsel %vm2471_vm4, %v2469_v38, -inf }
 0x3df   :  { %2473 = vmax.xlane.f32.xlu0 %v2472_v43 }
 0x3e0   :  { %v2418_v44 = vpop.f32.mrf.mxu1 }
 0x3e2   :  { %v10850_v45 = vpop.f32.mrf.mxu1 }
 0x3e4   :  { %v2461_v46 = vpop.f32.mrf.mxu1 }
 0x3e5   :  { %v2470_v23 = vsel %vm12998_vm3, %v2461_v46, -inf }
 0x3e6   :  { %v10855_v48 = vpop.f32.mrf.mxu1  ;;  %v2475_v49 = vsel %vm2471_vm4, %v2470_v23, -inf }
 0x3e7   :  { %2476 = vmax.xlane.f32.xlu1 %v2475_v49 }
 0x3e8   :  { %v2464_v50 = vpop.f32.mrf.mxu1 }
 0x3ea   :  { %v10856_v60 = vpop.f32.mrf.mxu1 }
 0x3f8   :  { %2646 = vrot.lane.b32.xlu1 %v12956_v47, %s12689_s12 }
 0x468   :  { %v2474_v32 = vpop.xlane.xlu0 %2473 }
 0x469   :  { %v2478_v53 = vsub.f32 %v2469_v38, %v2474_v32 }
 0x46b   :  { %v2480_v54 = vmul.f32 1.442695, %v2478_v53 }
 0x46d   :  { %12290 = vpow2.f32 %v2480_v54 }
 0x470   :  { %v2477_v55 = vpop.xlane.xlu1 %2476 }
 0x471   :  { %v2479_v57 = vsub.f32 %v2470_v23, %v2477_v55 }
 0x473   :  { %v2482_v58 = vmul.f32 1.442695, %v2479_v57 }
 0x474   :  { %v2647_v1 = vpop.permute.xlu1 %2646 }
 0x475   :  { %12292 = vpow2.f32 %v2482_v58  ;;  %v2652_v20 = vsel %vm2374_vm1, %v2647_v1, 0 }
 0x47a   :  { %v12291_v59 = vpop.eup %12290 }
 0x47b   :  { %v2484_v41 = vsel %vm2471_vm4, %v12291_v59, 0.0 }
 0x47c   :  { %2485 = vadd.xlane.f32.xlu0 %v2484_v41 }
 0x482   :  { %v12293_v40 = vpop.eup %12292 }
 0x483   :  { %v2487_v62 = vsel %vm2471_vm4, %v12293_v40, 0.0 }
 0x484   :  { %2488 = vadd.xlane.f32.xlu1 %v2487_v62 }
 0x492   :  { %2594 = vrot.lane.b32.xlu0 %v12949_v36, %s12689_s12 }
 0x495   :  { %2591 = vrot.lane.b32.xlu1 %v12958_v33, %s12689_s12  ;;  %v2373_v33 = vpack.c.bf16 %v12985_v5, %v12985_v5 }
 0x497   :  { %v2547_v12 = vsel %vm2499_vm2, %v2373_v33, 0 }
 0x499   :  { %2643 = vrot.lane.b32.xlu1 %v12967_v34, %s12689_s12 }
 0x505   :  { %v2486_v47 = vpop.xlane.xlu0 %2485 }
 0x506   :  { %12294 = vrcp.f32 %v2486_v47 }
 0x509   :  { %v2595_v2 = vpop.permute.xlu0 %2594 }
 0x50a   :  { %v2600_v4 = vsel %vm2374_vm1, %v2595_v2, 0 }
 0x50b   :  { %10870 = vmatpush3.bf16.xpose.msra.mxu0 %v2600_v4 }
 0x50c   :  { %10881 = vmatprep.subr.bf16.mxu0 %v12687_v16 }
 0x50d   :  { %v2489_v42 = vpop.xlane.xlu1 %2488 }
 0x50e   :  { %12296 = vrcp.f32 %v2489_v42 }
 0x511   :  { %v2592_v10 = vpop.permute.xlu1 %2591 }
 0x512   :  { %10872 = vmatmul.mubr.msk.bf16.vlgmr.msra.gmra.mxu0 %vm2374_vm1, %v2592_v10 }
 0x513   :  { %v12295_v36 = vpop.eup %12294  ;;  %10883 = vmatprep.mubr.msk.bf16.mxu0 %vm12688_vm0, %v12687_v16 }
 0x514   :  { %v2492_v34 = vmul.f32 %v12295_v36, %v12291_v59 }
 0x515   :  { %v2644_v5 = vpop.permute.xlu1 %2643 }
 0x516   :  { %v2494_v11 = vpack.c.bf16 %v2492_v34, %v2492_v34 }
 0x518   :  { %10860 = vmatmul.mubr.msk.bf16.vlgmr.msra.gmra.mxu1 %vm2471_vm4, %v2494_v11 }
 0x519   :  { %10864 = vmatpush3.bf16.msra.mxu1 %v2547_v12  ;;  %10865 = vmatprep.mubr.msk.bf16.mxu1 %vm12688_vm0, %v12687_v16 }
 0x51a   :  { %10875 = vmatprep.subr.bf16.mxu1 %v12687_v16 }
 0x51b   :  { %v12297_v14 = vpop.eup %12296 }
 0x51c   :  { %v2493_v15 = vmul.f32 %v12297_v14, %v12293_v40 }
 0x51e   :  { %v2495_v18 = vpack.c.bf16 %v2493_v15, %v2493_v15  ;;  %v11376_v15 = vld [vmem:[#allocation10 + $0xac] ss:$12 sps:$4 sm:$0xff]  }
 0x520   :  { %10866 = vmatmul.mubr.msk.bf16.vlgmr.msra.gmra.mxu1 %vm2471_vm4, %v2495_v18 }
 0x521   :  { %10876 = vmatpush3.bf16.xpose.msra.mxu1 %v2652_v20  ;;  %10877 = vmatprep.mubr.msk.bf16.mxu1 %vm12688_vm0, %v12687_v16 }
 0x522   :  { %10887 = vmatprep.subr.bf16.mxu1 %v12687_v16 }
 0x528   :  { %10878 = vmatmul.mubr.msk.bf16.vlgmr.msra.gmra.mxu1 %vm2374_vm1, %v2644_v5  ;;  %v11374_v5 = vld [vmem:[#allocation10 + $0xa8] ss:$12 sps:$4 sm:$0xff]  }
 0x529   :  { %10889 = vmatprep.mubr.msk.bf16.mxu1 %vm12688_vm0, %v12687_v16 }
 0x5d2   :  { %v2636_v21 = vpop.f32.mrf.mxu0 }
 0x5d3   :  { %v2694_v22 = vsel %vm12998_vm3, %v2636_v21, -inf }
 0x5d4   :  { %v10873_v30 = vpop.f32.mrf.mxu0  ;;  %v2696_v35 = vsel %vm2471_vm4, %v2694_v22, -inf }
 0x5d5   :  { %2697 = vmax.xlane.f32.xlu0 %v2696_v35  ;;  %v11377_v30 = vld [vmem:[#allocation10 + $0xb0] ss:$12 sps:$4 sm:$0xff]  }
 0x5d6   :  { %v2639_v38 = vpop.f32.mrf.mxu0 }
 0x5d7   :  { %v11380_v38 = vld [vmem:[#allocation10 + $0x94] ss:$12 sps:$4 sm:$0xff]  }
 0x5d8   :  { %v2537_v39 = vpop.f32.mrf.mxu1  ;;  %v10874_v43 = vpop.f32.mrf.mxu0 }
 0x5d9   :  { %v11381_v43 = vld [vmem:[#allocation10 + $0x98] ss:$12 sps:$4 sm:$0xff]  }
 0x5da   :  { %v10861_v44 = vpop.f32.mrf.mxu1 }
 0x5db   :  { %v11384_v44 = vld [vmem:[#allocation10 + $0x7c] ss:$12 sps:$4 sm:$0xff]  }
 0x5dc   :  { %v2540_v45 = vpop.f32.mrf.mxu1 }
 0x5dd   :  { %v11382_v45 = vld [vmem:[#allocation10 + $0x78] ss:$12 sps:$4 sm:$0xff]  }
 0x5de   :  { %v10862_v46 = vpop.f32.mrf.mxu1 }
 0x5df   :  { %v11385_v46 = vld [vmem:[#allocation10 + $0x80] ss:$12 sps:$4 sm:$0xff]  }
 0x5e0   :  { %v2583_v23 = vpop.f32.mrf.mxu1 }
 0x5e1   :  { %v13041_v48 = vpack.c.bf16 %v2583_v23, %v2537_v39  ;;  %v11378_v39 = vld [vmem:[#allocation10 + $0x90] ss:$12 sps:$4 sm:$0xff]   ;;  %v11386_v23 = vld [vmem:[#allocation10 + $0x60] ss:$12 sps:$4 sm:$0xff]  }
 0x5e2   :  { %v10867_v49 = vpop.f32.mrf.mxu1 }
 0x5e3   :  { %v11388_v49 = vld [vmem:[#allocation10 + $0x64] ss:$12 sps:$4 sm:$0xff]  }
 0x5e4   :  { %v2586_v50 = vpop.f32.mrf.mxu1 }
 0x5e5   :  { %v11389_v50 = vld [vmem:[#allocation10 + $0x68] ss:$12 sps:$4 sm:$0xff]  }
 0x5e6   :  { %v10868_v60 = vpop.f32.mrf.mxu1 }
 0x5e7   :  { %v11392_v60 = vld [vmem:[#allocation10 + $0x4c] ss:$12 sps:$4 sm:$0xff]  }
 0x5e8   :  { %v2688_v32 = vpop.f32.mrf.mxu1 }
 0x5e9   :  { %v2695_v53 = vsel %vm12998_vm3, %v2688_v32, -inf }
 0x5ea   :  { %v10879_v54 = vpop.f32.mrf.mxu1  ;;  %v2699_v55 = vsel %vm2471_vm4, %v2695_v53, -inf }
 0x5eb   :  { %2700 = vmax.xlane.f32.xlu1 %v2699_v55 }
 0x5ec   :  { %v2691_v57 = vpop.f32.mrf.mxu1 }
 0x5ee   :  { %v10880_v58 = vpop.f32.mrf.mxu1 }
 0x5ef   :  { %v11390_v58 = vld [vmem:[#allocation10 + $0x48] ss:$12 sps:$4 sm:$0xff]  }
 0x5fc   :  { %2770 = vrot.lane.b32.xlu1 %v2373_v33, %s12689_s12 }
 0x65e   :  { %v2698_v59 = vpop.xlane.xlu0 %2697 }
 0x65f   :  { %v2702_v41 = vsub.f32 %v2694_v22, %v2698_v59  ;;  %v11393_v59 = vld [vmem:[#allocation10 + $0x50] ss:$12 sps:$4 sm:$0xff]  }
 0x661   :  { %v2704_v40 = vmul.f32 1.442695, %v2702_v41 }
 0x663   :  { %12298 = vpow2.f32 %v2704_v40  ;;  %v11396_v40 = vld [vmem:[#allocation10 + $0x34] ss:$12 sps:$4 sm:$0xff]  }
 0x670   :  { %v12299_v62 = vpop.eup %12298 }
 0x671   :  { %v2708_v47 = vsel %vm2471_vm4, %v12299_v62, 0.0 }
 0x672   :  { %2709 = vadd.xlane.f32.xlu0 %v2708_v47 }
 0x674   :  { %v2701_v1 = vpop.xlane.xlu1 %2700 }
 0x675   :  { %v2703_v2 = vsub.f32 %v2695_v53, %v2701_v1  ;;  %v11394_v1 = vld [vmem:[#allocation10 + $0x30] ss:$12 sps:$4 sm:$0xff]  }
 0x677   :  { %v2706_v4 = vmul.f32 1.442695, %v2703_v2  ;;  %v11397_v2 = vld [vmem:[#allocation10 + $0x38] ss:$12 sps:$4 sm:$0xff]  }
 0x678   :  { %v2771_v42 = vpop.permute.xlu1 %2770 }
 0x679   :  { %12300 = vpow2.f32 %v2706_v4  ;;  %v2776_v10 = vsel %vm2499_vm2, %v2771_v42, 0  ;;  %v11400_v4 = vld [vmem:[#allocation10 + $0x1c] ss:$12 sps:$4 sm:$0xff]  }
 0x67a   :  { %10888 = vmatpush3.bf16.msra.mxu1 %v2776_v10  ;;  %v11398_v10 = vld [vmem:[#allocation10 + $0x18] ss:$12 sps:$4 sm:$0xff]  }
 0x67b   :  { %10893 = vmatprep.subr.bf16.mxu1 %v12687_v16 }
 0x686   :  { %v12301_v36 = vpop.eup %12300 }
 0x687   :  { %v2711_v33 = vsel %vm2471_vm4, %v12301_v36, 0.0 }
 0x688   :  { %2712 = vadd.xlane.f32.xlu0 %v2711_v33  ;;  %v11404_v33 = vld [vmem:[#allocation10 + $0x4] ss:$12 sps:$4 sm:$0xff]  }
 0x69e   :  { %2721 = vrot.lane.b32.xlu0 %v12979_v63, %s12689_s12 }
 0x6fb   :  { %v2710_v34 = vpop.xlane.xlu0 %2709 }
 0x6fc   :  { %12302 = vrcp.f32 %v2710_v34  ;;  %v1535_v34 = vadd.f32 %v12947_v27, %v12973_v51  ;;  %v2183_v51 = vadd.f32 %v12988_v61, %v12990_v8  ;;  %v13101_v61 = vpack.c.bf16 %v12981_v0, %v12981_v0 }
 0x6fe   :  { %v13103_v8 = vpack.c.bf16 %v2183_v51, %v2183_v51 }
 0x709   :  { %v12303_v11 = vpop.eup %12302 }
 0x70a   :  { %v2716_v14 = vmul.f32 %v12303_v11, %v12299_v62  ;;  %v11402_v11 = vld [vmem:[#allocation10] ss:$12 sps:$4 sm:$0xff]  }
 0x70c   :  { %v2718_v21 = vpack.c.bf16 %v2716_v14, %v2716_v14  ;;  %v13075_v14 = vpack.c.bf16 %v12951_v37, %v12951_v37 }
 0x70e   :  { %v3131_v27 = vsel %vm2374_vm1, %v13075_v14, 0 }
 0x711   :  { %v2713_v12 = vpop.xlane.xlu0 %2712 }
 0x712   :  { %12304 = vrcp.f32 %v2713_v12  ;;  %v11405_v12 = vld [vmem:[#allocation10 + $0x8] ss:$12 sps:$4 sm:$0xff]  }
 0x715   :  { %v2722_v18 = vpop.permute.xlu0 %2721 }
 0x716   :  { %v2727_v20 = vsel %vm2499_vm2, %v2722_v18, 0  ;;  %v887_v18 = vadd.f32 %v12939_v6, %v12941_v7  ;;  %v3249_v7 = vsel %vm2499_vm2, %v13101_v61, 0 }
 0x717   :  { %10882 = vmatpush3.bf16.msra.mxu0 %v2727_v20  ;;  %v3295_v20 = vsel %vm2499_vm2, %v13103_v8, 0 }
 0x718   :  { %2894 = vmatprep.subr.bf16.mxu0 %v11376_v15  ;;  %v13077_v15 = vpack.c.bf16 %v1535_v34, %v1535_v34  ;;  %v3122_v6 = vpack.c.bf16 %v887_v18, %v887_v18 }
 0x71a   :  { %10884 = vmatmul.mubr.msk.bf16.vlgmr.msra.gmra.mxu0 %vm2471_vm4, %v2718_v21  ;;  %v3177_v37 = vsel %vm2374_vm1, %v13077_v15, 0 }
 0x71b   :  { %2895 = vmatpush1.bf16.msra.mxu0 %v11374_v5  ;;  %2918 = vmatprep.mubr.bf16.mxu0 %v12686_v9 }
 0x71c   :  { %2896 = vmatprep.subr.bf16.mxu0 %v11380_v38 }
 0x71f   :  { %v12305_v63 = vpop.eup %12304  ;;  %2897 = vmatpush1.bf16.msra.mxu0 %v11378_v39 }
 0x720   :  { %v2717_v22 = vmul.f32 %v12305_v63, %v12301_v36  ;;  %2898 = vmatprep.subr.bf16.mxu0 %v11384_v44  ;;  %v11401_v36 = vld [vmem:[#allocation10 + $0x20] ss:$12 sps:$4 sm:$0xff]  }
 0x722   :  { %v2719_v35 = vpack.c.bf16 %v2717_v22, %v2717_v22 }
 0x723   :  { %2899 = vmatpush1.bf16.msra.mxu0 %v11382_v45 }
 0x724   :  { %10890 = vmatmul.mubr.msk.bf16.vlgmr.msra.gmra.mxu1 %vm2471_vm4, %v2719_v35  ;;  %2900 = vmatprep.subr.bf16.mxu0 %v11388_v49 }
 0x725   :  { %10894 = vmatpush3.bf16.msra.mxu1 %v11377_v30  ;;  %10901 = vmatprep.mubr.msk.bf16.mxu1 %vm12688_vm0, %v12687_v16 }
 0x726   :  { %10895 = vmatprep.subr.bf16.mxu1 %v12687_v16 }
 0x727   :  { %2901 = vmatpush1.bf16.msra.mxu0 %v11386_v23 }
 0x728   :  { %3045 = vmatprep.subr.bf16.mxu0 %v11392_v60 }
 0x729   :  { %10896 = vmatpush3.bf16.msra.mxu1 %v11381_v43 }
 0x72a   :  { %10897 = vmatprep.subr.bf16.mxu1 %v12687_v16 }
 0x72d   :  { %10898 = vmatpush3.bf16.msra.mxu1 %v11385_v46 }
 0x72e   :  { %10899 = vmatprep.subr.bf16.mxu1 %v12687_v16 }
 0x731   :  { %10900 = vmatpush3.bf16.msra.mxu1 %v11389_v50 }
 0x732   :  { %10905 = vmatprep.subr.bf16.mxu1 %v12687_v16 }
 0x7da   :  { %v2763_v32 = vpop.f32.mrf.mxu0 }
 0x7dc   :  { %v10885_v53 = vpop.f32.mrf.mxu0 }
 0x7de   :  { %v2766_v54 = vpop.f32.mrf.mxu0 }
 0x7e0   :  { %v10886_v55 = vpop.f32.mrf.mxu0 }
 0x7e4   :  { %v2812_v57 = vpop.f32.mrf.mxu1 }
 0x7e5   :  { %v2818_v41 = vpack.c.bf16 %v2812_v57, %v2763_v32 }
 0x7e6   :  { %v10891_v62 = vpop.f32.mrf.mxu1 }
 0x7e7   :  { %9818 = vmatmul.mubr.msk.bf16.vlgmr.msra.gmra.mxu0 %vm2374_vm1, %v2818_v41  ;;  %10902 = vmatmul.mubr.msk.bf16.vlgmr.msra.gmra.mxu1 %vm2374_vm1, %v2818_v41 }
 0x7e8   :  { %3046 = vmatpush1.bf16.msra.mxu0 %v11390_v58  ;;  %10906 = vmatpush3.bf16.msra.mxu1 %v11393_v59  ;;  %v2815_v47 = vpop.f32.mrf.mxu1 }
 0x7e9   :  { %3047 = vmatprep.subr.bf16.mxu0 %v11396_v40  ;;  %10907 = vmatprep.subr.bf16.mxu1 %v12687_v16 }
 0x7ea   :  { %v10892_v42 = vpop.f32.mrf.mxu1  ;;  %3069 = vmatprep.mubr.bf16.mxu0 %v12686_v9  ;;  %10913 = vmatprep.mubr.msk.bf16.mxu1 %vm12688_vm0, %v12687_v16 }
 0x7ec   :  { %3048 = vmatpush1.bf16.msra.mxu0 %v11394_v1  ;;  %10908 = vmatpush3.bf16.msra.mxu1 %v11397_v2 }
 0x7ed   :  { %3049 = vmatprep.subr.bf16.mxu0 %v11400_v4  ;;  %10909 = vmatprep.subr.bf16.mxu1 %v12687_v16 }
 0x7f0   :  { %3050 = vmatpush1.bf16.msra.mxu0 %v11398_v10  ;;  %10910 = vmatpush3.bf16.msra.mxu1 %v11401_v36 }
 0x7f1   :  { %3051 = vmatprep.subr.bf16.mxu0 %v11404_v33  ;;  %10911 = vmatprep.subr.bf16.mxu1 %v12687_v16 }
 0x7f4   :  { %3052 = vmatpush1.bf16.msra.mxu0 %v11402_v11  ;;  %10912 = vmatpush3.bf16.msra.mxu1 %v11405_v12 }
 0x7f5   :  { %10917 = vmatprep.subr.bf16.mxu0 %v12687_v16  ;;  %10923 = vmatprep.subr.bf16.mxu1 %v12687_v16 }
 0x7f7   :  { %9832 = vmatmul.mubr.msk.bf16.vlgmr.msra.gmra.mxu0 %vm2374_vm1, %v13041_v48  ;;  %10914 = vmatmul.mubr.msk.bf16.vlgmr.msra.gmra.mxu1 %vm2374_vm1, %v13041_v48  ;;  %v3121_v48 = vpack.c.bf16 %v12937_v3, %v12937_v3 }
 0x7f8   :  { %10918 = vmatpush3.bf16.xpose.msra.mxu0 %v3131_v27  ;;  %10924 = vmatpush3.bf16.xpose.msra.mxu1 %v3177_v37 }
 0x7f9   :  { %10919 = vmatprep.mubr.msk.bf16.mxu0 %vm12688_vm0, %v12687_v16  ;;  %10925 = vmatprep.mubr.msk.bf16.mxu1 %vm12688_vm0, %v12687_v16 }
 0x7fa   :  { %10929 = vmatprep.subr.bf16.mxu0 %v12687_v16  ;;  %10935 = vmatprep.subr.bf16.mxu1 %v12687_v16 }
 0x7ff   :  { %10920 = vmatmul.mubr.msk.bf16.vlgmr.msra.gmra.mxu0 %vm2374_vm1, %v3121_v48  ;;  %10926 = vmatmul.mubr.msk.bf16.vlgmr.msra.gmra.mxu1 %vm2374_vm1, %v3122_v6 }
 0x800   :  { %10930 = vmatpush3.bf16.msra.mxu0 %v3249_v7  ;;  %10936 = vmatpush3.bf16.msra.mxu1 %v3295_v20  ;;  %v11408_v20 = vld [vmem:[#allocation10 + $0x10c] ss:$12 sps:$4 sm:$0xff]  }
 0x801   :  { %10931 = vmatprep.mubr.msk.bf16.mxu0 %vm12688_vm0, %v12687_v16  ;;  %10937 = vmatprep.mubr.msk.bf16.mxu1 %vm12688_vm0, %v12687_v16 }
 0x802   :  { %10941 = vmatprep.subr.bf16.mxu1 %v12687_v16  ;;  %3413 = vmatprep.subr.bf16.mxu0 %v11408_v20 }
 0x8a7   :  { %v2963_v3 = vpop.f32.mrf.mxu1  ;;  %v2920_v0 = vpop.f32.mrf.mxu0 }
 0x8a9   :  { %v10903_v5 = vpop.f32.mrf.mxu1  ;;  %v2922_v63 = vpop.f32.mrf.mxu0 }
 0x8ab   :  { %v2966_v21 = vpop.f32.mrf.mxu1  ;;  %v2924_v30 = vpop.f32.mrf.mxu0 }
 0x8ad   :  { %v10904_v22 = vpop.f32.mrf.mxu1  ;;  %v2926_v35 = vpop.f32.mrf.mxu0 }
 0x8b7   :  { %v3071_v38 = vpop.f32.mrf.mxu0  ;;  %v3114_v39 = vpop.f32.mrf.mxu1 }
 0x8b8   :  { %v13118_v43 = vadd.f32 %v3071_v38, %v2920_v0  ;;  %v13120_v44 = vadd.f32 %v3114_v39, %v2963_v3  ;;  %v11412_v38 = vld [vmem:[#allocation10 + $0xf4] ss:$12 sps:$4 sm:$0xff]   ;;  %v11416_v39 = vld [vmem:[#allocation10 + $0xdc] ss:$12 sps:$4 sm:$0xff]  }
 0x8b9   :  { %v3073_v45 = vpop.f32.mrf.mxu0  ;;  %v10915_v46 = vpop.f32.mrf.mxu1 }
 0x8ba   :  { %v13122_v23 = vadd.f32 %v3073_v45, %v2922_v63  ;;  %v11414_v45 = vld [vmem:[#allocation10 + $0xd8] ss:$12 sps:$4 sm:$0xff]   ;;  %v11417_v46 = vld [vmem:[#allocation10 + $0xe0] ss:$12 sps:$4 sm:$0xff]  }
 0x8bb   :  { %v3075_v49 = vpop.f32.mrf.mxu0  ;;  %v3117_v50 = vpop.f32.mrf.mxu1 }
 0x8bc   :  { %v13124_v60 = vadd.f32 %v3075_v49, %v2924_v30  ;;  %v13126_v32 = vadd.f32 %v3117_v50, %v2966_v21  ;;  %v11406_v30 = vld [vmem:[#allocation10 + $0x108] ss:$12 sps:$4 sm:$0xff]   ;;  %v11420_v49 = vld [vmem:[#allocation10 + $0xc4] ss:$12 sps:$4 sm:$0xff]   ;;  %v11418_v50 = vld [vmem:[#allocation10 + $0xc0] ss:$12 sps:$4 sm:$0xff]  }
 0x8bd   :  { %v3077_v53 = vpop.f32.mrf.mxu0  ;;  %v10916_v54 = vpop.f32.mrf.mxu1 }
 0x8be   :  { %v13128_v55 = vadd.f32 %v3077_v53, %v2926_v35  ;;  %v11421_v53 = vld [vmem:[#allocation10 + $0xc8] ss:$12 sps:$4 sm:$0xff]  }
 0x8bf   :  { %v3167_v57 = vpop.f32.mrf.mxu0  ;;  %v3213_v58 = vpop.f32.mrf.mxu1 }
 0x8c0   :  { %v3219_v59 = vsel %vm12998_vm3, %v3167_v57, -inf  ;;  %v3220_v41 = vsel %vm12998_vm3, %v3213_v58, -inf }
 0x8c1   :  { %v10921_v40 = vpop.f32.mrf.mxu0  ;;  %v10927_v62 = vpop.f32.mrf.mxu1  ;;  %v3221_v47 = vsel %vm2471_vm4, %v3219_v59, -inf  ;;  %v3224_v1 = vsel %vm2471_vm4, %v3220_v41, -inf }
 0x8c2   :  { %3222 = vmax.xlane.f32.xlu1 %v3221_v47  ;;  %3225 = vmax.xlane.f32.xlu0 %v3224_v1 }
 0x8c3   :  { %v3170_v2 = vpop.f32.mrf.mxu0  ;;  %v3216_v4 = vpop.f32.mrf.mxu1 }
 0x8c5   :  { %v10922_v42 = vpop.f32.mrf.mxu0  ;;  %v10928_v10 = vpop.f32.mrf.mxu1 }
 0x94b   :  { %v3223_v36 = vpop.xlane.xlu1 %3222  ;;  %v3226_v33 = vpop.xlane.xlu0 %3225 }
 0x94c   :  { %v3227_v34 = vsub.f32 %v3219_v59, %v3223_v36  ;;  %v3228_v11 = vsub.f32 %v3220_v41, %v3226_v33 }
 0x94e   :  { %v3229_v12 = vmul.f32 1.442695, %v3227_v34  ;;  %v3231_v27 = vmul.f32 1.442695, %v3228_v11 }
 0x950   :  { %12306 = vpow2.f32 %v3229_v12 }
 0x951   :  { %12308 = vpow2.f32 %v3231_v27 }
 0x95d   :  { %v12307_v51 = vpop.eup %12306 }
 0x95e   :  { %v12309_v37 = vpop.eup %12308  ;;  %v3233_v18 = vsel %vm2471_vm4, %v12307_v51, 0.0 }
 0x95f   :  { %3234 = vadd.xlane.f32.xlu0 %v3233_v18  ;;  %v3236_v7 = vsel %vm2471_vm4, %v12309_v37, 0.0 }
 0x960   :  { %3237 = vadd.xlane.f32.xlu1 %v3236_v7 }
 0x971   :  { %3551 = vrot.lane.b32.xlu1 %v13077_v15, %s12689_s12  ;;  %v11409_v15 = vld [vmem:[#allocation10 + $0x110] ss:$12 sps:$4 sm:$0xff]  }
 0x975   :  { %3496 = vrot.lane.b32.xlu1 %v3121_v48, %s12689_s12  ;;  %3499 = vrot.lane.b32.xlu0 %v13075_v14, %s12689_s12  ;;  %v11410_v14 = vld [vmem:[#allocation10 + $0xf0] ss:$12 sps:$4 sm:$0xff]  }
 0x979   :  { %3548 = vrot.lane.b32.xlu1 %v3122_v6, %s12689_s12  ;;  %v11413_v6 = vld [vmem:[#allocation10 + $0xf8] ss:$12 sps:$4 sm:$0xff]  }
 0x9e8   :  { %v3235_v3 = vpop.xlane.xlu0 %3234 }
 0x9e9   :  { %v3238_v0 = vpop.xlane.xlu1 %3237  ;;  %12310 = vrcp.f32 %v3235_v3 }
 0x9ea   :  { %12312 = vrcp.f32 %v3238_v0 }
 0x9ec   :  { %v3500_v58 = vpop.permute.xlu0 %3499 }
 0x9ed   :  { %v3552_v54 = vpop.permute.xlu1 %3551  ;;  %v3505_v1 = vsel %vm2374_vm1, %v3500_v58, 0 }
 0x9ee   :  { %v3557_v47 = vsel %vm2374_vm1, %v3552_v54, 0 }
 0x9f1   :  { %v3497_v4 = vpop.permute.xlu1 %3496 }
 0x9f5   :  { %v3549_v33 = vpop.permute.xlu1 %3548 }
 0x9f6   :  { %v12311_v5 = vpop.eup %12310 }
 0x9f7   :  { %v12313_v21 = vpop.eup %12312  ;;  %v3241_v63 = vmul.f32 %v12311_v5, %v12307_v51 }
 0x9f8   :  { %v3242_v22 = vmul.f32 %v12313_v21, %v12309_v37 }
 0x9f9   :  { %v3243_v35 = vpack.c.bf16 %v3241_v63, %v3241_v63 }
 0x9fa   :  { %v3244_v48 = vpack.c.bf16 %v3242_v22, %v3242_v22 }
 0x9fb   :  { %10932 = vmatmul.mubr.msk.bf16.vlgmr.msra.gmra.mxu0 %vm2471_vm4, %v3243_v35 }
 0x9fc   :  { %10938 = vmatmul.mubr.msk.bf16.vlgmr.msra.gmra.mxu1 %vm2471_vm4, %v3244_v48  ;;  %3414 = vmatpush1.bf16.msra.mxu0 %v11406_v30 }
 0x9fd   :  { %10942 = vmatpush3.bf16.msra.mxu1 %v11409_v15  ;;  %3415 = vmatprep.subr.bf16.mxu0 %v11412_v38 }
 0x9fe   :  { %10943 = vmatprep.subr.bf16.mxu1 %v12687_v16  ;;  %3437 = vmatprep.mubr.bf16.mxu0 %v12686_v9 }
 0x9ff   :  { %10949 = vmatprep.mubr.msk.bf16.mxu1 %vm12688_vm0, %v12687_v16 }
 0xa00   :  { %3416 = vmatpush1.bf16.msra.mxu0 %v11410_v14 }
 0xa01   :  { %10944 = vmatpush3.bf16.msra.mxu1 %v11413_v6  ;;  %3417 = vmatprep.subr.bf16.mxu0 %v11416_v39 }
 0xa02   :  { %10945 = vmatprep.subr.bf16.mxu1 %v12687_v16 }
 0xa04   :  { %3418 = vmatpush1.bf16.msra.mxu0 %v11414_v45 }
 0xa05   :  { %10946 = vmatpush3.bf16.msra.mxu1 %v11417_v46  ;;  %3419 = vmatprep.subr.bf16.mxu0 %v11420_v49 }
 0xa06   :  { %10947 = vmatprep.subr.bf16.mxu1 %v12687_v16 }
 0xa08   :  { %3420 = vmatpush1.bf16.msra.mxu0 %v11418_v50 }
 0xa09   :  { %10948 = vmatpush3.bf16.msra.mxu1 %v11421_v53  ;;  %10953 = vmatprep.subr.bf16.mxu0 %v12687_v16 }
 0xa0a   :  { %10959 = vmatprep.subr.bf16.mxu1 %v12687_v16 }
 0xabb   :  { %v3285_v57 = vpop.f32.mrf.mxu0 }
 0xabc   :  { %v3331_v59 = vpop.f32.mrf.mxu1 }
 0xabd   :  { %v3337_v41 = vpack.c.bf16 %v3331_v59, %v3285_v57  ;;  %v10933_v40 = vpop.f32.mrf.mxu0 }
 0xabe   :  { %v10939_v62 = vpop.f32.mrf.mxu1  ;;  %v11424_v40 = vld [vmem:[#allocation10 + $0x16c] ss:$12 sps:$4 sm:$0xff]  }
 0xabf   :  { %9850 = vmatmul.mubr.msk.bf16.vlgmr.msra.gmra.mxu0 %vm2374_vm1, %v3337_v41  ;;  %10950 = vmatmul.mubr.msk.bf16.vlgmr.msra.gmra.mxu1 %vm2374_vm1, %v3337_v41  ;;  %v3288_v2 = vpop.f32.mrf.mxu0 }
 0xac0   :  { %10954 = vmatpush3.bf16.xpose.msra.mxu0 %v3505_v1  ;;  %10960 = vmatpush3.bf16.xpose.msra.mxu1 %v3557_v47  ;;  %v3334_v42 = vpop.f32.mrf.mxu1 }
 0xac1   :  { %v10934_v10 = vpop.f32.mrf.mxu0  ;;  %10955 = vmatprep.mubr.msk.bf16.mxu0 %vm12688_vm0, %v12687_v16  ;;  %10961 = vmatprep.mubr.msk.bf16.mxu1 %vm12688_vm0, %v12687_v16 }
 0xac2   :  { %v10940_v36 = vpop.f32.mrf.mxu1  ;;  %10971 = vmatprep.subr.bf16.mxu1 %v12687_v16  ;;  %10965 = vmatprep.subr.bf16.mxu0 %v12687_v16  ;;  %v11428_v10 = vld [vmem:[#allocation10 + $0x154] ss:$12 sps:$4 sm:$0xff]  }
 0xac7   :  { %10956 = vmatmul.mubr.msk.bf16.vlgmr.msra.gmra.mxu0 %vm2374_vm1, %v3497_v4  ;;  %10962 = vmatmul.mubr.msk.bf16.vlgmr.msra.gmra.mxu1 %vm2374_vm1, %v3549_v33  ;;  %v11422_v4 = vld [vmem:[#allocation10 + $0x168] ss:$12 sps:$4 sm:$0xff]  }
 0xac8   :  { %10967 = vmatprep.mubr.msk.bf16.mxu0 %vm12688_vm0, %v12687_v16  ;;  %10973 = vmatprep.mubr.msk.bf16.mxu1 %vm12688_vm0, %v12687_v16 }
 0xb7f   :  { %v3439_v34 = vpop.f32.mrf.mxu0  ;;  %v3482_v11 = vpop.f32.mrf.mxu1 }
 0xb80   :  { %v13171_v12 = vadd.f32 %v3439_v34, %v13118_v43  ;;  %v13174_v27 = vadd.f32 %v3482_v11, %v13120_v44  ;;  %v11426_v34 = vld [vmem:[#allocation10 + $0x150] ss:$12 sps:$4 sm:$0xff]  }
 0xb81   :  { %v3441_v51 = vpop.f32.mrf.mxu0  ;;  %v10951_v37 = vpop.f32.mrf.mxu1 }
 0xb82   :  { %v13177_v18 = vadd.f32 %v3441_v51, %v13122_v23  ;;  %v11432_v51 = vld [vmem:[#allocation10 + $0x13c] ss:$12 sps:$4 sm:$0xff]   ;;  %v11429_v37 = vld [vmem:[#allocation10 + $0x158] ss:$12 sps:$4 sm:$0xff]  }
 0xb83   :  { %v3443_v7 = vpop.f32.mrf.mxu0  ;;  %v3485_v20 = vpop.f32.mrf.mxu1 }
 0xb84   :  { %v13180_v3 = vadd.f32 %v3443_v7, %v13124_v60  ;;  %v13183_v0 = vadd.f32 %v3485_v20, %v13126_v32  ;;  %v11430_v7 = vld [vmem:[#allocation10 + $0x138] ss:$12 sps:$4 sm:$0xff]   ;;  %v11433_v20 = vld [vmem:[#allocation10 + $0x140] ss:$12 sps:$4 sm:$0xff]  }
 0xb85   :  { %v3445_v5 = vpop.f32.mrf.mxu0  ;;  %v10952_v21 = vpop.f32.mrf.mxu1 }
 0xb86   :  { %v13186_v43 = vadd.f32 %v3445_v5, %v13128_v55  ;;  %v11436_v5 = vld [vmem:[#allocation10 + $0x124] ss:$12 sps:$4 sm:$0xff]   ;;  %v11434_v21 = vld [vmem:[#allocation10 + $0x120] ss:$12 sps:$4 sm:$0xff]  }
 0xb87   :  { %v3541_v44 = vpop.f32.mrf.mxu0  ;;  %v3593_v63 = vpop.f32.mrf.mxu1 }
 0xb88   :  { %v3599_v22 = vsel %vm12998_vm3, %v3541_v44, -inf  ;;  %v3600_v23 = vsel %vm12998_vm3, %v3593_v63, -inf  ;;  %v11437_v44 = vld [vmem:[#allocation10 + $0x128] ss:$12 sps:$4 sm:$0xff]  }
 0xb89   :  { %v10957_v30 = vpop.f32.mrf.mxu0  ;;  %v10963_v35 = vpop.f32.mrf.mxu1  ;;  %v3601_v60 = vsel %vm2471_vm4, %v3599_v22, -inf  ;;  %v3604_v32 = vsel %vm2471_vm4, %v3600_v23, -inf }
 0xb8a   :  { %3602 = vmax.xlane.f32.xlu0 %v3601_v60  ;;  %3605 = vmax.xlane.f32.xlu1 %v3604_v32  ;;  %v13219_v30 = vpack.c.bf16 %v12977_v56, %v12977_v56 }
 0xb8b   :  { %v3544_v15 = vpop.f32.mrf.mxu0  ;;  %v3596_v38 = vpop.f32.mrf.mxu1 }
 0xb8d   :  { %v10958_v55 = vpop.f32.mrf.mxu0  ;;  %v10964_v48 = vpop.f32.mrf.mxu1 }
 0xb8e   :  { %v3937_v48 = vsel %vm2374_vm1, %v13219_v30, 0 }
 0xb9b   :  { %3675 = vrot.lane.b32.xlu1 %v13103_v8, %s12689_s12 }
 0xc13   :  { %v3603_v14 = vpop.xlane.xlu0 %3602  ;;  %v3606_v6 = vpop.xlane.xlu1 %3605 }
 0xc14   :  { %v3607_v39 = vsub.f32 %v3599_v22, %v3603_v14  ;;  %v3608_v45 = vsub.f32 %v3600_v23, %v3606_v6  ;;  %v13215_v23 = vpack.c.bf16 %v12975_v52, %v12975_v52  ;;  %v13235_v14 = vpack.c.bf16 %v12992_v17, %v12992_v17 }
 0xc15   :  { %v13239_v6 = vpack.c.bf16 %v12994_v29, %v12994_v29 }
 0xc16   :  { %v3609_v46 = vmul.f32 1.442695, %v3607_v39  ;;  %v3611_v49 = vmul.f32 1.442695, %v3608_v45  ;;  %v3891_v55 = vsel %vm2374_vm1, %v13215_v23, 0  ;;  %v3881_v39 = vpack.c.bf16 %v12943_v13, %v12943_v13 }
 0xc17   :  { %v3676_v50 = vpop.permute.xlu1 %3675  ;;  %v3882_v45 = vpack.c.bf16 %v12945_v19, %v12945_v19  ;;  %v4055_v17 = vsel %vm2499_vm2, %v13239_v6, 0 }
 0xc18   :  { %12314 = vpow2.f32 %v3609_v46  ;;  %v3681_v53 = vsel %vm2499_vm2, %v3676_v50, 0  ;;  %v4009_v46 = vsel %vm2499_vm2, %v13235_v14, 0 }
 0xc19   :  { %10972 = vmatpush3.bf16.msra.mxu1 %v3681_v53  ;;  %12316 = vpow2.f32 %v3611_v49 }
 0xc1a   :  { %10977 = vmatprep.subr.bf16.mxu1 %v12687_v16 }
 0xc25   :  { %v12315_v54 = vpop.eup %12314 }
 0xc26   :  { %v3613_v57 = vsel %vm2471_vm4, %v12315_v54, 0.0  ;;  %v12317_v58 = vpop.eup %12316 }
 0xc27   :  { %3614 = vadd.xlane.f32.xlu0 %v3613_v57  ;;  %v3616_v8 = vsel %vm2471_vm4, %v12317_v58, 0.0 }
 0xc2b   :  { %3617 = vadd.xlane.f32.xlu0 %v3616_v8 }
 0xc41   :  { %3626 = vrot.lane.b32.xlu0 %v13101_v61, %s12689_s12  ;;  %v11425_v61 = vld [vmem:[#allocation10 + $0x170] ss:$12 sps:$4 sm:$0xff]  }
 0xcb0   :  { %v3615_v59 = vpop.xlane.xlu0 %3614 }
 0xcb1   :  { %12318 = vrcp.f32 %v3615_v59 }
 0xcb4   :  { %v3618_v41 = vpop.xlane.xlu0 %3617 }
 0xcb5   :  { %12320 = vrcp.f32 %v3618_v41 }
 0xcb8   :  { %v3627_v62 = vpop.permute.xlu0 %3626 }
 0xcb9   :  { %v3632_v47 = vsel %vm2499_vm2, %v3627_v62, 0 }
 0xcba   :  { %10966 = vmatpush3.bf16.msra.mxu0 %v3632_v47 }
 0xcbb   :  { %3799 = vmatprep.subr.bf16.mxu0 %v11424_v40 }
 0xcbe   :  { %v12319_v1 = vpop.eup %12318 }
 0xcbf   :  { %v3621_v2 = vmul.f32 %v12319_v1, %v12315_v54 }
 0xcc1   :  { %v3623_v42 = vpack.c.bf16 %v3621_v2, %v3621_v2 }
 0xcc2   :  { %v12321_v36 = vpop.eup %12320 }
 0xcc3   :  { %10968 = vmatmul.mubr.msk.bf16.vlgmr.msra.gmra.mxu0 %vm2471_vm4, %v3623_v42  ;;  %v3622_v33 = vmul.f32 %v12321_v36, %v12317_v58 }
 0xcc4   :  { %3800 = vmatpush1.bf16.msra.mxu0 %v11422_v4  ;;  %3823 = vmatprep.mubr.bf16.mxu0 %v12686_v9 }
 0xcc5   :  { %v3624_v11 = vpack.c.bf16 %v3622_v33, %v3622_v33  ;;  %3801 = vmatprep.subr.bf16.mxu0 %v11428_v10 }
 0xcc7   :  { %10974 = vmatmul.mubr.msk.bf16.vlgmr.msra.gmra.mxu1 %vm2471_vm4, %v3624_v11 }
 0xcc8   :  { %10978 = vmatpush3.bf16.msra.mxu1 %v11425_v61  ;;  %3802 = vmatpush1.bf16.msra.mxu0 %v11426_v34 }
 0xcc9   :  { %10979 = vmatprep.subr.bf16.mxu1 %v12687_v16  ;;  %3803 = vmatprep.subr.bf16.mxu0 %v11432_v51 }
 0xcca   :  { %10985 = vmatprep.mubr.msk.bf16.mxu1 %vm12688_vm0, %v12687_v16 }
 0xccc   :  { %10980 = vmatpush3.bf16.msra.mxu1 %v11429_v37  ;;  %3804 = vmatpush1.bf16.msra.mxu0 %v11430_v7 }
 0xccd   :  { %10981 = vmatprep.subr.bf16.mxu1 %v12687_v16  ;;  %3805 = vmatprep.subr.bf16.mxu0 %v11436_v5 }
 0xcd0   :  { %10982 = vmatpush3.bf16.msra.mxu1 %v11433_v20  ;;  %3806 = vmatpush1.bf16.msra.mxu0 %v11434_v21  ;;  %v11440_v21 = vld [vmem:[#allocation10 + $0x1cc] ss:$12 sps:$4 sm:$0xff]  }
 0xcd1   :  { %10983 = vmatprep.subr.bf16.mxu1 %v12687_v16  ;;  %10989 = vmatprep.subr.bf16.mxu0 %v12687_v16 }
 0xcd4   :  { %10984 = vmatpush3.bf16.msra.mxu1 %v11437_v44 }
 0xcd5   :  { %10995 = vmatprep.subr.bf16.mxu1 %v12687_v16 }
 0xd83   :  { %v3668_v63 = vpop.f32.mrf.mxu0 }
 0xd85   :  { %v10969_v22 = vpop.f32.mrf.mxu0 }
 0xd87   :  { %v3671_v35 = vpop.f32.mrf.mxu0  ;;  %v3717_v60 = vpop.f32.mrf.mxu1 }
 0xd88   :  { %v3723_v32 = vpack.c.bf16 %v3717_v60, %v3668_v63 }
 0xd89   :  { %v10970_v15 = vpop.f32.mrf.mxu0  ;;  %v10975_v38 = vpop.f32.mrf.mxu1 }
 0xd8a   :  { %9868 = vmatmul.mubr.msk.bf16.vlgmr.msra.gmra.mxu0 %vm2374_vm1, %v3723_v32  ;;  %10986 = vmatmul.mubr.msk.bf16.vlgmr.msra.gmra.mxu1 %vm2374_vm1, %v3723_v32  ;;  %v11438_v15 = vld [vmem:[#allocation10 + $0x1c8] ss:$12 sps:$4 sm:$0xff]  }
 0xd8b   :  { %10990 = vmatpush3.bf16.xpose.msra.mxu0 %v3891_v55  ;;  %10996 = vmatpush3.bf16.xpose.msra.mxu1 %v3937_v48  ;;  %v3720_v52 = vpop.f32.mrf.mxu1  ;;  %v11444_v55 = vld [vmem:[#allocation10 + $0x1b4] ss:$12 sps:$4 sm:$0xff]  }
 0xd8c   :  { %10991 = vmatprep.mubr.msk.bf16.mxu0 %vm12688_vm0, %v12687_v16  ;;  %10997 = vmatprep.mubr.msk.bf16.mxu1 %vm12688_vm0, %v12687_v16  ;;  %v11445_v52 = vld [vmem:[#allocation10 + $0x1b8] ss:$12 sps:$4 sm:$0xff]  }
 0xd8d   :  { %v10976_v56 = vpop.f32.mrf.mxu1  ;;  %11001 = vmatprep.subr.bf16.mxu0 %v12687_v16  ;;  %11007 = vmatprep.subr.bf16.mxu1 %v12687_v16 }
 0xd8e   :  { %v11448_v56 = vld [vmem:[#allocation10 + $0x19c] ss:$12 sps:$4 sm:$0xff]  }
 0xd92   :  { %10992 = vmatmul.mubr.msk.bf16.vlgmr.msra.gmra.mxu0 %vm2374_vm1, %v3881_v39  ;;  %10998 = vmatmul.mubr.msk.bf16.vlgmr.msra.gmra.mxu1 %vm2374_vm1, %v3882_v45 }
 0xd93   :  { %11002 = vmatpush3.bf16.msra.mxu0 %v4009_v46  ;;  %11008 = vmatpush3.bf16.msra.mxu1 %v4055_v17  ;;  %v11452_v46 = vld [vmem:[#allocation10 + $0x184] ss:$12 sps:$4 sm:$0xff]   ;;  %v11450_v17 = vld [vmem:[#allocation10 + $0x180] ss:$12 sps:$4 sm:$0xff]  }
 0xd94   :  { %11003 = vmatprep.mubr.msk.bf16.mxu0 %vm12688_vm0, %v12687_v16  ;;  %11009 = vmatprep.mubr.msk.bf16.mxu1 %vm12688_vm0, %v12687_v16 }
 0xd95   :  { %11013 = vmatprep.subr.bf16.mxu1 %v12687_v16  ;;  %4173 = vmatprep.subr.bf16.mxu0 %v11440_v21 }
 0xe4a   :  { %v3825_v13 = vpop.f32.mrf.mxu0  ;;  %v3868_v19 = vpop.f32.mrf.mxu1 }
 0xe4b   :  { %v13257_v29 = vadd.f32 %v3825_v13, %v13171_v12  ;;  %v13260_v49 = vadd.f32 %v3868_v19, %v13174_v27  ;;  %v11453_v13 = vld [vmem:[#allocation10 + $0x188] ss:$12 sps:$4 sm:$0xff]  }
 0xe4c   :  { %v3827_v50 = vpop.f32.mrf.mxu0  ;;  %v10987_v53 = vpop.f32.mrf.mxu1 }
 0xe4d   :  { %v13263_v54 = vadd.f32 %v3827_v50, %v13177_v18 }
 0xe4e   :  { %v3829_v57 = vpop.f32.mrf.mxu0  ;;  %v3871_v58 = vpop.f32.mrf.mxu1 }
 0xe4f   :  { %v13266_v8 = vadd.f32 %v3829_v57, %v13180_v3  ;;  %v13269_v59 = vadd.f32 %v3871_v58, %v13183_v0 }
 0xe50   :  { %v3831_v41 = vpop.f32.mrf.mxu0  ;;  %v10988_v40 = vpop.f32.mrf.mxu1 }
 0xe51   :  { %v13272_v12 = vadd.f32 %v3831_v41, %v13186_v43 }
 0xe52   :  { %v3927_v27 = vpop.f32.mrf.mxu0  ;;  %v3973_v62 = vpop.f32.mrf.mxu1 }
 0xe53   :  { %v3979_v47 = vsel %vm12998_vm3, %v3927_v27, -inf  ;;  %v3980_v18 = vsel %vm12998_vm3, %v3973_v62, -inf }
 0xe54   :  { %v10993_v1 = vpop.f32.mrf.mxu0  ;;  %v10999_v2 = vpop.f32.mrf.mxu1  ;;  %v3981_v3 = vsel %vm2471_vm4, %v3979_v47, -inf  ;;  %v3984_v0 = vsel %vm2471_vm4, %v3980_v18, -inf }
 0xe55   :  { %3982 = vmax.xlane.f32.xlu1 %v3981_v3  ;;  %3985 = vmax.xlane.f32.xlu0 %v3984_v0 }
 0xe56   :  { %v3930_v4 = vpop.f32.mrf.mxu0  ;;  %v3976_v42 = vpop.f32.mrf.mxu1 }
 0xe58   :  { %v10994_v43 = vpop.f32.mrf.mxu0  ;;  %v11000_v10 = vpop.f32.mrf.mxu1 }
 0xede   :  { %v3983_v36 = vpop.xlane.xlu1 %3982  ;;  %v3986_v33 = vpop.xlane.xlu0 %3985 }
 0xedf   :  { %v3987_v61 = vsub.f32 %v3979_v47, %v3983_v36  ;;  %v3988_v34 = vsub.f32 %v3980_v18, %v3986_v33 }
 0xee1   :  { %v3989_v11 = vmul.f32 1.442695, %v3987_v61  ;;  %v3991_v51 = vmul.f32 1.442695, %v3988_v34 }
 0xee3   :  { %12322 = vpow2.f32 %v3989_v11 }
 0xee4   :  { %12324 = vpow2.f32 %v3991_v51 }
 0xef0   :  { %v12323_v37 = vpop.eup %12322 }
 0xef1   :  { %v12325_v7 = vpop.eup %12324  ;;  %v3993_v20 = vsel %vm2471_vm4, %v12323_v37, 0.0 }
 0xef2   :  { %3994 = vadd.xlane.f32.xlu0 %v3993_v20  ;;  %v3996_v5 = vsel %vm2471_vm4, %v12325_v7, 0.0 }
 0xef3   :  { %3997 = vadd.xlane.f32.xlu1 %v3996_v5 }
 0xf04   :  { %4311 = vrot.lane.b32.xlu1 %v13219_v30, %s12689_s12  ;;  %v11441_v30 = vld [vmem:[#allocation10 + $0x1d0] ss:$12 sps:$4 sm:$0xff]  }
 0xf08   :  { %4256 = vrot.lane.b32.xlu1 %v3881_v39, %s12689_s12  ;;  %4259 = vrot.lane.b32.xlu0 %v13215_v23, %s12689_s12  ;;  %v11442_v23 = vld [vmem:[#allocation10 + $0x1b0] ss:$12 sps:$4 sm:$0xff]   ;;  %v11446_v39 = vld [vmem:[#allocation10 + $0x198] ss:$12 sps:$4 sm:$0xff]  }
 0xf0c   :  { %4308 = vrot.lane.b32.xlu1 %v3882_v45, %s12689_s12  ;;  %v11449_v45 = vld [vmem:[#allocation10 + $0x1a0] ss:$12 sps:$4 sm:$0xff]  }
 0xf7b   :  { %v3995_v44 = vpop.xlane.xlu0 %3994 }
 0xf7c   :  { %v3998_v63 = vpop.xlane.xlu1 %3997  ;;  %12326 = vrcp.f32 %v3995_v44 }
 0xf7d   :  { %12328 = vrcp.f32 %v3998_v63 }
 0xf7f   :  { %v4260_v53 = vpop.permute.xlu0 %4259 }
 0xf80   :  { %v4312_v19 = vpop.permute.xlu1 %4311  ;;  %v4265_v62 = vsel %vm2374_vm1, %v4260_v53, 0 }
 0xf81   :  { %v4317_v27 = vsel %vm2374_vm1, %v4312_v19, 0 }
 0xf84   :  { %v4257_v18 = vpop.permute.xlu1 %4256 }
 0xf88   :  { %v4309_v0 = vpop.permute.xlu1 %4308 }
 0xf89   :  { %v12327_v22 = vpop.eup %12326 }
 0xf8a   :  { %v12329_v35 = vpop.eup %12328  ;;  %v4001_v60 = vmul.f32 %v12327_v22, %v12323_v37 }
 0xf8b   :  { %v4002_v32 = vmul.f32 %v12329_v35, %v12325_v7 }
 0xf8c   :  { %v4003_v38 = vpack.c.bf16 %v4001_v60, %v4001_v60 }
 0xf8d   :  { %v4004_v48 = vpack.c.bf16 %v4002_v32, %v4002_v32 }
 0xf8e   :  { %11004 = vmatmul.mubr.msk.bf16.vlgmr.msra.gmra.mxu0 %vm2471_vm4, %v4003_v38 }
 0xf8f   :  { %11010 = vmatmul.mubr.msk.bf16.vlgmr.msra.gmra.mxu1 %vm2471_vm4, %v4004_v48  ;;  %4174 = vmatpush1.bf16.msra.mxu0 %v11438_v15 }
 0xf90   :  { %11014 = vmatpush3.bf16.msra.mxu1 %v11441_v30  ;;  %4175 = vmatprep.subr.bf16.mxu0 %v11444_v55 }
 0xf91   :  { %11015 = vmatprep.subr.bf16.mxu1 %v12687_v16  ;;  %4197 = vmatprep.mubr.bf16.mxu0 %v12686_v9 }
 0xf92   :  { %11021 = vmatprep.mubr.msk.bf16.mxu1 %vm12688_vm0, %v12687_v16 }
 0xf93   :  { %4176 = vmatpush1.bf16.msra.mxu0 %v11442_v23 }
 0xf94   :  { %11016 = vmatpush3.bf16.msra.mxu1 %v11445_v52  ;;  %4177 = vmatprep.subr.bf16.mxu0 %v11448_v56 }
 0xf95   :  { %11017 = vmatprep.subr.bf16.mxu1 %v12687_v16 }
 0xf97   :  { %4178 = vmatpush1.bf16.msra.mxu0 %v11446_v39 }
 0xf98   :  { %11018 = vmatpush3.bf16.msra.mxu1 %v11449_v45  ;;  %4179 = vmatprep.subr.bf16.mxu0 %v11452_v46 }
 0xf99   :  { %11019 = vmatprep.subr.bf16.mxu1 %v12687_v16 }
 0xf9b   :  { %4180 = vmatpush1.bf16.msra.mxu0 %v11450_v17  ;;  %v11456_v17 = vld [vmem:[#allocation10 + $0x22c] ss:$12 sps:$4 sm:$0xff]  }
 0xf9c   :  { %11020 = vmatpush3.bf16.msra.mxu1 %v11453_v13  ;;  %11025 = vmatprep.subr.bf16.mxu0 %v12687_v16 }
 0xf9d   :  { %11031 = vmatprep.subr.bf16.mxu1 %v12687_v16 }
0x104e   :  { %v4045_v50 = vpop.f32.mrf.mxu0 }
0x104f   :  { %v4091_v57 = vpop.f32.mrf.mxu1 }
0x1050   :  { %v4097_v58 = vpack.c.bf16 %v4091_v57, %v4045_v50  ;;  %v11005_v41 = vpop.f32.mrf.mxu0  ;;  %v11454_v57 = vld [vmem:[#allocation10 + $0x228] ss:$12 sps:$4 sm:$0xff]  }
0x1051   :  { %v11011_v40 = vpop.f32.mrf.mxu1  ;;  %v11460_v41 = vld [vmem:[#allocation10 + $0x214] ss:$12 sps:$4 sm:$0xff]  }
0x1052   :  { %9886 = vmatmul.mubr.msk.bf16.vlgmr.msra.gmra.mxu0 %vm2374_vm1, %v4097_v58  ;;  %11022 = vmatmul.mubr.msk.bf16.vlgmr.msra.gmra.mxu1 %vm2374_vm1, %v4097_v58  ;;  %v4048_v47 = vpop.f32.mrf.mxu0 }
0x1053   :  { %11026 = vmatpush3.bf16.xpose.msra.mxu0 %v4265_v62  ;;  %11032 = vmatpush3.bf16.xpose.msra.mxu1 %v4317_v27  ;;  %v4094_v1 = vpop.f32.mrf.mxu1  ;;  %v11458_v62 = vld [vmem:[#allocation10 + $0x210] ss:$12 sps:$4 sm:$0xff]  }
0x1054   :  { %v11006_v2 = vpop.f32.mrf.mxu0  ;;  %11027 = vmatprep.mubr.msk.bf16.mxu0 %vm12688_vm0, %v12687_v16  ;;  %11033 = vmatprep.mubr.msk.bf16.mxu1 %vm12688_vm0, %v12687_v16  ;;  %v11461_v1 = vld [vmem:[#allocation10 + $0x218] ss:$12 sps:$4 sm:$0xff]  }
0x1055   :  { %v11012_v3 = vpop.f32.mrf.mxu1  ;;  %11043 = vmatprep.subr.bf16.mxu1 %v12687_v16  ;;  %11037 = vmatprep.subr.bf16.mxu0 %v12687_v16  ;;  %v11462_v2 = vld [vmem:[#allocation10 + $0x1f8] ss:$12 sps:$4 sm:$0xff]  }
0x1056   :  { %v11465_v3 = vld [vmem:[#allocation10 + $0x200] ss:$12 sps:$4 sm:$0xff]  }
0x105a   :  { %11028 = vmatmul.mubr.msk.bf16.vlgmr.msra.gmra.mxu0 %vm2374_vm1, %v4257_v18  ;;  %11034 = vmatmul.mubr.msk.bf16.vlgmr.msra.gmra.mxu1 %vm2374_vm1, %v4309_v0  ;;  %v11464_v18 = vld [vmem:[#allocation10 + $0x1fc] ss:$12 sps:$4 sm:$0xff]   ;;  %v11466_v0 = vld [vmem:[#allocation10 + $0x1e0] ss:$12 sps:$4 sm:$0xff]  }
0x105b   :  { %11039 = vmatprep.mubr.msk.bf16.mxu0 %vm12688_vm0, %v12687_v16  ;;  %11045 = vmatprep.mubr.msk.bf16.mxu1 %vm12688_vm0, %v12687_v16 }
0x1112   :  { %v4199_v4 = vpop.f32.mrf.mxu0  ;;  %v4242_v42 = vpop.f32.mrf.mxu1 }
0x1113   :  { %v13315_v43 = vadd.f32 %v4199_v4, %v13257_v29  ;;  %v13318_v10 = vadd.f32 %v4242_v42, %v13260_v49  ;;  %v11468_v4 = vld [vmem:[#allocation10 + $0x1e4] ss:$12 sps:$4 sm:$0xff]   ;;  %v11469_v42 = vld [vmem:[#allocation10 + $0x1e8] ss:$12 sps:$4 sm:$0xff]  }
0x1114   :  { %v4201_v36 = vpop.f32.mrf.mxu0  ;;  %v11023_v33 = vpop.f32.mrf.mxu1 }
0x1115   :  { %v13321_v61 = vadd.f32 %v4201_v36, %v13263_v54 }
0x1116   :  { %v4203_v34 = vpop.f32.mrf.mxu0  ;;  %v4245_v11 = vpop.f32.mrf.mxu1 }
0x1117   :  { %v13324_v51 = vadd.f32 %v4203_v34, %v13266_v8  ;;  %v13327_v37 = vadd.f32 %v4245_v11, %v13269_v59 }
0x1118   :  { %v4205_v7 = vpop.f32.mrf.mxu0  ;;  %v11024_v20 = vpop.f32.mrf.mxu1 }
0x1119   :  { %v13330_v29 = vadd.f32 %v4205_v7, %v13272_v12 }
0x111a   :  { %v4301_v49 = vpop.f32.mrf.mxu0  ;;  %v4353_v5 = vpop.f32.mrf.mxu1 }
0x111b   :  { %v4359_v21 = vsel %vm12998_vm3, %v4301_v49, -inf  ;;  %v4360_v54 = vsel %vm12998_vm3, %v4353_v5, -inf }
0x111c   :  { %v11029_v44 = vpop.f32.mrf.mxu0  ;;  %v11035_v63 = vpop.f32.mrf.mxu1  ;;  %v4361_v8 = vsel %vm2471_vm4, %v4359_v21, -inf  ;;  %v4364_v59 = vsel %vm2471_vm4, %v4360_v54, -inf }
0x111d   :  { %4362 = vmax.xlane.f32.xlu0 %v4361_v8  ;;  %4365 = vmax.xlane.f32.xlu1 %v4364_v59 }
0x111e   :  { %v4304_v22 = vpop.f32.mrf.mxu0  ;;  %v4356_v35 = vpop.f32.mrf.mxu1 }
0x111f   :  { %v12342_v35 = vld [vmem:[#allocation2] sm:$0xff] }
0x1120   :  { %v11030_v12 = vpop.f32.mrf.mxu0  ;;  %v11036_v60 = vpop.f32.mrf.mxu1 }
0x112e   :  { %4435 = vrot.lane.b32.xlu1 %v13239_v6, %s12689_s12 }
0x11a6   :  { %v4363_v32 = vpop.xlane.xlu0 %4362  ;;  %v4366_v15 = vpop.xlane.xlu1 %4365 }
0x11a7   :  { %v4367_v38 = vsub.f32 %v4359_v21, %v4363_v32  ;;  %v4368_v31 = vsub.f32 %v4360_v54, %v4366_v15  ;;  %v4647_v54 = vld [vmem:[#allocation11] sm:$0x7] }
0x11a8   :  { %v4652_v60 = vrot.slane %v4647_v54, %v12862_v28  ;;  %v4656_v15 = vrot.slane %v4647_v54, %v12856_v25 }
0x11a9   :  { %v4369_v30 = vmul.f32 1.442695, %v4367_v38  ;;  %v4371_v55 = vmul.f32 1.442695, %v4368_v31 }
0x11aa   :  { %v4436_v48 = vpop.permute.xlu1 %4435 }
0x11ab   :  { %12330 = vpow2.f32 %v4369_v30  ;;  %v4441_v23 = vsel %vm2499_vm2, %v4436_v48, 0  ;;  %v12343_v30 = vld [vmem:[#allocation2 + $0x10] sm:$0xff]  ;;  %v4660_v48 = vrot.slane %v4647_v54, %v12859_v26 }
0x11ac   :  { %11044 = vmatpush3.bf16.msra.mxu1 %v4441_v23  ;;  %12332 = vpow2.f32 %v4371_v55  ;;  %v12344_v23 = vld [vmem:[#allocation2 + $0x8] sm:$0xff] }
0x11ad   :  { %11049 = vmatprep.subr.bf16.mxu1 %v12687_v16 }
0x11b8   :  { %v12331_v52 = vpop.eup %12330 }
0x11b9   :  { %v4373_v56 = vsel %vm2471_vm4, %v12331_v52, 0.0  ;;  %v12333_v39 = vpop.eup %12332 }
0x11ba   :  { %4374 = vadd.xlane.f32.xlu0 %v4373_v56  ;;  %v4376_v6 = vsel %vm2471_vm4, %v12333_v39, 0.0 }
0x11be   :  { %4377 = vadd.xlane.f32.xlu0 %v4376_v6 }
0x11d4   :  { %4386 = vrot.lane.b32.xlu0 %v13235_v14, %s12689_s12  ;;  %v11457_v14 = vld [vmem:[#allocation10 + $0x230] ss:$12 sps:$4 sm:$0xff]  }
0x1243   :  { %v4375_v45 = vpop.xlane.xlu0 %4374 }
0x1244   :  { %12334 = vrcp.f32 %v4375_v45 }
0x1247   :  { %v4378_v46 = vpop.xlane.xlu0 %4377 }
0x1248   :  { %12336 = vrcp.f32 %v4378_v46 }
0x124b   :  { %v4387_v13 = vpop.permute.xlu0 %4386 }
0x124c   :  { %v4392_v19 = vsel %vm2499_vm2, %v4387_v13, 0 }
0x124d   :  { %11038 = vmatpush3.bf16.msra.mxu0 %v4392_v19  ;;  %v12346_v19 = vld [vmem:[#allocation2 + $0x28] sm:$0xff] }
0x124e   :  { %4559 = vmatprep.subr.bf16.mxu0 %v11456_v17 }
0x1251   :  { %v12335_v50 = vpop.eup %12334 }
0x1252   :  { %v4381_v53 = vmul.f32 %v12335_v50, %v12331_v52 }
0x1254   :  { %v4383_v58 = vpack.c.bf16 %v4381_v53, %v4381_v53  ;;  %v12347_v53 = vld [vmem:[#allocation2 + $0x20] sm:$0xff] }
0x1255   :  { %v12337_v40 = vpop.eup %12336 }
0x1256   :  { %11040 = vmatmul.mubr.msk.bf16.vlgmr.msra.gmra.mxu0 %vm2471_vm4, %v4383_v58  ;;  %v4382_v27 = vmul.f32 %v12337_v40, %v12333_v39 }
0x1257   :  { %4560 = vmatpush1.bf16.msra.mxu0 %v11454_v57  ;;  %4583 = vmatprep.mubr.bf16.mxu0 %v12686_v9 }
0x1258   :  { %v4384_v47 = vpack.c.bf16 %v4382_v27, %v4382_v27  ;;  %4561 = vmatprep.subr.bf16.mxu0 %v11460_v41 }
0x125a   :  { %11046 = vmatmul.mubr.msk.bf16.vlgmr.msra.gmra.mxu1 %vm2471_vm4, %v4384_v47  ;;  %v11475_v47 = vld [vmem:[#allocation19 + $0x244] ss:$48 sps:$4 sm:$0xff]  }
0x125b   :  { %11050 = vmatpush3.bf16.msra.mxu1 %v11457_v14  ;;  %4562 = vmatpush1.bf16.msra.mxu0 %v11458_v62  ;;  %v11470_v14 = vld [vmem:[#allocation19 + $0x2a0] ss:$48 sps:$4 sm:$0xff]   ;;  %v11472_v62 = vld [vmem:[#allocation19 + $0x2a4] ss:$48 sps:$4 sm:$0xff]  }
0x125c   :  { %11051 = vmatprep.subr.bf16.mxu1 %v12687_v16  ;;  %4563 = vmatprep.subr.bf16.mxu0 %v11464_v18  ;;  %v11473_v18 = vld [vmem:[#allocation19 + $0x240] ss:$48 sps:$4 sm:$0xff]  }
0x125d   :  { %11057 = vmatprep.mubr.msk.bf16.mxu1 %vm12688_vm0, %v12687_v16 }
0x125f   :  { %11052 = vmatpush3.bf16.msra.mxu1 %v11461_v1  ;;  %4564 = vmatpush1.bf16.msra.mxu0 %v11462_v2  ;;  %v11478_v1 = vld [vmem:[#allocation19 + $0x1e4] ss:$48 sps:$4 sm:$0xff]   ;;  %v11494_v2 = vld [vmem:[#allocation19 + $0x8a0] ss:$48 sps:$4 sm:$0xff]  }
0x1260   :  { %11053 = vmatprep.subr.bf16.mxu1 %v12687_v16  ;;  %4565 = vmatprep.subr.bf16.mxu0 %v11468_v4  ;;  %v11481_v4 = vld [vmem:[#allocation19 + $0x184] ss:$48 sps:$4 sm:$0xff]  }
0x1263   :  { %11054 = vmatpush3.bf16.msra.mxu1 %v11465_v3  ;;  %4566 = vmatpush1.bf16.msra.mxu0 %v11466_v0  ;;  %v11496_v3 = vld [vmem:[#allocation19 + $0x8a4] ss:$48 sps:$4 sm:$0xff]   ;;  %v11476_v0 = vld [vmem:[#allocation19 + $0x1e0] ss:$48 sps:$4 sm:$0xff]  }
0x1264   :  { %11055 = vmatprep.subr.bf16.mxu1 %v12687_v16  ;;  %6553 = vmatprep.subr.bf16.mxu0 %v11472_v62  ;;  %v11518_v62 = vld [vmem:[#allocation19 + $0x720] ss:$48 sps:$4 sm:$0xff]  }
0x1267   :  { %11056 = vmatpush3.bf16.msra.mxu1 %v11469_v42  ;;  %v11479_v42 = vld [vmem:[#allocation19 + $0x180] ss:$48 sps:$4 sm:$0xff]  }
0x1268   :  { %6596 = vmatprep.subr.bf16.mxu1 %v11496_v3  ;;  %v11527_v3 = vld [vmem:[#allocation19 + $0x3c0] ss:$48 sps:$4 sm:$0xff]  }
0x1316   :  { %v4428_v36 = vpop.f32.mrf.mxu0 }
0x1318   :  { %v11041_v33 = vpop.f32.mrf.mxu0 }
0x1319   :  { %v11482_v33 = vld [vmem:[#allocation19 + $0x120] ss:$48 sps:$4 sm:$0xff]  }
0x131a   :  { %v4431_v34 = vpop.f32.mrf.mxu0  ;;  %v4477_v11 = vpop.f32.mrf.mxu1 }
0x131b   :  { %v4483_v7 = vpack.c.bf16 %v4477_v11, %v4428_v36  ;;  %v11484_v36 = vld [vmem:[#allocation19 + $0x124] ss:$48 sps:$4 sm:$0xff]   ;;  %v11485_v11 = vld [vmem:[#allocation19 + $0xc0] ss:$48 sps:$4 sm:$0xff]  }
0x131c   :  { %v11042_v20 = vpop.f32.mrf.mxu0  ;;  %v11047_v49 = vpop.f32.mrf.mxu1  ;;  %v11487_v34 = vld [vmem:[#allocation19 + $0xc4] ss:$48 sps:$4 sm:$0xff]  }
0x131d   :  { %9904 = vmatmul.mubr.msk.bf16.vlgmr.msra.gmra.mxu0 %vm2374_vm1, %v4483_v7  ;;  %11058 = vmatmul.mubr.msk.bf16.vlgmr.msra.gmra.mxu1 %vm2374_vm1, %v4483_v7  ;;  %v11490_v7 = vld [vmem:[#allocation19 + $0x64] ss:$48 sps:$4 sm:$0xff]   ;;  %v11488_v20 = vld [vmem:[#allocation19 + $0x60] ss:$48 sps:$4 sm:$0xff]  }
0x131e   :  { %v4480_v5 = vpop.f32.mrf.mxu1  ;;  %6628 = vmatprep.mubr.bf16.mxu1 %v12686_v9  ;;  %6554 = vmatpush1.bf16.msra.mxu0 %v11470_v14  ;;  %v11493_v49 = vld [vmem:[#allocation19 + $0x4] ss:$48 sps:$4 sm:$0xff]  }
0x131f   :  { %6555 = vmatprep.subr.bf16.mxu0 %v11475_v47  ;;  %6597 = vmatpush1.bf16.msra.mxu1 %v11494_v2  ;;  %v11491_v5 = vld [vmem:[#allocation19] ss:$48 sps:$4 sm:$0xff]   ;;  %v11523_v14 = vld [vmem:[#allocation19 + $0x424] ss:$48 sps:$4 sm:$0xff]  }
0x1320   :  { %v11048_v21 = vpop.f32.mrf.mxu1  ;;  %v11521_v47 = vld [vmem:[#allocation19 + $0x420] ss:$48 sps:$4 sm:$0xff]  }
0x1321   :  { %v11499_v21 = vld [vmem:[#allocation19 + $0x5a4] ss:$48 sps:$4 sm:$0xff]   ;;  %v11524_v2 = vld [vmem:[#allocation19 + $0x6c0] ss:$48 sps:$4 sm:$0xff]  }
0x1322   :  { %6556 = vmatpush1.bf16.msra.mxu0 %v11473_v18  ;;  %v11526_v18 = vld [vmem:[#allocation19 + $0x6c4] ss:$48 sps:$4 sm:$0xff]  }
0x1323   :  { %6557 = vmatprep.subr.bf16.mxu0 %v11478_v1  ;;  %v11529_v1 = vld [vmem:[#allocation19 + $0x3c4] ss:$48 sps:$4 sm:$0xff]  }
0x1326   :  { %6558 = vmatpush1.bf16.msra.mxu0 %v11476_v0  ;;  %v11532_v0 = vld [vmem:[#allocation19 + $0x664] ss:$48 sps:$4 sm:$0xff]  }
0x1327   :  { %6559 = vmatprep.subr.bf16.mxu0 %v11481_v4  ;;  %v11535_v4 = vld [vmem:[#allocation19 + $0x364] ss:$48 sps:$4 sm:$0xff]  }
0x132a   :  { %6560 = vmatpush1.bf16.msra.mxu0 %v11479_v42  ;;  %v11530_v42 = vld [vmem:[#allocation19 + $0x660] ss:$48 sps:$4 sm:$0xff]  }
0x132b   :  { %6561 = vmatprep.subr.bf16.mxu0 %v11484_v36  ;;  %v11533_v36 = vld [vmem:[#allocation19 + $0x360] ss:$48 sps:$4 sm:$0xff]  }
0x132e   :  { %6562 = vmatpush1.bf16.msra.mxu0 %v11482_v33  ;;  %v11538_v33 = vld [vmem:[#allocation19 + $0x604] ss:$48 sps:$4 sm:$0xff]  }
0x132f   :  { %6563 = vmatprep.subr.bf16.mxu0 %v11487_v34  ;;  %v11541_v34 = vld [vmem:[#allocation19 + $0x304] ss:$48 sps:$4 sm:$0xff]  }
0x1332   :  { %6564 = vmatpush1.bf16.msra.mxu0 %v11485_v11  ;;  %v11536_v11 = vld [vmem:[#allocation19 + $0x600] ss:$48 sps:$4 sm:$0xff]  }
0x1333   :  { %6565 = vmatprep.subr.bf16.mxu0 %v11490_v7  ;;  %v11539_v7 = vld [vmem:[#allocation19 + $0x300] ss:$48 sps:$4 sm:$0xff]  }
0x1336   :  { %6566 = vmatpush1.bf16.msra.mxu0 %v11488_v20  ;;  %v11544_v20 = vld [vmem:[#allocation19 + $0x2ac] ss:$48 sps:$4 sm:$0xff]  }
0x1337   :  { %6567 = vmatprep.subr.bf16.mxu0 %v11493_v49  ;;  %v11547_v49 = vld [vmem:[#allocation19 + $0x8ac] ss:$48 sps:$4 sm:$0xff]  }
0x133a   :  { %6568 = vmatpush1.bf16.msra.mxu0 %v11491_v5 }
0x133b   :  { %6569 = vmatprep.subr.bf16.mxu0 %v11499_v21 }
0x13dd   :  { %v4585_v16 = vpop.f32.mrf.mxu0  ;;  %v4628_v44 = vpop.f32.mrf.mxu1 }
0x13de   :  { %v4635_v63 = vadd.f32 %v4585_v16, %v13315_v43  ;;  %v4637_v8 = vadd.f32 %v4628_v44, %v13318_v10  ;;  %v11497_v16 = vld [vmem:[#allocation19 + $0x5a0] ss:$48 sps:$4 sm:$0xff]  }
0x13df   :  { %v4587_v59 = vpop.f32.mrf.mxu0  ;;  %v11059_v22 = vpop.f32.mrf.mxu1  ;;  %6570 = vmatpush2.bf16.msra.mxu0 %v11497_v16 }
0x13e0   :  { %v4641_v12 = vadd.f32 %v12342_v35, %v4635_v63  ;;  %v4636_v32 = vadd.f32 %v4587_v59, %v13321_v61  ;;  %v4643_v55 = vadd.f32 %v12343_v30, %v4637_v8  ;;  %v12345_v61 = vld [vmem:[#allocation2 + $0x18] sm:$0xff] }
0x13e1   :  { %v4589_v38 = vpop.f32.mrf.mxu0  ;;  %v4631_v31 = vpop.f32.mrf.mxu1 }
0x13e2   :  { %v4642_v43 = vadd.f32 %v12344_v23, %v4636_v32  ;;  %v4638_v10 = vadd.f32 %v4589_v38, %v13324_v51  ;;  %v4640_v52 = vadd.f32 %v4631_v31, %v13327_v37  ;;  %v13366_v6 = vadd.f32 %v4652_v60, %v4641_v12 }
0x13e3   :  { %v4591_v56 = vpop.f32.mrf.mxu0  ;;  %v11060_v39 = vpop.f32.mrf.mxu1  ;;  %v13371_v13 = vadd.f32 %v4660_v48, %v4643_v55 }
0x13e4   :  { %v13368_v45 = vadd.f32 %v4656_v15, %v4642_v43  ;;  %v4644_v46 = vadd.f32 %v12345_v61, %v4638_v10  ;;  %v4639_v17 = vadd.f32 %v4591_v56, %v13330_v29  ;;  %v4646_v50 = vadd.f32 %v12346_v19, %v4640_v52  ;;  %v11502_v56 = vld [vmem:[#allocation19 + $0x844] ss:$48 sps:$4 sm:$0xff]   ;;  %v11500_v39 = vld [vmem:[#allocation19 + $0x840] ss:$48 sps:$4 sm:$0xff]  }
0x13e5   :  { %v11505_v61 = vld [vmem:[#allocation19 + $0x544] ss:$48 sps:$4 sm:$0xff]   ;;  %6598 = vmatprep.subr.bf16.mxu1 %v11502_v56  ;;  %v11506_v19 = vld [vmem:[#allocation19 + $0x7e0] ss:$48 sps:$4 sm:$0xff]  }
0x13e6   :  { %v4645_v57 = vadd.f32 %v12347_v53, %v4639_v17  ;;  %v4672_v51 = vadd.f32 %v13368_v45, %v13366_v6  ;;  %v13375_v37 = vadd.f32 %v4652_v60, %v4644_v46  ;;  %v13380_v40 = vadd.f32 %v4660_v48, %v4646_v50  ;;  %v11503_v46 = vld [vmem:[#allocation19 + $0x540] ss:$48 sps:$4 sm:$0xff]   ;;  %6571 = vmatprep.subr.bf16.mxu0 %v11505_v61  ;;  %v11508_v17 = vld [vmem:[#allocation19 + $0x7e4] ss:$48 sps:$4 sm:$0xff]  }
0x13e7   :  { %6599 = vmatpush1.bf16.msra.mxu1 %v11500_v39  ;;  %6572 = vmatpush2.bf16.msra.mxu0 %v11503_v46  ;;  %v11511_v50 = vld [vmem:[#allocation19 + $0x4e4] ss:$48 sps:$4 sm:$0xff]   ;;  %v11509_v53 = vld [vmem:[#allocation19 + $0x4e0] ss:$48 sps:$4 sm:$0xff]  }
0x13e8   :  { %v13377_v58 = vadd.f32 %v4656_v15, %v4645_v57  ;;  %v4673_v41 = vadd.f32 %v4672_v51, %v13371_v13  ;;  %6600 = vmatprep.subr.bf16.mxu1 %v11508_v17  ;;  %6573 = vmatprep.subr.bf16.mxu0 %v11511_v50  ;;  %v11512_v57 = vld [vmem:[#allocation19 + $0x780] ss:$48 sps:$4 sm:$0xff]   ;;  %v11514_v51 = vld [vmem:[#allocation19 + $0x784] ss:$48 sps:$4 sm:$0xff]  }
0x13ea   :  { %4674 = vadd.xlane.f32.xlu1 %v4673_v41  ;;  %v4676_v29 = vadd.f32 %v13377_v58, %v13375_v37  ;;  %v11515_v41 = vld [vmem:[#allocation19 + $0x480] ss:$48 sps:$4 sm:$0xff]  }
0x13eb   :  { %6601 = vmatpush1.bf16.msra.mxu1 %v11506_v19  ;;  %6574 = vmatpush2.bf16.msra.mxu0 %v11509_v53 }
0x13ec   :  { %v4677_v27 = vadd.f32 %v4676_v29, %v13380_v40  ;;  %v11517_v29 = vld [vmem:[#allocation19 + $0x484] ss:$48 sps:$4 sm:$0xff]   ;;  %6602 = vmatprep.subr.bf16.mxu1 %v11514_v51 }
0x13ed   :  { %6575 = vmatprep.subr.bf16.mxu0 %v11517_v29 }
0x13ee   :  { %4678 = vadd.xlane.f32.xlu0 %v4677_v27  ;;  %v11520_v27 = vld [vmem:[#allocation19 + $0x724] ss:$48 sps:$4 sm:$0xff]  }
0x13ef   :  { %6603 = vmatpush1.bf16.msra.mxu1 %v11512_v57  ;;  %6576 = vmatpush2.bf16.msra.mxu0 %v11515_v41 }
0x13f0   :  { %6604 = vmatprep.subr.bf16.mxu1 %v11520_v27  ;;  %6577 = vmatprep.subr.bf16.mxu0 %v11523_v14  ;;  %v11542_v27 = vld [vmem:[#allocation19 + $0x2a8] ss:$48 sps:$4 sm:$0xff]  }
0x13f3   :  { %6605 = vmatpush1.bf16.msra.mxu1 %v11518_v62  ;;  %6578 = vmatpush2.bf16.msra.mxu0 %v11521_v47 }
0x13f4   :  { %6606 = vmatprep.subr.bf16.mxu1 %v11526_v18  ;;  %6579 = vmatprep.subr.bf16.mxu0 %v11529_v1  ;;  %v11553_v1 = vld [vmem:[#allocation19 + $0x84c] ss:$48 sps:$4 sm:$0xff]  }
0x13f7   :  { %6607 = vmatpush1.bf16.msra.mxu1 %v11524_v2  ;;  %6580 = vmatpush2.bf16.msra.mxu0 %v11527_v3  ;;  %v11548_v2 = vld [vmem:[#allocation19 + $0x248] ss:$48 sps:$4 sm:$0xff]  }
0x13f8   :  { %6608 = vmatprep.subr.bf16.mxu1 %v11532_v0  ;;  %6581 = vmatprep.subr.bf16.mxu0 %v11535_v4  ;;  %v11551_v3 = vld [vmem:[#allocation19 + $0x848] ss:$48 sps:$4 sm:$0xff]   ;;  %v11556_v0 = vld [vmem:[#allocation19 + $0x1ec] ss:$48 sps:$4 sm:$0xff]  }
0x13f9   :  { %v11559_v4 = vld [vmem:[#allocation19 + $0x7ec] ss:$48 sps:$4 sm:$0xff]  }
0x13fb   :  { %6609 = vmatpush1.bf16.msra.mxu1 %v11530_v42  ;;  %6582 = vmatpush2.bf16.msra.mxu0 %v11533_v36  ;;  %v11554_v42 = vld [vmem:[#allocation19 + $0x1e8] ss:$48 sps:$4 sm:$0xff]  }
0x13fc   :  { %6610 = vmatprep.subr.bf16.mxu1 %v11538_v33  ;;  %6583 = vmatprep.subr.bf16.mxu0 %v11541_v34  ;;  %v11557_v36 = vld [vmem:[#allocation19 + $0x7e8] ss:$48 sps:$4 sm:$0xff]   ;;  %v11562_v33 = vld [vmem:[#allocation19 + $0x18c] ss:$48 sps:$4 sm:$0xff]  }
0x13fd   :  { %v11565_v34 = vld [vmem:[#allocation19 + $0x78c] ss:$48 sps:$4 sm:$0xff]  }
0x13ff   :  { %6611 = vmatpush1.bf16.msra.mxu1 %v11536_v11  ;;  %6584 = vmatpush2.bf16.msra.mxu0 %v11539_v7  ;;  %v11560_v11 = vld [vmem:[#allocation19 + $0x188] ss:$48 sps:$4 sm:$0xff]  }
0x1400   :  { %6639 = vmatprep.subr.bf16.mxu1 %v11544_v20  ;;  %6682 = vmatprep.subr.bf16.mxu0 %v11547_v49  ;;  %v11563_v7 = vld [vmem:[#allocation19 + $0x788] ss:$48 sps:$4 sm:$0xff]   ;;  %v11568_v20 = vld [vmem:[#allocation19 + $0x12c] ss:$48 sps:$4 sm:$0xff]  }
0x1401   :  { %v11571_v49 = vld [vmem:[#allocation19 + $0x72c] ss:$48 sps:$4 sm:$0xff]  }
0x1473   :  { %v4675_v54 = vpop.xlane.xlu1 %4674 }
0x1474   :  { %v4680_v44 = vmul.f32 0.0026041667, %v4675_v54 }
0x1476   :  { %v13386_v63 = vsub.f32 %v13366_v6, %v4680_v44  ;;  %v13389_v8 = vsub.f32 %v13368_v45, %v4680_v44  ;;  %v13392_v59 = vsub.f32 %v13371_v13, %v4680_v44 }
0x1477   :  { %v4679_v22 = vpop.xlane.xlu0 %4678 }
0x1478   :  { %v4681_v35 = vmul.f32 0.0026041667, %v4679_v22  ;;  %v4688_v12 = vmul.f32 %v13386_v63, %v13386_v63  ;;  %v4689_v60 = vmul.f32 %v13389_v8, %v13389_v8  ;;  %v4690_v32 = vmul.f32 %v13392_v59, %v13392_v59 }
0x147a   :  { %v13401_v15 = vsub.f32 %v13375_v37, %v4681_v35  ;;  %v13404_v38 = vsub.f32 %v13377_v58, %v4681_v35  ;;  %v13407_v31 = vsub.f32 %v13380_v40, %v4681_v35  ;;  %v4694_v30 = vadd.f32 %v4689_v60, %v4688_v12  ;;  %v4670_v35 = vld [vmem:[#allocation16] sm:$0x7]  ;;  %v4671_v60 = vld [vmem:[#allocation17] sm:$0x7] }
0x147b   :  { %v4748_v56 = vrot.slane %v4671_v60, %v12859_v26  ;;  %v4740_v19 = vrot.slane %v4671_v60, %v12862_v28 }
0x147c   :  { %v4695_v55 = vadd.f32 %v4694_v30, %v4690_v32  ;;  %v4691_v48 = vmul.f32 %v13401_v15, %v13401_v15  ;;  %v4692_v23 = vmul.f32 %v13404_v38, %v13404_v38  ;;  %v4693_v43 = vmul.f32 %v13407_v31, %v13407_v31 }
0x147d   :  { %v4722_v30 = vrot.slane %v4670_v35, %v12856_v25 }
0x147e   :  { %4696 = vadd.xlane.f32.xlu0 %v4695_v55  ;;  %v4698_v10 = vadd.f32 %v4692_v23, %v4691_v48  ;;  %v4726_v48 = vrot.slane %v4670_v35, %v12859_v26 }
0x1480   :  { %v4699_v52 = vadd.f32 %v4698_v10, %v4693_v43  ;;  %v4718_v43 = vrot.slane %v4670_v35, %v12862_v28  ;;  %v11580_v35 = vld [vmem:[#allocation19 + $0x6c] ss:$48 sps:$4 sm:$0xff]  }
0x1482   :  { %4700 = vadd.xlane.f32.xlu1 %v4699_v52  ;;  %v4744_v52 = vrot.slane %v4671_v60, %v12856_v25  ;;  %v11578_v60 = vld [vmem:[#allocation19 + $0x68] ss:$48 sps:$4 sm:$0xff]  }
0x1507   :  { %v4697_v5 = vpop.xlane.xlu0 %4696 }
0x1508   :  { %v4702_v21 = vmul.f32 0.0026041667, %v4697_v5  ;;  %v11566_v5 = vld [vmem:[#allocation19 + $0x128] ss:$48 sps:$4 sm:$0xff]  }
0x150a   :  { %v4704_v16 = vadd.f32 1e-05, %v4702_v21  ;;  %v11569_v21 = vld [vmem:[#allocation19 + $0x728] ss:$48 sps:$4 sm:$0xff]  }
0x150b   :  { %v4701_v54 = vpop.xlane.xlu1 %4700 }
0x150c   :  { %12338 = vrsqrt.f32 %v4704_v16  ;;  %v4703_v44 = vmul.f32 0.0026041667, %v4701_v54  ;;  %v11574_v16 = vld [vmem:[#allocation19 + $0xcc] ss:$48 sps:$4 sm:$0xff]  }
0x150d   :  { %v11577_v54 = vld [vmem:[#allocation19 + $0x6cc] ss:$48 sps:$4 sm:$0xff]  }
0x150e   :  { %v4705_v22 = vadd.f32 1e-05, %v4703_v44  ;;  %v11572_v44 = vld [vmem:[#allocation19 + $0xc8] ss:$48 sps:$4 sm:$0xff]  }
0x1510   :  { %12340 = vrsqrt.f32 %v4705_v22  ;;  %v11575_v22 = vld [vmem:[#allocation19 + $0x6c8] ss:$48 sps:$4 sm:$0xff]  }
0x1519   :  { %v12339_v12 = vpop.eup %12338 }
0x151a   :  { %v4709_v32 = vmul.f32 %v12339_v12, %v13389_v8  ;;  %v4710_v55 = vmul.f32 %v12339_v12, %v13392_v59  ;;  %v4708_v23 = vmul.f32 %v12339_v12, %v13386_v63  ;;  %v11583_v12 = vld [vmem:[#allocation19 + $0x66c] ss:$48 sps:$4 sm:$0xff]  }
0x151c   :  { %v4731_v61 = vmul.f32 %v4722_v30, %v4709_v32  ;;  %v4732_v46 = vmul.f32 %v4726_v48, %v4710_v55  ;;  %v4730_v59 = vmul.f32 %v4718_v43, %v4708_v23  ;;  %v11581_v32 = vld [vmem:[#allocation19 + $0x668] ss:$48 sps:$4 sm:$0xff]   ;;  %v11589_v55 = vld [vmem:[#allocation19 + $0x60c] ss:$48 sps:$4 sm:$0xff]  }
0x151d   :  { %v12341_v10 = vpop.eup %12340  ;;  %v11587_v23 = vld [vmem:[#allocation19 + $0x608] ss:$48 sps:$4 sm:$0xff]  }
0x151e   :  { %v4712_v39 = vmul.f32 %v12341_v10, %v13404_v38  ;;  %v4713_v8 = vmul.f32 %v12341_v10, %v13407_v31  ;;  %v4711_v17 = vmul.f32 %v12341_v10, %v13401_v15  ;;  %v4753_v57 = vadd.f32 %v4744_v52, %v4731_v61  ;;  %v11545_v31 = vld [vmem:[#allocation19 + $0x8a8] ss:$48 sps:$4 sm:$0xff]   ;;  %v11550_v15 = vld [vmem:[#allocation19 + $0x24c] ss:$48 sps:$4 sm:$0xff]   ;;  %v11595_v10 = vld [vmem:[#allocation19 + $0x2b4] ss:$48 sps:$4 sm:$0xff]  }
0x151f   :  { %v4754_v41 = vadd.f32 %v4748_v56, %v4732_v46  ;;  %v4752_v14 = vadd.f32 %v4740_v19, %v4730_v59  ;;  %v11601_v61 = vld [vmem:[#allocation19 + $0x254] ss:$48 sps:$4 sm:$0xff]   ;;  %v11599_v46 = vld [vmem:[#allocation19 + $0x250] ss:$48 sps:$4 sm:$0xff]  }
0x1520   :  { %v4734_v50 = vmul.f32 %v4722_v30, %v4712_v39  ;;  %v4735_v63 = vmul.f32 %v4726_v48, %v4713_v8  ;;  %v4733_v53 = vmul.f32 %v4718_v43, %v4711_v17  ;;  %v11586_v30 = vld [vmem:[#allocation19 + $0xc] ss:$48 sps:$4 sm:$0xff]   ;;  %v11584_v48 = vld [vmem:[#allocation19 + $0x8] ss:$48 sps:$4 sm:$0xff]   ;;  %v11607_v59 = vld [vmem:[#allocation19 + $0x1f4] ss:$48 sps:$4 sm:$0xff]  }
0x1521   :  { %v11592_v43 = vld [vmem:[#allocation19 + $0x5ac] ss:$48 sps:$4 sm:$0xff]   ;;  %v11596_v8 = vld [vmem:[#allocation19 + $0x548] ss:$48 sps:$4 sm:$0xff]  }
0x1522   :  { %v4756_v51 = vadd.f32 %v4744_v52, %v4734_v50  ;;  %v4757_v29 = vadd.f32 %v4748_v56, %v4735_v63  ;;  %v4755_v62 = vadd.f32 %v4740_v19, %v4733_v53  ;;  %v11590_v52 = vld [vmem:[#allocation19 + $0x5a8] ss:$48 sps:$4 sm:$0xff]   ;;  %v11593_v56 = vld [vmem:[#allocation19 + $0x2b0] ss:$48 sps:$4 sm:$0xff]   ;;  %v11598_v39 = vld [vmem:[#allocation19 + $0x54c] ss:$48 sps:$4 sm:$0xff]  }
0x1523   :  { %v11604_v17 = vld [vmem:[#allocation19 + $0x4ec] ss:$48 sps:$4 sm:$0xff]   ;;  %v11602_v19 = vld [vmem:[#allocation19 + $0x4e8] ss:$48 sps:$4 sm:$0xff]   ;;  %v11605_v50 = vld [vmem:[#allocation19 + $0x1f0] ss:$48 sps:$4 sm:$0xff]  }
0x1524   :  { %v13427_v38 = vpack.c.bf16 %v4756_v51, %v4753_v57  ;;  %v13429_v47 = vpack.c.bf16 %v4757_v29, %v4754_v41  ;;  %v13431_v18 = vpack.c.bf16 %v4755_v62, %v4752_v14  ;;  %v11610_v63 = vld [vmem:[#allocation19 + $0x48c] ss:$48 sps:$4 sm:$0xff]   ;;  %v11613_v53 = vld [vmem:[#allocation19 + $0x194] ss:$48 sps:$4 sm:$0xff]   ;;  %v11608_v57 = vld [vmem:[#allocation19 + $0x488] ss:$48 sps:$4 sm:$0xff]  }
0x1525   :  { %v11611_v51 = vld [vmem:[#allocation19 + $0x190] ss:$48 sps:$4 sm:$0xff]   ;;  %v11616_v41 = vld [vmem:[#allocation19 + $0x42c] ss:$48 sps:$4 sm:$0xff]   ;;  %v11619_v29 = vld [vmem:[#allocation19 + $0x134] ss:$48 sps:$4 sm:$0xff]  }
0x1526   :  { %6585 = vmatprep.mubr.bf16.mxu0 %v13427_v38  ;;  %6629 = vmatmul.mubr.bf16.vlgmr.msra.gmra.mxu1 %v13429_v47  ;;  %v11617_v14 = vld [vmem:[#allocation19 + $0x130] ss:$48 sps:$4 sm:$0xff]   ;;  %v11622_v62 = vld [vmem:[#allocation19 + $0x3cc] ss:$48 sps:$4 sm:$0xff]  }
0x1527   :  { %6640 = vmatpush1.bf16.msra.mxu1 %v11542_v27  ;;  %6586 = vmatmul.mubr.bf16.vlgmr.msra.gmra.mxu0 %v13431_v18  ;;  %v11614_v27 = vld [vmem:[#allocation19 + $0x428] ss:$48 sps:$4 sm:$0xff]  }
0x1528   :  { %6671 = vmatprep.mubr.bf16.mxu1 %v13427_v38  ;;  %6683 = vmatpush1.bf16.msra.mxu0 %v11545_v31  ;;  %v11625_v31 = vld [vmem:[#allocation19 + $0xd4] ss:$48 sps:$4 sm:$0xff]  }
0x1529   :  { %6641 = vmatprep.subr.bf16.mxu1 %v11550_v15  ;;  %6684 = vmatprep.subr.bf16.mxu0 %v11553_v1  ;;  %v11620_v15 = vld [vmem:[#allocation19 + $0x3c8] ss:$48 sps:$4 sm:$0xff]   ;;  %v11623_v1 = vld [vmem:[#allocation19 + $0xd0] ss:$48 sps:$4 sm:$0xff]  }
0x152a   :  { %6714 = vmatprep.mubr.bf16.mxu0 %v12686_v9 }
0x152b   :  { %6642 = vmatpush1.bf16.msra.mxu1 %v11548_v2  ;;  %v11628_v2 = vld [vmem:[#allocation19 + $0x36c] ss:$48 sps:$4 sm:$0xff]  }
0x152c   :  { %6685 = vmatpush1.bf16.msra.mxu0 %v11551_v3  ;;  %6643 = vmatprep.subr.bf16.mxu1 %v11556_v0  ;;  %v11631_v3 = vld [vmem:[#allocation19 + $0x74] ss:$48 sps:$4 sm:$0xff]   ;;  %v11626_v0 = vld [vmem:[#allocation19 + $0x368] ss:$48 sps:$4 sm:$0xff]  }
0x152d   :  { %6686 = vmatprep.subr.bf16.mxu0 %v11559_v4  ;;  %v11629_v4 = vld [vmem:[#allocation19 + $0x70] ss:$48 sps:$4 sm:$0xff]  }
0x152f   :  { %6644 = vmatpush1.bf16.msra.mxu1 %v11554_v42  ;;  %v11634_v42 = vld [vmem:[#allocation19 + $0x30c] ss:$48 sps:$4 sm:$0xff]  }
0x1530   :  { %6687 = vmatpush1.bf16.msra.mxu0 %v11557_v36  ;;  %6645 = vmatprep.subr.bf16.mxu1 %v11562_v33  ;;  %v11637_v36 = vld [vmem:[#allocation19 + $0x14] ss:$48 sps:$4 sm:$0xff]   ;;  %v11632_v33 = vld [vmem:[#allocation19 + $0x308] ss:$48 sps:$4 sm:$0xff]  }
0x1531   :  { %6688 = vmatprep.subr.bf16.mxu0 %v11565_v34  ;;  %v11635_v34 = vld [vmem:[#allocation19 + $0x10] ss:$48 sps:$4 sm:$0xff]  }
0x1533   :  { %6646 = vmatpush1.bf16.msra.mxu1 %v11560_v11  ;;  %v11640_v11 = vld [vmem:[#allocation19 + $0x8b4] ss:$48 sps:$4 sm:$0xff]  }
0x1534   :  { %6689 = vmatpush1.bf16.msra.mxu0 %v11563_v7  ;;  %6647 = vmatprep.subr.bf16.mxu1 %v11568_v20  ;;  %v11643_v7 = vld [vmem:[#allocation19 + $0x5b4] ss:$48 sps:$4 sm:$0xff]   ;;  %v11638_v20 = vld [vmem:[#allocation19 + $0x8b0] ss:$48 sps:$4 sm:$0xff]  }
0x1535   :  { %6690 = vmatprep.subr.bf16.mxu0 %v11571_v49  ;;  %v11641_v49 = vld [vmem:[#allocation19 + $0x5b0] ss:$48 sps:$4 sm:$0xff]  }
0x1537   :  { %6648 = vmatpush1.bf16.msra.mxu1 %v11566_v5  ;;  %v11646_v5 = vld [vmem:[#allocation19 + $0x854] ss:$48 sps:$4 sm:$0xff]  }
0x1538   :  { %6691 = vmatpush1.bf16.msra.mxu0 %v11569_v21  ;;  %6649 = vmatprep.subr.bf16.mxu1 %v11574_v16  ;;  %v11649_v21 = vld [vmem:[#allocation19 + $0x554] ss:$48 sps:$4 sm:$0xff]   ;;  %v11644_v16 = vld [vmem:[#allocation19 + $0x850] ss:$48 sps:$4 sm:$0xff]  }
0x1539   :  { %6692 = vmatprep.subr.bf16.mxu0 %v11577_v54  ;;  %v11647_v54 = vld [vmem:[#allocation19 + $0x550] ss:$48 sps:$4 sm:$0xff]  }
0x153b   :  { %6650 = vmatpush1.bf16.msra.mxu1 %v11572_v44  ;;  %v11652_v44 = vld [vmem:[#allocation19 + $0x7f4] ss:$48 sps:$4 sm:$0xff]  }
0x153c   :  { %6693 = vmatpush1.bf16.msra.mxu0 %v11575_v22  ;;  %6651 = vmatprep.subr.bf16.mxu1 %v11580_v35  ;;  %v11655_v22 = vld [vmem:[#allocation19 + $0x4f4] ss:$48 sps:$4 sm:$0xff]   ;;  %v11650_v35 = vld [vmem:[#allocation19 + $0x7f0] ss:$48 sps:$4 sm:$0xff]  }
0x153d   :  { %6694 = vmatprep.subr.bf16.mxu0 %v11583_v12  ;;  %v11653_v12 = vld [vmem:[#allocation19 + $0x4f0] ss:$48 sps:$4 sm:$0xff]  }
0x153f   :  { %6652 = vmatpush1.bf16.msra.mxu1 %v11578_v60  ;;  %v11658_v60 = vld [vmem:[#allocation19 + $0x794] ss:$48 sps:$4 sm:$0xff]  }
0x1540   :  { %6695 = vmatpush1.bf16.msra.mxu0 %v11581_v32  ;;  %6653 = vmatprep.subr.bf16.mxu1 %v11586_v30  ;;  %v11661_v32 = vld [vmem:[#allocation19 + $0x494] ss:$48 sps:$4 sm:$0xff]   ;;  %v11656_v30 = vld [vmem:[#allocation19 + $0x790] ss:$48 sps:$4 sm:$0xff]  }
0x1541   :  { %6696 = vmatprep.subr.bf16.mxu0 %v11589_v55  ;;  %v11659_v55 = vld [vmem:[#allocation19 + $0x490] ss:$48 sps:$4 sm:$0xff]  }
0x1543   :  { %6654 = vmatpush1.bf16.msra.mxu1 %v11584_v48  ;;  %v11664_v48 = vld [vmem:[#allocation19 + $0x734] ss:$48 sps:$4 sm:$0xff]  }
0x1544   :  { %6697 = vmatpush1.bf16.msra.mxu0 %v11587_v23  ;;  %6655 = vmatprep.subr.bf16.mxu1 %v11592_v43  ;;  %v11667_v23 = vld [vmem:[#allocation19 + $0x434] ss:$48 sps:$4 sm:$0xff]   ;;  %v11662_v43 = vld [vmem:[#allocation19 + $0x730] ss:$48 sps:$4 sm:$0xff]  }
0x1545   :  { %6725 = vmatprep.subr.bf16.mxu0 %v11595_v10  ;;  %v11665_v10 = vld [vmem:[#allocation19 + $0x430] ss:$48 sps:$4 sm:$0xff]  }
0x1547   :  { %6656 = vmatpush2.bf16.msra.mxu1 %v11590_v52  ;;  %6715 = vmatmul.mubr.bf16.vlgmr.msra.gmra.mxu0 %v13429_v47  ;;  %v11670_v52 = vld [vmem:[#allocation19 + $0x6d4] ss:$48 sps:$4 sm:$0xff]  }
0x1548   :  { %6726 = vmatpush1.bf16.msra.mxu0 %v11593_v56  ;;  %6757 = vmatprep.mubr.bf16.mxu0 %v13427_v38  ;;  %v11673_v56 = vld [vmem:[#allocation19 + $0x3d4] ss:$48 sps:$4 sm:$0xff]  }
0x1549   :  { %6657 = vmatprep.subr.bf16.mxu1 %v11598_v39  ;;  %6727 = vmatprep.subr.bf16.mxu0 %v11601_v61  ;;  %v11668_v39 = vld [vmem:[#allocation19 + $0x6d0] ss:$48 sps:$4 sm:$0xff]  }
0x154a   :  { %v11671_v61 = vld [vmem:[#allocation19 + $0x3d0] ss:$48 sps:$4 sm:$0xff]  }
0x154b   :  { %6658 = vmatpush2.bf16.msra.mxu1 %v11596_v8  ;;  %v11676_v8 = vld [vmem:[#allocation19 + $0x674] ss:$48 sps:$4 sm:$0xff]  }
0x154c   :  { %6728 = vmatpush1.bf16.msra.mxu0 %v11599_v46  ;;  %6659 = vmatprep.subr.bf16.mxu1 %v11604_v17  ;;  %v11679_v46 = vld [vmem:[#allocation19 + $0x374] ss:$48 sps:$4 sm:$0xff]   ;;  %v11674_v17 = vld [vmem:[#allocation19 + $0x670] ss:$48 sps:$4 sm:$0xff]  }
0x154d   :  { %6729 = vmatprep.subr.bf16.mxu0 %v11607_v59  ;;  %v11677_v59 = vld [vmem:[#allocation19 + $0x370] ss:$48 sps:$4 sm:$0xff]  }
0x154f   :  { %6660 = vmatpush2.bf16.msra.mxu1 %v11602_v19  ;;  %v11682_v19 = vld [vmem:[#allocation19 + $0x614] ss:$48 sps:$4 sm:$0xff]  }
0x1550   :  { %6730 = vmatpush1.bf16.msra.mxu0 %v11605_v50  ;;  %6661 = vmatprep.subr.bf16.mxu1 %v11610_v63  ;;  %v11685_v50 = vld [vmem:[#allocation19 + $0x314] ss:$48 sps:$4 sm:$0xff]   ;;  %v11680_v63 = vld [vmem:[#allocation19 + $0x610] ss:$48 sps:$4 sm:$0xff]  }
0x1551   :  { %6731 = vmatprep.subr.bf16.mxu0 %v11613_v53  ;;  %v11683_v53 = vld [vmem:[#allocation19 + $0x310] ss:$48 sps:$4 sm:$0xff]  }
0x1553   :  { %6662 = vmatpush2.bf16.msra.mxu1 %v11608_v57  ;;  %v11688_v57 = vld [vmem:[#allocation19 + $0x2bc] ss:$48 sps:$4 sm:$0xff]  }
0x1554   :  { %6732 = vmatpush1.bf16.msra.mxu0 %v11611_v51  ;;  %6663 = vmatprep.subr.bf16.mxu1 %v11616_v41  ;;  %v11691_v51 = vld [vmem:[#allocation19 + $0x8bc] ss:$48 sps:$4 sm:$0xff]   ;;  %v11686_v41 = vld [vmem:[#allocation19 + $0x2b8] ss:$48 sps:$4 sm:$0xff]  }
0x1555   :  { %6733 = vmatprep.subr.bf16.mxu0 %v11619_v29  ;;  %v11689_v29 = vld [vmem:[#allocation19 + $0x8b8] ss:$48 sps:$4 sm:$0xff]  }
0x1557   :  { %6664 = vmatpush2.bf16.msra.mxu1 %v11614_v27  ;;  %v11694_v27 = vld [vmem:[#allocation19 + $0x25c] ss:$48 sps:$4 sm:$0xff]  }
0x1558   :  { %6734 = vmatpush1.bf16.msra.mxu0 %v11617_v14  ;;  %6665 = vmatprep.subr.bf16.mxu1 %v11622_v62  ;;  %v11697_v14 = vld [vmem:[#allocation19 + $0x85c] ss:$48 sps:$4 sm:$0xff]   ;;  %v11692_v62 = vld [vmem:[#allocation19 + $0x258] ss:$48 sps:$4 sm:$0xff]  }
0x1559   :  { %6735 = vmatprep.subr.bf16.mxu0 %v11625_v31  ;;  %v11695_v31 = vld [vmem:[#allocation19 + $0x858] ss:$48 sps:$4 sm:$0xff]  }
0x155b   :  { %6666 = vmatpush2.bf16.msra.mxu1 %v11620_v15  ;;  %v11700_v15 = vld [vmem:[#allocation19 + $0x1fc] ss:$48 sps:$4 sm:$0xff]  }
0x155c   :  { %6736 = vmatpush1.bf16.msra.mxu0 %v11623_v1  ;;  %6667 = vmatprep.subr.bf16.mxu1 %v11628_v2  ;;  %v11703_v1 = vld [vmem:[#allocation19 + $0x7fc] ss:$48 sps:$4 sm:$0xff]   ;;  %v11698_v2 = vld [vmem:[#allocation19 + $0x1f8] ss:$48 sps:$4 sm:$0xff]  }
0x155d   :  { %6737 = vmatprep.subr.bf16.mxu0 %v11631_v3  ;;  %v11701_v3 = vld [vmem:[#allocation19 + $0x7f8] ss:$48 sps:$4 sm:$0xff]  }
0x155f   :  { %6668 = vmatpush2.bf16.msra.mxu1 %v11626_v0  ;;  %v11706_v0 = vld [vmem:[#allocation19 + $0x19c] ss:$48 sps:$4 sm:$0xff]  }
0x1560   :  { %6738 = vmatpush1.bf16.msra.mxu0 %v11629_v4  ;;  %6669 = vmatprep.subr.bf16.mxu1 %v11634_v42  ;;  %v11709_v4 = vld [vmem:[#allocation19 + $0x79c] ss:$48 sps:$4 sm:$0xff]   ;;  %v11704_v42 = vld [vmem:[#allocation19 + $0x198] ss:$48 sps:$4 sm:$0xff]  }
0x1561   :  { %6739 = vmatprep.subr.bf16.mxu0 %v11637_v36  ;;  %v11707_v36 = vld [vmem:[#allocation19 + $0x798] ss:$48 sps:$4 sm:$0xff]  }
0x1563   :  { %6670 = vmatpush2.bf16.msra.mxu1 %v11632_v33  ;;  %v11712_v33 = vld [vmem:[#allocation19 + $0x13c] ss:$48 sps:$4 sm:$0xff]  }
0x1564   :  { %6740 = vmatpush1.bf16.msra.mxu0 %v11635_v34  ;;  %6768 = vmatprep.subr.bf16.mxu1 %v11640_v11  ;;  %v11715_v34 = vld [vmem:[#allocation19 + $0x73c] ss:$48 sps:$4 sm:$0xff]   ;;  %v11710_v11 = vld [vmem:[#allocation19 + $0x138] ss:$48 sps:$4 sm:$0xff]  }
0x1565   :  { %6741 = vmatprep.subr.bf16.mxu0 %v11643_v7  ;;  %v11713_v7 = vld [vmem:[#allocation19 + $0x738] ss:$48 sps:$4 sm:$0xff]  }
0x1566   :  { %6672 = vmatmul.mubr.bf16.vlgmr.msra.gmra.mxu1 %v13431_v18 }
0x1567   :  { %6769 = vmatpush1.bf16.msra.mxu1 %v11638_v20  ;;  %6800 = vmatprep.mubr.bf16.mxu1 %v12686_v9  ;;  %v11718_v20 = vld [vmem:[#allocation19 + $0xdc] ss:$48 sps:$4 sm:$0xff]  }
0x1568   :  { %6742 = vmatpush2.bf16.msra.mxu0 %v11641_v49  ;;  %6770 = vmatprep.subr.bf16.mxu1 %v11646_v5  ;;  %v11721_v49 = vld [vmem:[#allocation19 + $0x6dc] ss:$48 sps:$4 sm:$0xff]   ;;  %v11716_v5 = vld [vmem:[#allocation19 + $0xd8] ss:$48 sps:$4 sm:$0xff]  }
0x1569   :  { %6743 = vmatprep.subr.bf16.mxu0 %v11649_v21  ;;  %v11719_v21 = vld [vmem:[#allocation19 + $0x6d8] ss:$48 sps:$4 sm:$0xff]  }
0x156b   :  { %6771 = vmatpush1.bf16.msra.mxu1 %v11644_v16  ;;  %v11724_v16 = vld [vmem:[#allocation19 + $0x7c] ss:$48 sps:$4 sm:$0xff]  }
0x156c   :  { %6744 = vmatpush2.bf16.msra.mxu0 %v11647_v54  ;;  %6772 = vmatprep.subr.bf16.mxu1 %v11652_v44  ;;  %v11727_v54 = vld [vmem:[#allocation19 + $0x67c] ss:$48 sps:$4 sm:$0xff]   ;;  %v11722_v44 = vld [vmem:[#allocation19 + $0x78] ss:$48 sps:$4 sm:$0xff]  }
0x156d   :  { %6745 = vmatprep.subr.bf16.mxu0 %v11655_v22  ;;  %v11725_v22 = vld [vmem:[#allocation19 + $0x678] ss:$48 sps:$4 sm:$0xff]  }
0x156f   :  { %6773 = vmatpush1.bf16.msra.mxu1 %v11650_v35  ;;  %v11730_v35 = vld [vmem:[#allocation19 + $0x1c] ss:$48 sps:$4 sm:$0xff]  }
0x1570   :  { %6746 = vmatpush2.bf16.msra.mxu0 %v11653_v12  ;;  %6774 = vmatprep.subr.bf16.mxu1 %v11658_v60  ;;  %v11733_v12 = vld [vmem:[#allocation19 + $0x61c] ss:$48 sps:$4 sm:$0xff]   ;;  %v11728_v60 = vld [vmem:[#allocation19 + $0x18] ss:$48 sps:$4 sm:$0xff]  }
0x1571   :  { %6747 = vmatprep.subr.bf16.mxu0 %v11661_v32  ;;  %v11731_v32 = vld [vmem:[#allocation19 + $0x618] ss:$48 sps:$4 sm:$0xff]  }
0x1573   :  { %6775 = vmatpush1.bf16.msra.mxu1 %v11656_v30  ;;  %v11736_v30 = vld [vmem:[#allocation19 + $0x5bc] ss:$48 sps:$4 sm:$0xff]  }
0x1574   :  { %6748 = vmatpush2.bf16.msra.mxu0 %v11659_v55  ;;  %6776 = vmatprep.subr.bf16.mxu1 %v11664_v48  ;;  %v11739_v55 = vld [vmem:[#allocation19 + $0x2c4] ss:$48 sps:$4 sm:$0xff]   ;;  %v11734_v48 = vld [vmem:[#allocation19 + $0x5b8] ss:$48 sps:$4 sm:$0xff]  }
0x1575   :  { %6749 = vmatprep.subr.bf16.mxu0 %v11667_v23  ;;  %v11737_v23 = vld [vmem:[#allocation19 + $0x2c0] ss:$48 sps:$4 sm:$0xff]  }
0x1577   :  { %6777 = vmatpush1.bf16.msra.mxu1 %v11662_v43  ;;  %v11742_v43 = vld [vmem:[#allocation19 + $0x55c] ss:$48 sps:$4 sm:$0xff]  }
0x1578   :  { %6750 = vmatpush2.bf16.msra.mxu0 %v11665_v10  ;;  %6778 = vmatprep.subr.bf16.mxu1 %v11670_v52  ;;  %v11745_v10 = vld [vmem:[#allocation19 + $0x264] ss:$48 sps:$4 sm:$0xff]   ;;  %v11740_v52 = vld [vmem:[#allocation19 + $0x558] ss:$48 sps:$4 sm:$0xff]  }
0x1579   :  { %6751 = vmatprep.subr.bf16.mxu0 %v11673_v56  ;;  %v11743_v56 = vld [vmem:[#allocation19 + $0x260] ss:$48 sps:$4 sm:$0xff]  }
0x157b   :  { %6779 = vmatpush1.bf16.msra.mxu1 %v11668_v39  ;;  %v11748_v39 = vld [vmem:[#allocation19 + $0x4fc] ss:$48 sps:$4 sm:$0xff]  }
0x157c   :  { %6752 = vmatpush2.bf16.msra.mxu0 %v11671_v61  ;;  %6780 = vmatprep.subr.bf16.mxu1 %v11676_v8  ;;  %v11751_v61 = vld [vmem:[#allocation19 + $0x204] ss:$48 sps:$4 sm:$0xff]   ;;  %v11746_v8 = vld [vmem:[#allocation19 + $0x4f8] ss:$48 sps:$4 sm:$0xff]  }
0x157d   :  { %6753 = vmatprep.subr.bf16.mxu0 %v11679_v46  ;;  %v11749_v46 = vld [vmem:[#allocation19 + $0x200] ss:$48 sps:$4 sm:$0xff]  }
0x157f   :  { %6781 = vmatpush1.bf16.msra.mxu1 %v11674_v17  ;;  %v11754_v17 = vld [vmem:[#allocation19 + $0x49c] ss:$48 sps:$4 sm:$0xff]  }
0x1580   :  { %6754 = vmatpush2.bf16.msra.mxu0 %v11677_v59  ;;  %6782 = vmatprep.subr.bf16.mxu1 %v11682_v19  ;;  %v11757_v59 = vld [vmem:[#allocation19 + $0x1a4] ss:$48 sps:$4 sm:$0xff]   ;;  %v11752_v19 = vld [vmem:[#allocation19 + $0x498] ss:$48 sps:$4 sm:$0xff]  }
0x1581   :  { %6755 = vmatprep.subr.bf16.mxu0 %v11685_v50  ;;  %v11755_v50 = vld [vmem:[#allocation19 + $0x1a0] ss:$48 sps:$4 sm:$0xff]  }
0x1583   :  { %6783 = vmatpush1.bf16.msra.mxu1 %v11680_v63  ;;  %v11760_v63 = vld [vmem:[#allocation19 + $0x43c] ss:$48 sps:$4 sm:$0xff]  }
0x1584   :  { %6756 = vmatpush2.bf16.msra.mxu0 %v11683_v53  ;;  %6811 = vmatprep.subr.bf16.mxu1 %v11688_v57  ;;  %v11763_v53 = vld [vmem:[#allocation19 + $0x144] ss:$48 sps:$4 sm:$0xff]   ;;  %v11758_v57 = vld [vmem:[#allocation19 + $0x438] ss:$48 sps:$4 sm:$0xff]  }
0x1585   :  { %6854 = vmatprep.subr.bf16.mxu0 %v11691_v51  ;;  %v11761_v51 = vld [vmem:[#allocation19 + $0x140] ss:$48 sps:$4 sm:$0xff]  }
0x1586   :  { %6801 = vmatmul.mubr.bf16.vlgmr.msra.gmra.mxu1 %v13429_v47 }
0x1587   :  { %6758 = vmatmul.mubr.bf16.vlgmr.msra.gmra.mxu0 %v13431_v18  ;;  %6812 = vmatpush1.bf16.msra.mxu1 %v11686_v41  ;;  %v11766_v41 = vld [vmem:[#allocation19 + $0x3dc] ss:$48 sps:$4 sm:$0xff]  }
0x1588   :  { %6843 = vmatprep.mubr.bf16.mxu1 %v13427_v38  ;;  %6855 = vmatpush1.bf16.msra.mxu0 %v11689_v29  ;;  %v11769_v29 = vld [vmem:[#allocation19 + $0xe4] ss:$48 sps:$4 sm:$0xff]  }
0x1589   :  { %6813 = vmatprep.subr.bf16.mxu1 %v11694_v27  ;;  %6856 = vmatprep.subr.bf16.mxu0 %v11697_v14  ;;  %v11764_v27 = vld [vmem:[#allocation19 + $0x3d8] ss:$48 sps:$4 sm:$0xff]   ;;  %v11767_v14 = vld [vmem:[#allocation19 + $0xe0] ss:$48 sps:$4 sm:$0xff]  }
0x158a   :  { %6886 = vmatprep.mubr.bf16.mxu0 %v12686_v9 }
0x158b   :  { %6814 = vmatpush1.bf16.msra.mxu1 %v11692_v62  ;;  %v11772_v62 = vld [vmem:[#allocation19 + $0x37c] ss:$48 sps:$4 sm:$0xff]  }
0x158c   :  { %6857 = vmatpush1.bf16.msra.mxu0 %v11695_v31  ;;  %6815 = vmatprep.subr.bf16.mxu1 %v11700_v15  ;;  %v11775_v31 = vld [vmem:[#allocation19 + $0x84] ss:$48 sps:$4 sm:$0xff]   ;;  %v11770_v15 = vld [vmem:[#allocation19 + $0x378] ss:$48 sps:$4 sm:$0xff]  }
0x158d   :  { %6858 = vmatprep.subr.bf16.mxu0 %v11703_v1  ;;  %v11773_v1 = vld [vmem:[#allocation19 + $0x80] ss:$48 sps:$4 sm:$0xff]  }
0x158f   :  { %6816 = vmatpush1.bf16.msra.mxu1 %v11698_v2  ;;  %v11778_v2 = vld [vmem:[#allocation19 + $0x31c] ss:$48 sps:$4 sm:$0xff]  }
0x1590   :  { %6859 = vmatpush1.bf16.msra.mxu0 %v11701_v3  ;;  %6817 = vmatprep.subr.bf16.mxu1 %v11706_v0  ;;  %v11781_v3 = vld [vmem:[#allocation19 + $0x24] ss:$48 sps:$4 sm:$0xff]   ;;  %v11776_v0 = vld [vmem:[#allocation19 + $0x318] ss:$48 sps:$4 sm:$0xff]  }
0x1591   :  { %6860 = vmatprep.subr.bf16.mxu0 %v11709_v4  ;;  %v11779_v4 = vld [vmem:[#allocation19 + $0x20] ss:$48 sps:$4 sm:$0xff]  }
0x1593   :  { %6818 = vmatpush1.bf16.msra.mxu1 %v11704_v42  ;;  %v11784_v42 = vld [vmem:[#allocation19 + $0x8c4] ss:$48 sps:$4 sm:$0xff]  }
0x1594   :  { %6861 = vmatpush1.bf16.msra.mxu0 %v11707_v36  ;;  %6819 = vmatprep.subr.bf16.mxu1 %v11712_v33  ;;  %v11787_v36 = vld [vmem:[#allocation19 + $0x5c4] ss:$48 sps:$4 sm:$0xff]   ;;  %v11782_v33 = vld [vmem:[#allocation19 + $0x8c0] ss:$48 sps:$4 sm:$0xff]  }
0x1595   :  { %6862 = vmatprep.subr.bf16.mxu0 %v11715_v34  ;;  %v11785_v34 = vld [vmem:[#allocation19 + $0x5c0] ss:$48 sps:$4 sm:$0xff]  }
0x1597   :  { %6820 = vmatpush1.bf16.msra.mxu1 %v11710_v11  ;;  %v11790_v11 = vld [vmem:[#allocation19 + $0x864] ss:$48 sps:$4 sm:$0xff]  }
0x1598   :  { %6863 = vmatpush1.bf16.msra.mxu0 %v11713_v7  ;;  %6821 = vmatprep.subr.bf16.mxu1 %v11718_v20  ;;  %v11793_v7 = vld [vmem:[#allocation19 + $0x564] ss:$48 sps:$4 sm:$0xff]   ;;  %v11788_v20 = vld [vmem:[#allocation19 + $0x860] ss:$48 sps:$4 sm:$0xff]  }
0x1599   :  { %6864 = vmatprep.subr.bf16.mxu0 %v11721_v49  ;;  %v11791_v49 = vld [vmem:[#allocation19 + $0x560] ss:$48 sps:$4 sm:$0xff]  }
0x159b   :  { %6822 = vmatpush1.bf16.msra.mxu1 %v11716_v5  ;;  %v11796_v5 = vld [vmem:[#allocation19 + $0x804] ss:$48 sps:$4 sm:$0xff]  }
0x159c   :  { %6865 = vmatpush1.bf16.msra.mxu0 %v11719_v21  ;;  %6823 = vmatprep.subr.bf16.mxu1 %v11724_v16  ;;  %v11799_v21 = vld [vmem:[#allocation19 + $0x504] ss:$48 sps:$4 sm:$0xff]   ;;  %v11794_v16 = vld [vmem:[#allocation19 + $0x800] ss:$48 sps:$4 sm:$0xff]  }
0x159d   :  { %6866 = vmatprep.subr.bf16.mxu0 %v11727_v54  ;;  %v11797_v54 = vld [vmem:[#allocation19 + $0x500] ss:$48 sps:$4 sm:$0xff]  }
0x159f   :  { %6824 = vmatpush1.bf16.msra.mxu1 %v11722_v44  ;;  %v11802_v44 = vld [vmem:[#allocation19 + $0x7a4] ss:$48 sps:$4 sm:$0xff]  }
0x15a0   :  { %6867 = vmatpush1.bf16.msra.mxu0 %v11725_v22  ;;  %6825 = vmatprep.subr.bf16.mxu1 %v11730_v35  ;;  %v11805_v22 = vld [vmem:[#allocation19 + $0x4a4] ss:$48 sps:$4 sm:$0xff]   ;;  %v11800_v35 = vld [vmem:[#allocation19 + $0x7a0] ss:$48 sps:$4 sm:$0xff]  }
0x15a1   :  { %6868 = vmatprep.subr.bf16.mxu0 %v11733_v12  ;;  %v11803_v12 = vld [vmem:[#allocation19 + $0x4a0] ss:$48 sps:$4 sm:$0xff]  }
0x15a3   :  { %6826 = vmatpush1.bf16.msra.mxu1 %v11728_v60  ;;  %v11808_v60 = vld [vmem:[#allocation19 + $0x744] ss:$48 sps:$4 sm:$0xff]  }
0x15a4   :  { %6869 = vmatpush1.bf16.msra.mxu0 %v11731_v32  ;;  %6827 = vmatprep.subr.bf16.mxu1 %v11736_v30  ;;  %v11811_v32 = vld [vmem:[#allocation19 + $0x444] ss:$48 sps:$4 sm:$0xff]   ;;  %v11806_v30 = vld [vmem:[#allocation19 + $0x740] ss:$48 sps:$4 sm:$0xff]  }
0x15a5   :  { %6897 = vmatprep.subr.bf16.mxu0 %v11739_v55  ;;  %v11809_v55 = vld [vmem:[#allocation19 + $0x440] ss:$48 sps:$4 sm:$0xff]  }
0x15a7   :  { %6828 = vmatpush2.bf16.msra.mxu1 %v11734_v48  ;;  %6887 = vmatmul.mubr.bf16.vlgmr.msra.gmra.mxu0 %v13429_v47  ;;  %v11814_v48 = vld [vmem:[#allocation19 + $0x6e4] ss:$48 sps:$4 sm:$0xff]  }
0x15a8   :  { %6898 = vmatpush1.bf16.msra.mxu0 %v11737_v23  ;;  %6929 = vmatprep.mubr.bf16.mxu0 %v13427_v38  ;;  %v11817_v23 = vld [vmem:[#allocation19 + $0x3e4] ss:$48 sps:$4 sm:$0xff]  }
0x15a9   :  { %6829 = vmatprep.subr.bf16.mxu1 %v11742_v43  ;;  %6899 = vmatprep.subr.bf16.mxu0 %v11745_v10  ;;  %v11812_v43 = vld [vmem:[#allocation19 + $0x6e0] ss:$48 sps:$4 sm:$0xff]  }
0x15aa   :  { %v11815_v10 = vld [vmem:[#allocation19 + $0x3e0] ss:$48 sps:$4 sm:$0xff]  }
0x15ab   :  { %6830 = vmatpush2.bf16.msra.mxu1 %v11740_v52  ;;  %v11820_v52 = vld [vmem:[#allocation19 + $0x684] ss:$48 sps:$4 sm:$0xff]  }
0x15ac   :  { %6900 = vmatpush1.bf16.msra.mxu0 %v11743_v56  ;;  %6831 = vmatprep.subr.bf16.mxu1 %v11748_v39  ;;  %v11823_v56 = vld [vmem:[#allocation19 + $0x384] ss:$48 sps:$4 sm:$0xff]   ;;  %v11818_v39 = vld [vmem:[#allocation19 + $0x680] ss:$48 sps:$4 sm:$0xff]  }
0x15ad   :  { %6901 = vmatprep.subr.bf16.mxu0 %v11751_v61  ;;  %v11821_v61 = vld [vmem:[#allocation19 + $0x380] ss:$48 sps:$4 sm:$0xff]  }
0x15af   :  { %6832 = vmatpush2.bf16.msra.mxu1 %v11746_v8  ;;  %v11826_v8 = vld [vmem:[#allocation19 + $0x624] ss:$48 sps:$4 sm:$0xff]  }
0x15b0   :  { %6902 = vmatpush1.bf16.msra.mxu0 %v11749_v46  ;;  %6833 = vmatprep.subr.bf16.mxu1 %v11754_v17  ;;  %v11829_v46 = vld [vmem:[#allocation19 + $0x324] ss:$48 sps:$4 sm:$0xff]   ;;  %v11824_v17 = vld [vmem:[#allocation19 + $0x620] ss:$48 sps:$4 sm:$0xff]  }
0x15b1   :  { %6903 = vmatprep.subr.bf16.mxu0 %v11757_v59  ;;  %v11827_v59 = vld [vmem:[#allocation19 + $0x320] ss:$48 sps:$4 sm:$0xff]  }
0x15b3   :  { %6834 = vmatpush2.bf16.msra.mxu1 %v11752_v19  ;;  %v11832_v19 = vld [vmem:[#allocation19 + $0x2cc] ss:$48 sps:$4 sm:$0xff]  }
0x15b4   :  { %6904 = vmatpush1.bf16.msra.mxu0 %v11755_v50  ;;  %6835 = vmatprep.subr.bf16.mxu1 %v11760_v63  ;;  %v11835_v50 = vld [vmem:[#allocation19 + $0x8cc] ss:$48 sps:$4 sm:$0xff]   ;;  %v13450_v63 = vld [vmem:[#allocation20] sm:$0xff] }
0x15b5   :  { %6905 = vmatprep.subr.bf16.mxu0 %v11763_v53  ;;  %v11830_v53 = vld [vmem:[#allocation19 + $0x2c8] ss:$48 sps:$4 sm:$0xff]  }
0x15b7   :  { %6836 = vmatpush2.bf16.msra.mxu1 %v11758_v57  ;;  %v11833_v57 = vld [vmem:[#allocation19 + $0x8c8] ss:$48 sps:$4 sm:$0xff]  }
0x15b8   :  { %6906 = vmatpush1.bf16.msra.mxu0 %v11761_v51  ;;  %6837 = vmatprep.subr.bf16.mxu1 %v11766_v41  ;;  %v5056_v51 = vrot.slane %v13450_v63, %v12862_v28  ;;  %v11838_v41 = vld [vmem:[#allocation19 + $0x26c] ss:$48 sps:$4 sm:$0xff]  }
0x15b9   :  { %6907 = vmatprep.subr.bf16.mxu0 %v11769_v29  ;;  %v11841_v29 = vld [vmem:[#allocation19 + $0x86c] ss:$48 sps:$4 sm:$0xff]  }
0x15bb   :  { %6838 = vmatpush2.bf16.msra.mxu1 %v11764_v27 }
0x15bc   :  { %6908 = vmatpush1.bf16.msra.mxu0 %v11767_v14  ;;  %6839 = vmatprep.subr.bf16.mxu1 %v11772_v62  ;;  %v11836_v62 = vld [vmem:[#allocation19 + $0x268] ss:$48 sps:$4 sm:$0xff]  }
0x15bd   :  { %6909 = vmatprep.subr.bf16.mxu0 %v11775_v31 }
0x15bf   :  { %6840 = vmatpush2.bf16.msra.mxu1 %v11770_v15  ;;  %v11839_v15 = vld [vmem:[#allocation19 + $0x868] ss:$48 sps:$4 sm:$0xff]  }
0x15c0   :  { %6910 = vmatpush1.bf16.msra.mxu0 %v11773_v1  ;;  %6841 = vmatprep.subr.bf16.mxu1 %v11778_v2  ;;  %v11844_v1 = vld [vmem:[#allocation19 + $0x20c] ss:$48 sps:$4 sm:$0xff]  }
0x15c1   :  { %6911 = vmatprep.subr.bf16.mxu0 %v11781_v3 }
0x15c3   :  { %6842 = vmatpush2.bf16.msra.mxu1 %v11776_v0  ;;  %v11847_v0 = vld [vmem:[#allocation19 + $0x80c] ss:$48 sps:$4 sm:$0xff]  }
0x15c4   :  { %6912 = vmatpush1.bf16.msra.mxu0 %v11779_v4  ;;  %6940 = vmatprep.subr.bf16.mxu1 %v11784_v42 }
0x15c5   :  { %6913 = vmatprep.subr.bf16.mxu0 %v11787_v36  ;;  %v11842_v36 = vld [vmem:[#allocation19 + $0x208] ss:$48 sps:$4 sm:$0xff]  }
0x15c6   :  { %6844 = vmatmul.mubr.bf16.vlgmr.msra.gmra.mxu1 %v13431_v18 }
0x15c7   :  { %6941 = vmatpush1.bf16.msra.mxu1 %v11782_v33  ;;  %6972 = vmatprep.mubr.bf16.mxu1 %v12686_v9 }
0x15c8   :  { %6914 = vmatpush2.bf16.msra.mxu0 %v11785_v34  ;;  %6942 = vmatprep.subr.bf16.mxu1 %v11790_v11  ;;  %v11845_v34 = vld [vmem:[#allocation19 + $0x808] ss:$48 sps:$4 sm:$0xff]  }
0x15c9   :  { %6915 = vmatprep.subr.bf16.mxu0 %v11793_v7  ;;  %v11853_v7 = vld [vmem:[#allocation19 + $0x7ac] ss:$48 sps:$4 sm:$0xff]  }
0x15cb   :  { %6943 = vmatpush1.bf16.msra.mxu1 %v11788_v20 }
0x15cc   :  { %6916 = vmatpush2.bf16.msra.mxu0 %v11791_v49  ;;  %6944 = vmatprep.subr.bf16.mxu1 %v11796_v5  ;;  %v11848_v49 = vld [vmem:[#allocation19 + $0x1a8] ss:$48 sps:$4 sm:$0xff]  }
0x15cd   :  { %6917 = vmatprep.subr.bf16.mxu0 %v11799_v21 }
0x15cf   :  { %6945 = vmatpush1.bf16.msra.mxu1 %v11794_v16  ;;  %v11851_v16 = vld [vmem:[#allocation19 + $0x7a8] ss:$48 sps:$4 sm:$0xff]  }
0x15d0   :  { %6918 = vmatpush2.bf16.msra.mxu0 %v11797_v54  ;;  %6946 = vmatprep.subr.bf16.mxu1 %v11802_v44  ;;  %v11859_v54 = vld [vmem:[#allocation19 + $0x74c] ss:$48 sps:$4 sm:$0xff]  }
0x15d1   :  { %6919 = vmatprep.subr.bf16.mxu0 %v11805_v22  ;;  %v11854_v22 = vld [vmem:[#allocation19 + $0x148] ss:$48 sps:$4 sm:$0xff]  }
0x15d3   :  { %6947 = vmatpush1.bf16.msra.mxu1 %v11800_v35  ;;  %v11857_v35 = vld [vmem:[#allocation19 + $0x748] ss:$48 sps:$4 sm:$0xff]  }
0x15d4   :  { %6920 = vmatpush2.bf16.msra.mxu0 %v11803_v12  ;;  %6948 = vmatprep.subr.bf16.mxu1 %v11808_v60  ;;  %v11862_v12 = vld [vmem:[#allocation19 + $0xec] ss:$48 sps:$4 sm:$0xff]  }
0x15d5   :  { %6921 = vmatprep.subr.bf16.mxu0 %v11811_v32  ;;  %v11865_v60 = vld [vmem:[#allocation19 + $0x6ec] ss:$48 sps:$4 sm:$0xff]  }
0x15d7   :  { %6949 = vmatpush1.bf16.msra.mxu1 %v11806_v30  ;;  %v11860_v30 = vld [vmem:[#allocation19 + $0xe8] ss:$48 sps:$4 sm:$0xff]  }
0x15d8   :  { %6922 = vmatpush2.bf16.msra.mxu0 %v11809_v55  ;;  %6950 = vmatprep.subr.bf16.mxu1 %v11814_v48  ;;  %v5060_v55 = vrot.slane %v13450_v63, %v12856_v25  ;;  %v11863_v48 = vld [vmem:[#allocation19 + $0x6e8] ss:$48 sps:$4 sm:$0xff]  }
0x15d9   :  { %6923 = vmatprep.subr.bf16.mxu0 %v11817_v23  ;;  %v11868_v23 = vld [vmem:[#allocation19 + $0x8c] ss:$48 sps:$4 sm:$0xff]  }
0x15db   :  { %6951 = vmatpush1.bf16.msra.mxu1 %v11812_v43  ;;  %v11871_v43 = vld [vmem:[#allocation19 + $0x68c] ss:$48 sps:$4 sm:$0xff]  }
0x15dc   :  { %6924 = vmatpush2.bf16.msra.mxu0 %v11815_v10  ;;  %6952 = vmatprep.subr.bf16.mxu1 %v11820_v52  ;;  %v11866_v52 = vld [vmem:[#allocation19 + $0x88] ss:$48 sps:$4 sm:$0xff]  }
0x15dd   :  { %6925 = vmatprep.subr.bf16.mxu0 %v11823_v56 }
0x15df   :  { %6953 = vmatpush1.bf16.msra.mxu1 %v11818_v39  ;;  %v11869_v39 = vld [vmem:[#allocation19 + $0x688] ss:$48 sps:$4 sm:$0xff]  }
0x15e0   :  { %6926 = vmatpush2.bf16.msra.mxu0 %v11821_v61  ;;  %6954 = vmatprep.subr.bf16.mxu1 %v11826_v8  ;;  %v11874_v61 = vld [vmem:[#allocation19 + $0x2c] ss:$48 sps:$4 sm:$0xff]  }
0x15e1   :  { %6927 = vmatprep.subr.bf16.mxu0 %v11829_v46  ;;  %v11877_v46 = vld [vmem:[#allocation19 + $0x62c] ss:$48 sps:$4 sm:$0xff]  }
0x15e3   :  { %6955 = vmatpush1.bf16.msra.mxu1 %v11824_v17 }
0x15e4   :  { %6928 = vmatpush2.bf16.msra.mxu0 %v11827_v59  ;;  %6983 = vmatprep.subr.bf16.mxu1 %v11832_v19  ;;  %v11872_v59 = vld [vmem:[#allocation19 + $0x28] ss:$48 sps:$4 sm:$0xff]  }
0x15e5   :  { %7026 = vmatprep.subr.bf16.mxu0 %v11835_v50  ;;  %v11875_v50 = vld [vmem:[#allocation19 + $0x628] ss:$48 sps:$4 sm:$0xff]  }
0x15e6   :  { %6973 = vmatmul.mubr.bf16.vlgmr.msra.gmra.mxu1 %v13429_v47  ;;  %v6630_v27 = vpop.f32.mrf.mxu1 }
0x15e7   :  { %6930 = vmatmul.mubr.bf16.vlgmr.msra.gmra.mxu0 %v13431_v18  ;;  %6984 = vmatpush1.bf16.msra.mxu1 %v11830_v53  ;;  %v6587_v14 = vpop.f32.mrf.mxu0  ;;  %v11880_v53 = vld [vmem:[#allocation19 + $0x5cc] ss:$48 sps:$4 sm:$0xff]  }
0x15e8   :  { %7015 = vmatprep.mubr.bf16.mxu1 %v13427_v38  ;;  %v6588_v31 = vadd.f32 %v6587_v14, %v5056_v51  ;;  %7027 = vmatpush1.bf16.msra.mxu0 %v11833_v57  ;;  %v6632_v2 = vpop.f32.mrf.mxu1  ;;  %v11850_v38 = vld [vmem:[#allocation19 + $0x1ac] ss:$48 sps:$4 sm:$0xff]   ;;  %v11883_v57 = vld [vmem:[#allocation22 + $0xac] ss:$12 sps:$4 sm:$0xff]  }
0x15e9   :  { %v6589_v3 = vpop.f32.mrf.mxu0  ;;  %6985 = vmatprep.subr.bf16.mxu1 %v11838_v41  ;;  %7028 = vmatprep.subr.bf16.mxu0 %v11841_v29  ;;  %v11878_v41 = vld [vmem:[#allocation19 + $0x5c8] ss:$48 sps:$4 sm:$0xff]   ;;  %v11886_v14 = vld [vmem:[#allocation19 + $0x56c] ss:$48 sps:$4 sm:$0xff]  }
0x15ea   :  { %v6631_v4 = vadd.f32 %v6630_v27, %v6588_v31  ;;  %7058 = vmatprep.mubr.bf16.mxu0 %v12686_v9  ;;  %v6634_v11 = vpop.f32.mrf.mxu1  ;;  %v11856_v9 = vld [vmem:[#allocation19 + $0x14c] ss:$48 sps:$4 sm:$0xff]   ;;  %v6590_v56 = vadd.f32 %v6589_v3, %v5060_v55  ;;  %v11881_v27 = vld [vmem:[#allocation22 + $0xa8] ss:$12 sps:$4 sm:$0xff]  }
0x15eb   :  { %6986 = vmatpush1.bf16.msra.mxu1 %v11836_v62  ;;  %v6591_v42 = vpop.f32.mrf.mxu0  ;;  %v11889_v62 = vld [vmem:[#allocation22 + $0x94] ss:$12 sps:$4 sm:$0xff]   ;;  %v11895_v3 = vld [vmem:[#allocation22 + $0x7c] ss:$12 sps:$4 sm:$0xff]  }
0x15ec   :  { %v6592_v33 = vadd.f32 %v6591_v42, %v5056_v51  ;;  %7029 = vmatpush1.bf16.msra.mxu0 %v11839_v15  ;;  %6987 = vmatprep.subr.bf16.mxu1 %v11844_v1  ;;  %v7069_v5 = vmax.f32 %v6631_v4, 0.0  ;;  %v6636_v8 = vpop.f32.mrf.mxu1  ;;  %v6633_v19 = vadd.f32 %v6632_v2, %v6590_v56  ;;  %v11884_v15 = vld [vmem:[#allocation19 + $0x568] ss:$48 sps:$4 sm:$0xff]   ;;  %v11892_v2 = vld [vmem:[#allocation19 + $0x50c] ss:$48 sps:$4 sm:$0xff]  }
0x15ed   :  { %7030 = vmatprep.subr.bf16.mxu0 %v11847_v0  ;;  %v6593_v32 = vpop.f32.mrf.mxu0  ;;  %v11887_v1 = vld [vmem:[#allocation22 + $0x90] ss:$12 sps:$4 sm:$0xff]   ;;  %v11893_v4 = vld [vmem:[#allocation22 + $0x78] ss:$12 sps:$4 sm:$0xff]  }
0x15ee   :  { %v6635_v20 = vadd.f32 %v6634_v11, %v6592_v33  ;;  %v6594_v10 = vadd.f32 %v6593_v32, %v5060_v55  ;;  %v7070_v29 = vmax.f32 %v6633_v19, 0.0  ;;  %v11890_v0 = vld [vmem:[#allocation19 + $0x508] ss:$48 sps:$4 sm:$0xff]   ;;  %v11898_v42 = vld [vmem:[#allocation19 + $0x4ac] ss:$48 sps:$4 sm:$0xff]  }
0x15ef   :  { %6988 = vmatpush1.bf16.msra.mxu1 %v11842_v36  ;;  %v11901_v36 = vld [vmem:[#allocation22 + $0x64] ss:$12 sps:$4 sm:$0xff]   ;;  %v11896_v33 = vld [vmem:[#allocation19 + $0x4a8] ss:$48 sps:$4 sm:$0xff]  }
0x15f0   :  { %v7081_v21 = vmax.f32 %v6635_v20, 0.0  ;;  %7031 = vmatpush1.bf16.msra.mxu0 %v11845_v34  ;;  %6989 = vmatprep.subr.bf16.mxu1 %v11850_v38  ;;  %v6637_v17 = vadd.f32 %v6636_v8, %v6594_v10  ;;  %v11904_v34 = vld [vmem:[#allocation19 + $0x44c] ss:$48 sps:$4 sm:$0xff]   ;;  %v11907_v38 = vld [vmem:[#allocation22 + $0x4c] ss:$12 sps:$4 sm:$0xff]  }
0x15f1   :  { %7032 = vmatprep.subr.bf16.mxu0 %v11853_v7  ;;  %v11902_v11 = vld [vmem:[#allocation19 + $0x448] ss:$48 sps:$4 sm:$0xff]   ;;  %v11905_v7 = vld [vmem:[#allocation22 + $0x48] ss:$12 sps:$4 sm:$0xff]   ;;  %v11910_v20 = vld [vmem:[#allocation19 + $0x3ec] ss:$48 sps:$4 sm:$0xff]  }
0x15f2   :  { %v13458_v44 = vpack.c.bf16 %v7081_v21, %v7069_v5  ;;  %v7082_v51 = vmax.f32 %v6637_v17, 0.0  ;;  %v11908_v5 = vld [vmem:[#allocation19 + $0x3e8] ss:$48 sps:$4 sm:$0xff]   ;;  %v11929_v10 = vld [vmem:[#allocation22 + $0x168] ss:$12 sps:$4 sm:$0xff]  }
0x15f3   :  { %6990 = vmatpush1.bf16.msra.mxu1 %v11848_v49  ;;  %v11913_v49 = vld [vmem:[#allocation22 + $0x34] ss:$12 sps:$4 sm:$0xff]   ;;  %v11911_v21 = vld [vmem:[#allocation22 + $0x30] ss:$12 sps:$4 sm:$0xff]   ;;  %v11931_v55 = vld [vmem:[#allocation22 + $0x16c] ss:$12 sps:$4 sm:$0xff]  }
0x15f4   :  { %7033 = vmatpush1.bf16.msra.mxu0 %v11851_v16  ;;  %6991 = vmatprep.subr.bf16.mxu1 %v11856_v9  ;;  %v13462_v31 = vpack.c.bf16 %v7082_v51, %v7070_v29  ;;  %v11916_v16 = vld [vmem:[#allocation19 + $0x38c] ss:$48 sps:$4 sm:$0xff]   ;;  %v11919_v9 = vld [vmem:[#allocation22 + $0x1c] ss:$12 sps:$4 sm:$0xff]  }
0x15f5   :  { %7034 = vmatprep.subr.bf16.mxu0 %v11859_v54  ;;  %v11914_v54 = vld [vmem:[#allocation19 + $0x388] ss:$48 sps:$4 sm:$0xff]  }
0x15f6   :  { %v11923_v32 = vld [vmem:[#allocation22] ss:$12 sps:$4 sm:$0xff]   ;;  %v11940_v19 = vld [vmem:[#allocation22 + $0x1fc] ss:$12 sps:$4 sm:$0xff]  }
0x15f7   :  { %6992 = vmatpush1.bf16.msra.mxu1 %v11854_v22  ;;  %v11917_v22 = vld [vmem:[#allocation22 + $0x18] ss:$12 sps:$4 sm:$0xff]  }
0x15f8   :  { %7035 = vmatpush1.bf16.msra.mxu0 %v11857_v35  ;;  %6993 = vmatprep.subr.bf16.mxu1 %v11862_v12  ;;  %v11922_v35 = vld [vmem:[#allocation19 + $0x32c] ss:$48 sps:$4 sm:$0xff]  }
0x15f9   :  { %7036 = vmatprep.subr.bf16.mxu0 %v11865_v60  ;;  %v11925_v12 = vld [vmem:[#allocation22 + $0x4] ss:$12 sps:$4 sm:$0xff]   ;;  %v11920_v60 = vld [vmem:[#allocation19 + $0x328] ss:$48 sps:$4 sm:$0xff]  }
0x15fb   :  { %6994 = vmatpush1.bf16.msra.mxu1 %v11860_v30  ;;  %v11928_v30 = vld [vmem:[#allocation22 + $0x22c] ss:$12 sps:$4 sm:$0xff]  }
0x15fc   :  { %7037 = vmatpush1.bf16.msra.mxu0 %v11863_v48  ;;  %6995 = vmatprep.subr.bf16.mxu1 %v11868_v23  ;;  %v5067_v48 = vsub.s32 3, %v12853_v24 }
0x15fd   :  { %7038 = vmatprep.subr.bf16.mxu0 %v11871_v43  ;;  %v11926_v43 = vld [vmem:[#allocation22 + $0x228] ss:$12 sps:$4 sm:$0xff]  }
0x15fe   :  { %v5068_v56 = vrot.slane %v13450_v63, %v5067_v48 }
0x15ff   :  { %6996 = vmatpush1.bf16.msra.mxu1 %v11866_v52  ;;  %v11934_v52 = vld [vmem:[#allocation22 + $0x214] ss:$12 sps:$4 sm:$0xff]  }
0x1600   :  { %7039 = vmatpush1.bf16.msra.mxu0 %v11869_v39  ;;  %6997 = vmatprep.subr.bf16.mxu1 %v11874_v61  ;;  %v11937_v39 = vld [vmem:[#allocation22 + $0x154] ss:$12 sps:$4 sm:$0xff]  }
0x1601   :  { %7040 = vmatprep.subr.bf16.mxu0 %v11877_v46  ;;  %v11932_v46 = vld [vmem:[#allocation22 + $0x210] ss:$12 sps:$4 sm:$0xff]  }
0x1603   :  { %6998 = vmatpush1.bf16.msra.mxu1 %v11872_v59  ;;  %v11935_v59 = vld [vmem:[#allocation22 + $0x150] ss:$12 sps:$4 sm:$0xff]  }
0x1604   :  { %7041 = vmatpush1.bf16.msra.mxu0 %v11875_v50  ;;  %6999 = vmatprep.subr.bf16.mxu1 %v11880_v53  ;;  %v11943_v53 = vld [vmem:[#allocation22 + $0x13c] ss:$12 sps:$4 sm:$0xff]  }
0x1605   :  { %9042 = vmatprep.subr.bf16.mxu0 %v11883_v57 }
0x1607   :  { %7000 = vmatpush2.bf16.msra.mxu1 %v11878_v41  ;;  %7059 = vmatmul.mubr.bf16.vlgmr.msra.gmra.mxu0 %v13429_v47  ;;  %v11899_v47 = vld [vmem:[#allocation22 + $0x60] ss:$12 sps:$4 sm:$0xff]   ;;  %v13467_v23 = vpop.f32.mrf.mxu0  ;;  %v11938_v41 = vld [vmem:[#allocation22 + $0x1f8] ss:$12 sps:$4 sm:$0xff]  }
0x1608   :  { %9043 = vmatpush1.bf16.msra.mxu0 %v11881_v27  ;;  %9074 = vmatprep.mubr.bf16.mxu0 %v13462_v31  ;;  %v11946_v27 = vld [vmem:[#allocation22 + $0x1e4] ss:$12 sps:$4 sm:$0xff]  }
0x1609   :  { %7001 = vmatprep.subr.bf16.mxu1 %v11886_v14  ;;  %9044 = vmatprep.subr.bf16.mxu0 %v11889_v62  ;;  %v6718_v61 = vpop.f32.mrf.mxu0 }
0x160b   :  { %7002 = vmatpush2.bf16.msra.mxu1 %v11884_v15  ;;  %v13475_v57 = vpop.f32.mrf.mxu0  ;;  %v11949_v15 = vld [vmem:[#allocation22 + $0x124] ss:$12 sps:$4 sm:$0xff]  }
0x160c   :  { %9045 = vmatpush1.bf16.msra.mxu0 %v11887_v1  ;;  %7003 = vmatprep.subr.bf16.mxu1 %v11892_v2 }
0x160d   :  { %9046 = vmatprep.subr.bf16.mxu0 %v11895_v3  ;;  %v6722_v1 = vpop.f32.mrf.mxu0  ;;  %v11944_v3 = vld [vmem:[#allocation22 + $0x1e0] ss:$12 sps:$4 sm:$0xff]  }
0x160f   :  { %7004 = vmatpush2.bf16.msra.mxu1 %v11890_v0  ;;  %v11947_v0 = vld [vmem:[#allocation22 + $0x120] ss:$12 sps:$4 sm:$0xff]  }
0x1610   :  { %9047 = vmatpush1.bf16.msra.mxu0 %v11893_v4  ;;  %7005 = vmatprep.subr.bf16.mxu1 %v11898_v42  ;;  %v11952_v4 = vld [vmem:[#allocation22 + $0x1cc] ss:$12 sps:$4 sm:$0xff]  }
0x1611   :  { %9048 = vmatprep.subr.bf16.mxu0 %v11901_v36 }
0x1613   :  { %7006 = vmatpush2.bf16.msra.mxu1 %v11896_v33  ;;  %v11955_v33 = vld [vmem:[#allocation22 + $0x10c] ss:$12 sps:$4 sm:$0xff]  }
0x1614   :  { %9049 = vmatpush1.bf16.msra.mxu0 %v11899_v47  ;;  %7007 = vmatprep.subr.bf16.mxu1 %v11904_v34  ;;  %v11950_v34 = vld [vmem:[#allocation22 + $0x1c8] ss:$12 sps:$4 sm:$0xff]  }
0x1615   :  { %9050 = vmatprep.subr.bf16.mxu0 %v11907_v38  ;;  %v11953_v38 = vld [vmem:[#allocation22 + $0x108] ss:$12 sps:$4 sm:$0xff]  }
0x1617   :  { %7008 = vmatpush2.bf16.msra.mxu1 %v11902_v11  ;;  %v11958_v11 = vld [vmem:[#allocation22 + $0x1b4] ss:$12 sps:$4 sm:$0xff]  }
0x1618   :  { %9051 = vmatpush1.bf16.msra.mxu0 %v11905_v7  ;;  %7009 = vmatprep.subr.bf16.mxu1 %v11910_v20  ;;  %v11961_v7 = vld [vmem:[#allocation22 + $0xf4] ss:$12 sps:$4 sm:$0xff]   ;;  %v11956_v20 = vld [vmem:[#allocation22 + $0x1b0] ss:$12 sps:$4 sm:$0xff]  }
0x1619   :  { %9052 = vmatprep.subr.bf16.mxu0 %v11913_v49  ;;  %v11959_v49 = vld [vmem:[#allocation22 + $0xf0] ss:$12 sps:$4 sm:$0xff]  }
0x161b   :  { %7010 = vmatpush2.bf16.msra.mxu1 %v11908_v5  ;;  %v11964_v5 = vld [vmem:[#allocation22 + $0x19c] ss:$12 sps:$4 sm:$0xff]  }
0x161c   :  { %9053 = vmatpush1.bf16.msra.mxu0 %v11911_v21  ;;  %7011 = vmatprep.subr.bf16.mxu1 %v11916_v16  ;;  %v11967_v21 = vld [vmem:[#allocation22 + $0xdc] ss:$12 sps:$4 sm:$0xff]   ;;  %v11962_v16 = vld [vmem:[#allocation22 + $0x198] ss:$12 sps:$4 sm:$0xff]  }
0x161d   :  { %9054 = vmatprep.subr.bf16.mxu0 %v11919_v9  ;;  %v11965_v9 = vld [vmem:[#allocation22 + $0xd8] ss:$12 sps:$4 sm:$0xff]  }
0x161f   :  { %7012 = vmatpush2.bf16.msra.mxu1 %v11914_v54  ;;  %v11970_v54 = vld [vmem:[#allocation22 + $0x184] ss:$12 sps:$4 sm:$0xff]  }
0x1620   :  { %9055 = vmatpush1.bf16.msra.mxu0 %v11917_v22  ;;  %7013 = vmatprep.subr.bf16.mxu1 %v11922_v35  ;;  %v11973_v22 = vld [vmem:[#allocation22 + $0xc4] ss:$12 sps:$4 sm:$0xff]   ;;  %v11968_v35 = vld [vmem:[#allocation22 + $0x180] ss:$12 sps:$4 sm:$0xff]  }
0x1621   :  { %9056 = vmatprep.subr.bf16.mxu0 %v11925_v12  ;;  %v11971_v12 = vld [vmem:[#allocation22 + $0xc0] ss:$12 sps:$4 sm:$0xff]  }
0x1623   :  { %7014 = vmatpush2.bf16.msra.mxu1 %v11920_v60  ;;  %v11976_v60 = vld [vmem:[#allocation22 + $0x2ec] ss:$12 sps:$4 sm:$0xff]  }
0x1624   :  { %9057 = vmatpush1.bf16.msra.mxu0 %v11923_v32  ;;  %9085 = vmatprep.subr.bf16.mxu1 %v11928_v30  ;;  %v11979_v32 = vld [vmem:[#allocation22 + $0x3ac] ss:$12 sps:$4 sm:$0xff]   ;;  %v5075_v30 = vsub.s32 5, %v12853_v24 }
0x1625   :  { %9058 = vmatprep.subr.bf16.mxu0 %v11931_v55  ;;  %v11974_v55 = vld [vmem:[#allocation22 + $0x2e8] ss:$12 sps:$4 sm:$0xff]  }
0x1626   :  { %v13472_v8 = vpop.f32.mrf.mxu1  ;;  %7016 = vmatmul.mubr.bf16.vlgmr.msra.gmra.mxu1 %v13431_v18  ;;  %v11941_v18 = vld [vmem:[#allocation22 + $0x138] ss:$12 sps:$4 sm:$0xff]  }
0x1627   :  { %9086 = vmatpush1.bf16.msra.mxu1 %v11926_v43  ;;  %v11977_v43 = vld [vmem:[#allocation22 + $0x3a8] ss:$12 sps:$4 sm:$0xff]  }
0x1628   :  { %v6675_v17 = vpop.f32.mrf.mxu1  ;;  %9059 = vmatpush2.bf16.msra.mxu0 %v11929_v10  ;;  %9087 = vmatprep.subr.bf16.mxu1 %v11934_v52  ;;  %v11982_v10 = vld [vmem:[#allocation22 + $0x2d4] ss:$12 sps:$4 sm:$0xff]  }
0x1629   :  { %v6676_v50 = vadd.f32 %v6675_v17, %v5068_v56  ;;  %9060 = vmatprep.subr.bf16.mxu0 %v11937_v39  ;;  %v11985_v52 = vld [vmem:[#allocation22 + $0x394] ss:$12 sps:$4 sm:$0xff]   ;;  %v5076_v39 = vrot.slane %v13450_v63, %v5075_v30 }
0x162a   :  { %v13477_v51 = vpop.f32.mrf.mxu1 }
0x162b   :  { %9088 = vmatpush1.bf16.msra.mxu1 %v11932_v46  ;;  %v6719_v14 = vadd.f32 %v6718_v61, %v6676_v50  ;;  %v11980_v46 = vld [vmem:[#allocation22 + $0x2d0] ss:$12 sps:$4 sm:$0xff]  }
0x162c   :  { %v6679_v29 = vpop.f32.mrf.mxu1  ;;  %9061 = vmatpush2.bf16.msra.mxu0 %v11935_v59  ;;  %9089 = vmatprep.subr.bf16.mxu1 %v11940_v19  ;;  %v11983_v59 = vld [vmem:[#allocation22 + $0x390] ss:$12 sps:$4 sm:$0xff]  }
0x162d   :  { %v6680_v62 = vadd.f32 %v6679_v29, %v5068_v56  ;;  %9062 = vmatprep.subr.bf16.mxu0 %v11943_v53  ;;  %v7072_v42 = vmax.f32 %v6719_v14, 0.0  ;;  %v11988_v19 = vld [vmem:[#allocation22 + $0x2bc] ss:$12 sps:$4 sm:$0xff]   ;;  %v11989_v14 = vld [vmem:[#allocation22 + $0x378] ss:$12 sps:$4 sm:$0xff]  }
0x162e   :  { %v11991_v53 = vld [vmem:[#allocation22 + $0x37c] ss:$12 sps:$4 sm:$0xff]  }
0x162f   :  { %v6723_v2 = vadd.f32 %v6722_v1, %v6680_v62  ;;  %9090 = vmatpush1.bf16.msra.mxu1 %v11938_v41  ;;  %v11994_v62 = vld [vmem:[#allocation22 + $0x2a4] ss:$12 sps:$4 sm:$0xff]  }
0x1630   :  { %9063 = vmatpush2.bf16.msra.mxu0 %v11941_v18  ;;  %9091 = vmatprep.subr.bf16.mxu1 %v11946_v27  ;;  %v11986_v27 = vld [vmem:[#allocation22 + $0x2b8] ss:$12 sps:$4 sm:$0xff]  }
0x1631   :  { %v7084_v36 = vmax.f32 %v6723_v2, 0.0  ;;  %9064 = vmatprep.subr.bf16.mxu0 %v11949_v15  ;;  %v11997_v1 = vld [vmem:[#allocation22 + $0x364] ss:$12 sps:$4 sm:$0xff]  }
0x1633   :  { %9092 = vmatpush1.bf16.msra.mxu1 %v11944_v3  ;;  %v13479_v47 = vpack.c.bf16 %v7084_v36, %v7072_v42  ;;  %v11995_v36 = vld [vmem:[#allocation22 + $0x360] ss:$12 sps:$4 sm:$0xff]  }
0x1634   :  { %9065 = vmatpush2.bf16.msra.mxu0 %v11947_v0  ;;  %9093 = vmatprep.subr.bf16.mxu1 %v11952_v4  ;;  %v11992_v4 = vld [vmem:[#allocation22 + $0x2a0] ss:$12 sps:$4 sm:$0xff]  }
0x1635   :  { %9117 = vmatprep.mubr.bf16.mxu1 %v13479_v47  ;;  %9066 = vmatprep.subr.bf16.mxu0 %v11955_v33  ;;  %v12000_v33 = vld [vmem:[#allocation22 + $0x28c] ss:$12 sps:$4 sm:$0xff]  }
0x1637   :  { %9094 = vmatpush1.bf16.msra.mxu1 %v11950_v34  ;;  %v12003_v34 = vld [vmem:[#allocation22 + $0x34c] ss:$12 sps:$4 sm:$0xff]  }
0x1638   :  { %9067 = vmatpush2.bf16.msra.mxu0 %v11953_v38  ;;  %9095 = vmatprep.subr.bf16.mxu1 %v11958_v11 }
0x1639   :  { %9068 = vmatprep.subr.bf16.mxu0 %v11961_v7  ;;  %v11998_v7 = vld [vmem:[#allocation22 + $0x288] ss:$12 sps:$4 sm:$0xff]  }
0x163b   :  { %9096 = vmatpush1.bf16.msra.mxu1 %v11956_v20 }
0x163c   :  { %9069 = vmatpush2.bf16.msra.mxu0 %v11959_v49  ;;  %9097 = vmatprep.subr.bf16.mxu1 %v11964_v5  ;;  %v12001_v49 = vld [vmem:[#allocation22 + $0x348] ss:$12 sps:$4 sm:$0xff]  }
0x163d   :  { %9070 = vmatprep.subr.bf16.mxu0 %v11967_v21  ;;  %v12006_v5 = vld [vmem:[#allocation22 + $0x274] ss:$12 sps:$4 sm:$0xff]  }
0x163e   :  { %v12009_v21 = vld [vmem:[#allocation22 + $0x334] ss:$12 sps:$4 sm:$0xff]  }
0x163f   :  { %9098 = vmatpush1.bf16.msra.mxu1 %v11962_v16  ;;  %v5064_v16 = vrot.slane %v13450_v63, %v12859_v26 }
0x1640   :  { %9071 = vmatpush2.bf16.msra.mxu0 %v11965_v9  ;;  %9099 = vmatprep.subr.bf16.mxu1 %v11970_v54  ;;  %v12004_v9 = vld [vmem:[#allocation22 + $0x270] ss:$12 sps:$4 sm:$0xff]  }
0x1641   :  { %9072 = vmatprep.subr.bf16.mxu0 %v11973_v22  ;;  %v6678_v54 = vadd.f32 %v13477_v51, %v5064_v16  ;;  %v12007_v22 = vld [vmem:[#allocation22 + $0x330] ss:$12 sps:$4 sm:$0xff]  }
0x1643   :  { %9100 = vmatpush1.bf16.msra.mxu1 %v11968_v35  ;;  %v12012_v35 = vld [vmem:[#allocation22 + $0x25c] ss:$12 sps:$4 sm:$0xff]   ;;  %v6721_v30 = vadd.f32 %v13475_v57, %v6678_v54 }
0x1644   :  { %9073 = vmatpush2.bf16.msra.mxu0 %v11971_v12  ;;  %9101 = vmatprep.subr.bf16.mxu1 %v11976_v60  ;;  %v12015_v12 = vld [vmem:[#allocation22 + $0x31c] ss:$12 sps:$4 sm:$0xff]   ;;  %v6674_v60 = vadd.f32 %v13472_v8, %v5064_v16  ;;  %v12027_v8 = vld [vmem:[#allocation22 + $0x46c] ss:$12 sps:$4 sm:$0xff]  }
0x1645   :  { %9128 = vmatprep.subr.bf16.mxu0 %v11979_v32  ;;  %v12010_v32 = vld [vmem:[#allocation22 + $0x258] ss:$12 sps:$4 sm:$0xff]   ;;  %v12022_v57 = vld [vmem:[#allocation22 + $0x528] ss:$12 sps:$4 sm:$0xff]  }
0x1646   :  { %v13483_v56 = vpop.f32.mrf.mxu1  ;;  %v6717_v51 = vadd.f32 %v13467_v23, %v6674_v60  ;;  %v12033_v23 = vld [vmem:[#allocation22 + $0x454] ss:$12 sps:$4 sm:$0xff]   ;;  %v12060_v16 = vld [vmem:[#allocation22 + $0x49c] ss:$12 sps:$4 sm:$0xff]   ;;  %v12066_v60 = vld [vmem:[#allocation22 + $0x484] ss:$12 sps:$4 sm:$0xff]  }
0x1647   :  { %v13486_v61 = vpop.f32.mrf.mxu0  ;;  %9075 = vmatmul.mubr.bf16.vlgmr.msra.gmra.mxu0 %v13458_v44  ;;  %9102 = vmatpush2.bf16.msra.mxu1 %v11974_v55  ;;  %v12013_v55 = vld [vmem:[#allocation22 + $0x318] ss:$12 sps:$4 sm:$0xff]   ;;  %v12063_v54 = vld [vmem:[#allocation22 + $0x3dc] ss:$12 sps:$4 sm:$0xff]  }
0x1648   :  { %v6804_v17 = vpop.f32.mrf.mxu1  ;;  %9129 = vmatpush1.bf16.msra.mxu0 %v11977_v43  ;;  %9103 = vmatprep.subr.bf16.mxu1 %v11982_v10  ;;  %v12018_v43 = vld [vmem:[#allocation22 + $0x244] ss:$12 sps:$4 sm:$0xff]  }
0x1649   :  { %v6761_v50 = vpop.f32.mrf.mxu0  ;;  %9130 = vmatprep.subr.bf16.mxu0 %v11985_v52  ;;  %v12021_v10 = vld [vmem:[#allocation22 + $0x304] ss:$12 sps:$4 sm:$0xff]   ;;  %v12016_v52 = vld [vmem:[#allocation22 + $0x240] ss:$12 sps:$4 sm:$0xff]  }
0x164a   :  { %v6762_v41 = vadd.f32 %v6761_v50, %v5076_v39  ;;  %v13489_v29 = vpop.f32.mrf.mxu1  ;;  %v12025_v50 = vld [vmem:[#allocation22 + $0x468] ss:$12 sps:$4 sm:$0xff]  }
0x164b   :  { %v13491_v18 = vpop.f32.mrf.mxu0  ;;  %9104 = vmatpush2.bf16.msra.mxu1 %v11980_v46  ;;  %v12019_v46 = vld [vmem:[#allocation22 + $0x300] ss:$12 sps:$4 sm:$0xff]  }
0x164c   :  { %9131 = vmatpush1.bf16.msra.mxu0 %v11983_v59  ;;  %9105 = vmatprep.subr.bf16.mxu1 %v11988_v19  ;;  %v6805_v2 = vadd.f32 %v6804_v17, %v6762_v41  ;;  %v6808_v0 = vpop.f32.mrf.mxu1  ;;  %v12024_v17 = vld [vmem:[#allocation22 + $0x52c] ss:$12 sps:$4 sm:$0xff]   ;;  %v7071_v59 = vmax.f32 %v6717_v51, 0.0  ;;  %v12028_v41 = vld [vmem:[#allocation22 + $0x510] ss:$12 sps:$4 sm:$0xff]  }
0x164d   :  { %v6765_v15 = vpop.f32.mrf.mxu0  ;;  %9132 = vmatprep.subr.bf16.mxu0 %v11991_v53  ;;  %v12030_v53 = vld [vmem:[#allocation22 + $0x514] ss:$12 sps:$4 sm:$0xff]  }
0x164e   :  { %v6766_v3 = vadd.f32 %v6765_v15, %v5076_v39  ;;  %v7074_v38 = vmax.f32 %v6805_v2, 0.0  ;;  %v7083_v39 = vmax.f32 %v6721_v30, 0.0  ;;  %v12034_v15 = vld [vmem:[#allocation22 + $0x4f8] ss:$12 sps:$4 sm:$0xff]  }
0x164f   :  { %9106 = vmatpush2.bf16.msra.mxu1 %v11986_v27  ;;  %v12031_v27 = vld [vmem:[#allocation22 + $0x450] ss:$12 sps:$4 sm:$0xff]  }
0x1650   :  { %v6809_v42 = vadd.f32 %v6808_v0, %v6766_v3  ;;  %9133 = vmatpush1.bf16.msra.mxu0 %v11989_v14  ;;  %9107 = vmatprep.subr.bf16.mxu1 %v11994_v62  ;;  %v13502_v19 = vpack.c.bf16 %v7083_v39, %v7071_v59  ;;  %v12036_v14 = vld [vmem:[#allocation22 + $0x4fc] ss:$12 sps:$4 sm:$0xff]   ;;  %v12042_v2 = vld [vmem:[#allocation22 + $0x4e4] ss:$12 sps:$4 sm:$0xff]   ;;  %v12040_v0 = vld [vmem:[#allocation22 + $0x4e0] ss:$12 sps:$4 sm:$0xff]  }
0x1651   :  { %9134 = vmatprep.subr.bf16.mxu0 %v11997_v1  ;;  %v12039_v62 = vld [vmem:[#allocation22 + $0x43c] ss:$12 sps:$4 sm:$0xff]   ;;  %v12037_v1 = vld [vmem:[#allocation22 + $0x438] ss:$12 sps:$4 sm:$0xff]  }
0x1652   :  { %v7086_v11 = vmax.f32 %v6809_v42, 0.0  ;;  %v12045_v3 = vld [vmem:[#allocation22 + $0x424] ss:$12 sps:$4 sm:$0xff]   ;;  %v12048_v42 = vld [vmem:[#allocation22 + $0x4cc] ss:$12 sps:$4 sm:$0xff]  }
0x1653   :  { %9108 = vmatpush2.bf16.msra.mxu1 %v11992_v4  ;;  %v12043_v4 = vld [vmem:[#allocation22 + $0x420] ss:$12 sps:$4 sm:$0xff]   ;;  %v12069_v30 = vld [vmem:[#allocation22 + $0x3c4] ss:$12 sps:$4 sm:$0xff]  }
0x1654   :  { %9135 = vmatpush1.bf16.msra.mxu0 %v11995_v36  ;;  %9109 = vmatprep.subr.bf16.mxu1 %v12000_v33  ;;  %v13493_v20 = vpack.c.bf16 %v7086_v11, %v7074_v38  ;;  %v12051_v36 = vld [vmem:[#allocation22 + $0x40c] ss:$12 sps:$4 sm:$0xff]   ;;  %v5071_v33 = vsub.s32 4, %v12853_v24  ;;  %v12049_v38 = vld [vmem:[#allocation22 + $0x408] ss:$12 sps:$4 sm:$0xff]  }
0x1655   :  { %9136 = vmatprep.subr.bf16.mxu0 %v12003_v34  ;;  %v12046_v34 = vld [vmem:[#allocation22 + $0x4c8] ss:$12 sps:$4 sm:$0xff]  }
0x1656   :  { %9160 = vmatprep.mubr.bf16.mxu0 %v13493_v20  ;;  %v12054_v11 = vld [vmem:[#allocation22 + $0x4b4] ss:$12 sps:$4 sm:$0xff]  }
0x1657   :  { %9110 = vmatpush2.bf16.msra.mxu1 %v11998_v7  ;;  %v12057_v7 = vld [vmem:[#allocation22 + $0x3f4] ss:$12 sps:$4 sm:$0xff]  }
0x1658   :  { %9137 = vmatpush1.bf16.msra.mxu0 %v12001_v49  ;;  %9111 = vmatprep.subr.bf16.mxu1 %v12006_v5  ;;  %v5072_v49 = vrot.slane %v13450_v63, %v5071_v33  ;;  %v12052_v5 = vld [vmem:[#allocation22 + $0x4b0] ss:$12 sps:$4 sm:$0xff]  }
0x1659   :  { %9138 = vmatprep.subr.bf16.mxu0 %v12009_v21  ;;  %v12055_v21 = vld [vmem:[#allocation22 + $0x3f0] ss:$12 sps:$4 sm:$0xff]  }
0x165b   :  { %9112 = vmatpush2.bf16.msra.mxu1 %v12004_v9  ;;  %v6764_v9 = vadd.f32 %v13491_v18, %v5072_v49  ;;  %v12067_v18 = vld [vmem:[#allocation22 + $0x3c0] ss:$12 sps:$4 sm:$0xff]  }
0x165c   :  { %9139 = vmatpush1.bf16.msra.mxu0 %v12007_v22  ;;  %9113 = vmatprep.subr.bf16.mxu1 %v12012_v35  ;;  %v6760_v22 = vadd.f32 %v13486_v61, %v5072_v49  ;;  %v12058_v35 = vld [vmem:[#allocation22 + $0x498] ss:$12 sps:$4 sm:$0xff]   ;;  %v12091_v49 = vld [vmem:[#allocation22 + $0x660] ss:$12 sps:$4 sm:$0xff]  }
0x165d   :  { %9140 = vmatprep.subr.bf16.mxu0 %v12015_v12  ;;  %v12061_v12 = vld [vmem:[#allocation22 + $0x3d8] ss:$12 sps:$4 sm:$0xff]  }
0x165e   :  { %v12075_v61 = vld [vmem:[#allocation22 + $0x6ac] ss:$12 sps:$4 sm:$0xff]  }
0x165f   :  { %9114 = vmatpush2.bf16.msra.mxu1 %v12010_v32  ;;  %v6807_v32 = vadd.f32 %v13489_v29, %v6764_v9  ;;  %v12070_v29 = vld [vmem:[#allocation22 + $0x5e8] ss:$12 sps:$4 sm:$0xff]   ;;  %v12099_v9 = vld [vmem:[#allocation22 + $0x64c] ss:$12 sps:$4 sm:$0xff]  }
0x1660   :  { %9141 = vmatpush1.bf16.msra.mxu0 %v12013_v55  ;;  %9115 = vmatprep.subr.bf16.mxu1 %v12018_v43  ;;  %v6803_v55 = vadd.f32 %v13483_v56, %v6760_v22  ;;  %v12064_v43 = vld [vmem:[#allocation22 + $0x480] ss:$12 sps:$4 sm:$0xff]  }
0x1661   :  { %9142 = vmatprep.subr.bf16.mxu0 %v12021_v10  ;;  %v12072_v10 = vld [vmem:[#allocation22 + $0x5ec] ss:$12 sps:$4 sm:$0xff]   ;;  %v7085_v51 = vmax.f32 %v6807_v32, 0.0  ;;  %v12078_v56 = vld [vmem:[#allocation22 + $0x5d4] ss:$12 sps:$4 sm:$0xff]  }
0x1662   :  { %v12105_v32 = vld [vmem:[#allocation22 + $0x634] ss:$12 sps:$4 sm:$0xff]  }
0x1663   :  { %9116 = vmatpush2.bf16.msra.mxu1 %v12016_v52  ;;  %v5083_v52 = vsub.s32 7, %v12853_v24 }
0x1664   :  { %9143 = vmatpush1.bf16.msra.mxu0 %v12019_v46  ;;  %9171 = vmatprep.subr.bf16.mxu1 %v12024_v17  ;;  %v7073_v46 = vmax.f32 %v6803_v55, 0.0  ;;  %v12073_v17 = vld [vmem:[#allocation22 + $0x6a8] ss:$12 sps:$4 sm:$0xff]   ;;  %v12100_v55 = vld [vmem:[#allocation22 + $0x570] ss:$12 sps:$4 sm:$0xff]  }
0x1665   :  { %9144 = vmatprep.subr.bf16.mxu0 %v12027_v8  ;;  %v5084_v59 = vrot.slane %v13450_v63, %v5083_v52  ;;  %v12106_v52 = vld [vmem:[#allocation22 + $0x558] ss:$12 sps:$4 sm:$0xff]  }
0x1666   :  { %9118 = vmatmul.mubr.bf16.vlgmr.msra.gmra.mxu1 %v13502_v19  ;;  %v13514_v8 = vpack.c.bf16 %v7085_v51, %v7073_v46  ;;  %v12111_v51 = vld [vmem:[#allocation22 + $0x61c] ss:$12 sps:$4 sm:$0xff]  }
0x1667   :  { %9172 = vmatpush1.bf16.msra.mxu1 %v12022_v57  ;;  %v13512_v39 = vpop.f32.mrf.mxu0  ;;  %v12081_v57 = vld [vmem:[#allocation22 + $0x694] ss:$12 sps:$4 sm:$0xff]  }
0x1668   :  { %9145 = vmatpush2.bf16.msra.mxu0 %v12025_v50  ;;  %9173 = vmatprep.subr.bf16.mxu1 %v12030_v53 }
0x1669   :  { %9146 = vmatprep.subr.bf16.mxu0 %v12033_v23  ;;  %v6890_v50 = vpop.f32.mrf.mxu0  ;;  %v12076_v23 = vld [vmem:[#allocation22 + $0x5d0] ss:$12 sps:$4 sm:$0xff]  }
0x166b   :  { %9174 = vmatpush1.bf16.msra.mxu1 %v12028_v41 }
0x166c   :  { %9147 = vmatpush2.bf16.msra.mxu0 %v12031_v27  ;;  %9175 = vmatprep.subr.bf16.mxu1 %v12036_v14  ;;  %v12079_v27 = vld [vmem:[#allocation22 + $0x690] ss:$12 sps:$4 sm:$0xff]  }
0x166d   :  { %9148 = vmatprep.subr.bf16.mxu0 %v12039_v62  ;;  %v12084_v14 = vld [vmem:[#allocation22 + $0x5bc] ss:$12 sps:$4 sm:$0xff]  }
0x166f   :  { %9176 = vmatpush1.bf16.msra.mxu1 %v12034_v15  ;;  %v12087_v15 = vld [vmem:[#allocation22 + $0x67c] ss:$12 sps:$4 sm:$0xff]  }
0x1670   :  { %9149 = vmatpush2.bf16.msra.mxu0 %v12037_v1  ;;  %9177 = vmatprep.subr.bf16.mxu1 %v12042_v2  ;;  %v6892_v1 = vpop.f32.mrf.mxu0 }
0x1671   :  { %9150 = vmatprep.subr.bf16.mxu0 %v12045_v3  ;;  %v12082_v3 = vld [vmem:[#allocation22 + $0x5b8] ss:$12 sps:$4 sm:$0xff]  }
0x1673   :  { %9178 = vmatpush1.bf16.msra.mxu1 %v12040_v0 }
0x1674   :  { %9151 = vmatpush2.bf16.msra.mxu0 %v12043_v4  ;;  %9179 = vmatprep.subr.bf16.mxu1 %v12048_v42  ;;  %v12085_v4 = vld [vmem:[#allocation22 + $0x678] ss:$12 sps:$4 sm:$0xff]  }
0x1675   :  { %9152 = vmatprep.subr.bf16.mxu0 %v12051_v36  ;;  %v12090_v42 = vld [vmem:[#allocation22 + $0x5a4] ss:$12 sps:$4 sm:$0xff]  }
0x1677   :  { %9180 = vmatpush1.bf16.msra.mxu1 %v12046_v34  ;;  %v12093_v34 = vld [vmem:[#allocation22 + $0x664] ss:$12 sps:$4 sm:$0xff]  }
0x1678   :  { %9153 = vmatpush2.bf16.msra.mxu0 %v12049_v38  ;;  %9181 = vmatprep.subr.bf16.mxu1 %v12054_v11  ;;  %v6894_v38 = vpop.f32.mrf.mxu0 }
0x1679   :  { %9154 = vmatprep.subr.bf16.mxu0 %v12057_v7  ;;  %v12088_v7 = vld [vmem:[#allocation22 + $0x5a0] ss:$12 sps:$4 sm:$0xff]  }
0x167b   :  { %9182 = vmatpush1.bf16.msra.mxu1 %v12052_v5  ;;  %v12096_v5 = vld [vmem:[#allocation22 + $0x58c] ss:$12 sps:$4 sm:$0xff]  }
0x167c   :  { %9155 = vmatpush2.bf16.msra.mxu0 %v12055_v21  ;;  %9183 = vmatprep.subr.bf16.mxu1 %v12060_v16 }
0x167d   :  { %9156 = vmatprep.subr.bf16.mxu0 %v12063_v54  ;;  %v5079_v54 = vsub.s32 6, %v12853_v24 }
0x167f   :  { %9184 = vmatpush1.bf16.msra.mxu1 %v12058_v35  ;;  %v12094_v35 = vld [vmem:[#allocation22 + $0x588] ss:$12 sps:$4 sm:$0xff]  }
0x1680   :  { %9157 = vmatpush2.bf16.msra.mxu0 %v12061_v12  ;;  %9185 = vmatprep.subr.bf16.mxu1 %v12066_v60  ;;  %v12097_v12 = vld [vmem:[#allocation22 + $0x648] ss:$12 sps:$4 sm:$0xff]  }
0x1681   :  { %9158 = vmatprep.subr.bf16.mxu0 %v12069_v30  ;;  %v12102_v60 = vld [vmem:[#allocation22 + $0x574] ss:$12 sps:$4 sm:$0xff]   ;;  %v5080_v30 = vrot.slane %v13450_v63, %v5079_v54  ;;  %v12129_v54 = vld [vmem:[#allocation22 + $0x724] ss:$12 sps:$4 sm:$0xff]  }
0x1683   :  { %9186 = vmatpush1.bf16.msra.mxu1 %v12064_v43 }
0x1684   :  { %9159 = vmatpush2.bf16.msra.mxu0 %v12067_v18  ;;  %9187 = vmatprep.subr.bf16.mxu1 %v12072_v10  ;;  %v12103_v18 = vld [vmem:[#allocation22 + $0x630] ss:$12 sps:$4 sm:$0xff]  }
0x1685   :  { %9214 = vmatprep.subr.bf16.mxu0 %v12075_v61  ;;  %v12108_v10 = vld [vmem:[#allocation22 + $0x55c] ss:$12 sps:$4 sm:$0xff]  }
0x1686   :  { %v6845_v53 = vpop.f32.mrf.mxu1 }
0x1687   :  { %9161 = vmatmul.mubr.bf16.vlgmr.msra.gmra.mxu0 %v13514_v8  ;;  %9188 = vmatpush2.bf16.msra.mxu1 %v12070_v29  ;;  %v6846_v61 = vadd.f32 %v6845_v53, %v5080_v30  ;;  %v12109_v29 = vld [vmem:[#allocation22 + $0x618] ss:$12 sps:$4 sm:$0xff]  }
0x1688   :  { %v6847_v41 = vpop.f32.mrf.mxu1  ;;  %9215 = vmatpush1.bf16.msra.mxu0 %v12073_v17  ;;  %9189 = vmatprep.subr.bf16.mxu1 %v12078_v56  ;;  %v12114_v17 = vld [vmem:[#allocation22 + $0x544] ss:$12 sps:$4 sm:$0xff]   ;;  %v12120_v53 = vld [vmem:[#allocation22 + $0x76c] ss:$12 sps:$4 sm:$0xff]  }
0x1689   :  { %v6848_v62 = vadd.f32 %v6847_v41, %v5084_v59  ;;  %9216 = vmatprep.subr.bf16.mxu0 %v12081_v57  ;;  %v12117_v56 = vld [vmem:[#allocation22 + $0x604] ss:$12 sps:$4 sm:$0xff]   ;;  %v6889_v63 = vadd.f32 %v13512_v39, %v6846_v61  ;;  %v12123_v39 = vld [vmem:[#allocation22 + $0x754] ss:$12 sps:$4 sm:$0xff]  }
0x168a   :  { %v6849_v2 = vpop.f32.mrf.mxu1  ;;  %v12154_v61 = vld [vmem:[#allocation22 + $0x7c8] ss:$12 sps:$4 sm:$0xff]  }
0x168b   :  { %9190 = vmatpush2.bf16.msra.mxu1 %v12076_v23  ;;  %v6891_v36 = vadd.f32 %v6890_v50, %v6848_v62  ;;  %v6850_v43 = vadd.f32 %v6849_v2, %v5080_v30  ;;  %v12115_v50 = vld [vmem:[#allocation22 + $0x600] ss:$12 sps:$4 sm:$0xff]   ;;  %v7075_v41 = vmax.f32 %v6889_v63, 0.0  ;;  %v12118_v62 = vld [vmem:[#allocation22 + $0x768] ss:$12 sps:$4 sm:$0xff]  }
0x168c   :  { %v6851_v0 = vpop.f32.mrf.mxu1  ;;  %9217 = vmatpush1.bf16.msra.mxu0 %v12079_v27  ;;  %9191 = vmatprep.subr.bf16.mxu1 %v12084_v14  ;;  %v12132_v23 = vld [vmem:[#allocation22 + $0x82c] ss:$12 sps:$4 sm:$0xff]   ;;  %v12130_v27 = vld [vmem:[#allocation22 + $0x828] ss:$12 sps:$4 sm:$0xff]   ;;  %v12159_v63 = vld [vmem:[#allocation22 + $0x7b0] ss:$12 sps:$4 sm:$0xff]  }
0x168d   :  { %v6852_v33 = vadd.f32 %v6851_v0, %v5084_v59  ;;  %9218 = vmatprep.subr.bf16.mxu0 %v12087_v15  ;;  %v7076_v21 = vmax.f32 %v6891_v36, 0.0  ;;  %v6893_v46 = vadd.f32 %v6892_v1, %v6850_v43  ;;  %v12112_v59 = vld [vmem:[#allocation22 + $0x540] ss:$12 sps:$4 sm:$0xff]   ;;  %v13526_v1 = vld [vmem:[#allocation20 + $0x8] sm:$0xf] }
0x168e   :  { %v12138_v15 = vld [vmem:[#allocation22 + $0x814] ss:$12 sps:$4 sm:$0xff]   ;;  %v12121_v36 = vld [vmem:[#allocation22 + $0x750] ss:$12 sps:$4 sm:$0xff]   ;;  %v12156_v43 = vld [vmem:[#allocation22 + $0x7cc] ss:$12 sps:$4 sm:$0xff]  }
0x168f   :  { %v6895_v11 = vadd.f32 %v6894_v38, %v6852_v33  ;;  %9192 = vmatpush2.bf16.msra.mxu1 %v12082_v3  ;;  %v7087_v57 = vmax.f32 %v6893_v46, 0.0  ;;  %v5092_v3 = vrot.slane %v13526_v1, %v12856_v25  ;;  %v12144_v33 = vld [vmem:[#allocation22 + $0x7fc] ss:$12 sps:$4 sm:$0xff]  }
0x1690   :  { %9219 = vmatpush1.bf16.msra.mxu0 %v12085_v4  ;;  %9193 = vmatprep.subr.bf16.mxu1 %v12090_v42  ;;  %v12136_v4 = vld [vmem:[#allocation22 + $0x810] ss:$12 sps:$4 sm:$0xff]   ;;  %v12133_v46 = vld [vmem:[#allocation22 + $0x708] ss:$12 sps:$4 sm:$0xff]  }
0x1691   :  { %v7088_v16 = vmax.f32 %v6895_v11, 0.0  ;;  %9220 = vmatprep.subr.bf16.mxu0 %v12093_v34  ;;  %v13524_v14 = vpack.c.bf16 %v7087_v57, %v7075_v41  ;;  %v12126_v38 = vld [vmem:[#allocation22 + $0x73c] ss:$12 sps:$4 sm:$0xff]   ;;  %v12164_v41 = vld [vmem:[#allocation22 + $0x798] ss:$12 sps:$4 sm:$0xff]  }
0x1692   :  { %v12166_v57 = vld [vmem:[#allocation22 + $0x79c] ss:$12 sps:$4 sm:$0xff]  }
0x1693   :  { %9194 = vmatpush2.bf16.msra.mxu1 %v12088_v7  ;;  %v13519_v22 = vpack.c.bf16 %v7088_v16, %v7076_v21  ;;  %v12124_v21 = vld [vmem:[#allocation22 + $0x738] ss:$12 sps:$4 sm:$0xff]  }
0x1694   :  { %9221 = vmatpush1.bf16.msra.mxu0 %v12091_v49  ;;  %9195 = vmatprep.subr.bf16.mxu1 %v12096_v5  ;;  %v12142_v5 = vld [vmem:[#allocation22 + $0x7f8] ss:$12 sps:$4 sm:$0xff]  }
0x1695   :  { %9203 = vmatprep.mubr.bf16.mxu1 %v13519_v22  ;;  %9222 = vmatprep.subr.bf16.mxu0 %v12099_v9  ;;  %v12150_v16 = vld [vmem:[#allocation22 + $0x7e4] ss:$12 sps:$4 sm:$0xff]  }
0x1697   :  { %9196 = vmatpush2.bf16.msra.mxu1 %v12094_v35 }
0x1698   :  { %9223 = vmatpush1.bf16.msra.mxu0 %v12097_v12  ;;  %9197 = vmatprep.subr.bf16.mxu1 %v12102_v60 }
0x1699   :  { %9224 = vmatprep.subr.bf16.mxu0 %v12105_v32  ;;  %v12148_v32 = vld [vmem:[#allocation22 + $0x7e0] ss:$12 sps:$4 sm:$0xff]  }
0x169b   :  { %9198 = vmatpush2.bf16.msra.mxu1 %v12100_v55  ;;  %v12127_v55 = vld [vmem:[#allocation22 + $0x720] ss:$12 sps:$4 sm:$0xff]  }
0x169c   :  { %9225 = vmatpush1.bf16.msra.mxu0 %v12103_v18  ;;  %9199 = vmatprep.subr.bf16.mxu1 %v12108_v10  ;;  %v12135_v18 = vld [vmem:[#allocation22 + $0x70c] ss:$12 sps:$4 sm:$0xff]  }
0x169d   :  { %9226 = vmatprep.subr.bf16.mxu0 %v12111_v51 }
0x169f   :  { %9200 = vmatpush2.bf16.msra.mxu1 %v12106_v52 }
0x16a0   :  { %9227 = vmatpush1.bf16.msra.mxu0 %v12109_v29  ;;  %9201 = vmatprep.subr.bf16.mxu1 %v12114_v17  ;;  %v12161_v29 = vld [vmem:[#allocation22 + $0x7b4] ss:$12 sps:$4 sm:$0xff]  }
0x16a1   :  { %9228 = vmatprep.subr.bf16.mxu0 %v12117_v56  ;;  %v12141_v17 = vld [vmem:[#allocation22 + $0x6f4] ss:$12 sps:$4 sm:$0xff]   ;;  %v5088_v56 = vrot.slane %v13526_v1, %v12862_v28 }
0x16a3   :  { %9202 = vmatpush2.bf16.msra.mxu1 %v12112_v59  ;;  %v12139_v59 = vld [vmem:[#allocation22 + $0x6f0] ss:$12 sps:$4 sm:$0xff]  }
0x16a4   :  { %9229 = vmatpush1.bf16.msra.mxu0 %v12115_v50  ;;  %9257 = vmatprep.subr.bf16.mxu1 %v12132_v23  ;;  %v12147_v23 = vld [vmem:[#allocation22 + $0x6dc] ss:$12 sps:$4 sm:$0xff]  }
0x16a5   :  { %9230 = vmatprep.subr.bf16.mxu0 %v12120_v53 }
0x16a6   :  { %v13528_v2 = vpop.f32.mrf.mxu1  ;;  %9204 = vmatmul.mubr.bf16.vlgmr.msra.gmra.mxu1 %v13524_v14 }
0x16a7   :  { %v6931_v0 = vpop.f32.mrf.mxu0  ;;  %9258 = vmatpush1.bf16.msra.mxu1 %v12130_v27  ;;  %v12145_v27 = vld [vmem:[#allocation22 + $0x6d8] ss:$12 sps:$4 sm:$0xff]  }
0x16a8   :  { %v6976_v42 = vpop.f32.mrf.mxu1  ;;  %9231 = vmatpush2.bf16.msra.mxu0 %v12118_v62  ;;  %9259 = vmatprep.subr.bf16.mxu1 %v12138_v15  ;;  %v6932_v53 = vadd.f32 %v6931_v0, %v5088_v56  ;;  %v12171_v62 = vld [vmem:[#allocation22 + $0x784] ss:$12 sps:$4 sm:$0xff]  }
0x16a9   :  { %v6933_v34 = vpop.f32.mrf.mxu0  ;;  %9232 = vmatprep.subr.bf16.mxu0 %v12123_v39  ;;  %v12153_v39 = vld [vmem:[#allocation22 + $0x6c4] ss:$12 sps:$4 sm:$0xff]  }
0x16aa   :  { %v6934_v11 = vadd.f32 %v6933_v34, %v5092_v3  ;;  %v6978_v7 = vpop.f32.mrf.mxu1  ;;  %v12157_v0 = vld [vmem:[#allocation22 + $0x170] ss:$12 sps:$4 sm:$0xff]  }
0x16ab   :  { %v6935_v49 = vpop.f32.mrf.mxu0  ;;  %9260 = vmatpush1.bf16.msra.mxu1 %v12136_v4  ;;  %v12169_v4 = vld [vmem:[#allocation22 + $0x780] ss:$12 sps:$4 sm:$0xff]  }
0x16ac   :  { %9233 = vmatpush2.bf16.msra.mxu0 %v12121_v36  ;;  %9261 = vmatprep.subr.bf16.mxu1 %v12144_v33  ;;  %v6977_v35 = vadd.f32 %v6976_v42, %v6934_v11  ;;  %v6980_v60 = vpop.f32.mrf.mxu1  ;;  %v6936_v50 = vadd.f32 %v6935_v49, %v5088_v56  ;;  %v12151_v42 = vld [vmem:[#allocation22 + $0x6c0] ss:$12 sps:$4 sm:$0xff]   ;;  %v12158_v11 = vld [vmem:[#allocation22 + $0xb0] ss:$12 sps:$4 sm:$0xff]   ;;  %v12162_v49 = vld [vmem:[#allocation22 + $0x158] ss:$12 sps:$4 sm:$0xff]  }
0x16ad   :  { %v6937_v9 = vpop.f32.mrf.mxu0  ;;  %9234 = vmatprep.subr.bf16.mxu0 %v12126_v38  ;;  %v12176_v36 = vld [vmem:[#allocation22 + $0x8ec] ss:$12 sps:$4 sm:$0xff]   ;;  %v12174_v38 = vld [vmem:[#allocation22 + $0x8e8] ss:$12 sps:$4 sm:$0xff]  }
0x16ae   :  { %v6938_v12 = vadd.f32 %v6937_v9, %v5092_v3  ;;  %v7078_v10 = vmax.f32 %v6977_v35, 0.0  ;;  %v6979_v15 = vadd.f32 %v6978_v7, %v6936_v50  ;;  %v6975_v3 = vadd.f32 %v13528_v2, %v6932_v53  ;;  %v12181_v2 = vld [vmem:[#allocation22 + $0x8d4] ss:$12 sps:$4 sm:$0xff]   ;;  %v12204_v56 = vld [vmem:[#allocation22 + $0x858] ss:$12 sps:$4 sm:$0xff]  }
0x16af   :  { %9262 = vmatpush1.bf16.msra.mxu1 %v12142_v5  ;;  %v12179_v5 = vld [vmem:[#allocation22 + $0x8d0] ss:$12 sps:$4 sm:$0xff]   ;;  %v12167_v9 = vld [vmem:[#allocation22 + $0x140] ss:$12 sps:$4 sm:$0xff]  }
0x16b0   :  { %v6981_v30 = vadd.f32 %v6980_v60, %v6938_v12  ;;  %9235 = vmatpush2.bf16.msra.mxu0 %v12124_v21  ;;  %9263 = vmatprep.subr.bf16.mxu1 %v12150_v16  ;;  %v7089_v33 = vmax.f32 %v6979_v15, 0.0  ;;  %v7077_v34 = vmax.f32 %v6975_v3, 0.0  ;;  %v12163_v21 = vld [vmem:[#allocation22 + $0x98] ss:$12 sps:$4 sm:$0xff]   ;;  %v12186_v16 = vld [vmem:[#allocation22 + $0x8bc] ss:$12 sps:$4 sm:$0xff]   ;;  %v5100_v15 = vrot.slane %v13526_v1, %v5067_v48 }
0x16b1   :  { %9236 = vmatprep.subr.bf16.mxu0 %v12129_v54  ;;  %v12184_v54 = vld [vmem:[#allocation22 + $0x8b8] ss:$12 sps:$4 sm:$0xff]   ;;  %v12168_v35 = vld [vmem:[#allocation22 + $0x80] ss:$12 sps:$4 sm:$0xff]   ;;  %v12172_v60 = vld [vmem:[#allocation22 + $0x128] ss:$12 sps:$4 sm:$0xff]  }
0x16b2   :  { %v7090_v51 = vmax.f32 %v6981_v30, 0.0  ;;  %v13539_v7 = vpack.c.bf16 %v7089_v33, %v7077_v34  ;;  %v12191_v12 = vld [vmem:[#allocation22 + $0x8a4] ss:$12 sps:$4 sm:$0xff]   ;;  %v12173_v30 = vld [vmem:[#allocation22 + $0x68] ss:$12 sps:$4 sm:$0xff]  }
0x16b3   :  { %9264 = vmatpush1.bf16.msra.mxu1 %v12148_v32  ;;  %v12189_v32 = vld [vmem:[#allocation22 + $0x8a0] ss:$12 sps:$4 sm:$0xff]   ;;  %v12214_v53 = vld [vmem:[#allocation22 + $0x2f0] ss:$12 sps:$4 sm:$0xff]   ;;  %v12203_v33 = vld [vmem:[#allocation22 + $0x398] ss:$12 sps:$4 sm:$0xff]  }
0x16b4   :  { %9237 = vmatpush2.bf16.msra.mxu0 %v12127_v55  ;;  %v13533_v52 = vpack.c.bf16 %v7090_v51, %v7078_v10  ;;  %9265 = vmatprep.subr.bf16.mxu1 %v12156_v43  ;;  %v12196_v55 = vld [vmem:[#allocation22 + $0x88c] ss:$12 sps:$4 sm:$0xff]   ;;  %v12194_v43 = vld [vmem:[#allocation22 + $0x888] ss:$12 sps:$4 sm:$0xff]  }
0x16b5   :  { %9238 = vmatprep.subr.bf16.mxu0 %v12135_v18  ;;  %v12178_v18 = vld [vmem:[#allocation22 + $0x50] ss:$12 sps:$4 sm:$0xff]   ;;  %v12201_v10 = vld [vmem:[#allocation22 + $0x874] ss:$12 sps:$4 sm:$0xff]   ;;  %v12182_v51 = vld [vmem:[#allocation22 + $0xf8] ss:$12 sps:$4 sm:$0xff]  }
0x16b6   :  { %9246 = vmatprep.mubr.bf16.mxu0 %v13533_v52  ;;  %v12209_v50 = vld [vmem:[#allocation22 + $0x840] ss:$12 sps:$4 sm:$0xff]  }
0x16b7   :  { %9266 = vmatpush1.bf16.msra.mxu1 %v12154_v61  ;;  %v12199_v61 = vld [vmem:[#allocation22 + $0x870] ss:$12 sps:$4 sm:$0xff]   ;;  %v12207_v34 = vld [vmem:[#allocation22 + $0x440] ss:$12 sps:$4 sm:$0xff]  }
0x16b8   :  { %9239 = vmatpush2.bf16.msra.mxu0 %v12133_v46  ;;  %9267 = vmatprep.subr.bf16.mxu1 %v12161_v29  ;;  %v12183_v46 = vld [vmem:[#allocation22 + $0x38] ss:$12 sps:$4 sm:$0xff]   ;;  %v12206_v29 = vld [vmem:[#allocation22 + $0x85c] ss:$12 sps:$4 sm:$0xff]  }
0x16b9   :  { %9240 = vmatprep.subr.bf16.mxu0 %v12141_v17  ;;  %v12187_v17 = vld [vmem:[#allocation22 + $0xe0] ss:$12 sps:$4 sm:$0xff]  }
0x16bb   :  { %9268 = vmatpush1.bf16.msra.mxu1 %v12159_v63  ;;  %v12188_v63 = vld [vmem:[#allocation22 + $0x20] ss:$12 sps:$4 sm:$0xff]  }
0x16bc   :  { %9241 = vmatpush2.bf16.msra.mxu0 %v12139_v59  ;;  %9269 = vmatprep.subr.bf16.mxu1 %v12166_v57  ;;  %v12211_v59 = vld [vmem:[#allocation22 + $0x844] ss:$12 sps:$4 sm:$0xff]   ;;  %v12192_v57 = vld [vmem:[#allocation22 + $0xc8] ss:$12 sps:$4 sm:$0xff]  }
0x16bd   :  { %9242 = vmatprep.subr.bf16.mxu0 %v12147_v23  ;;  %v12193_v23 = vld [vmem:[#allocation22 + $0x8] ss:$12 sps:$4 sm:$0xff]  }
0x16bf   :  { %9270 = vmatpush1.bf16.msra.mxu1 %v12164_v41  ;;  %v12197_v41 = vld [vmem:[#allocation22 + $0x470] ss:$12 sps:$4 sm:$0xff]  }
0x16c0   :  { %9243 = vmatpush2.bf16.msra.mxu0 %v12145_v27  ;;  %9271 = vmatprep.subr.bf16.mxu1 %v12171_v62  ;;  %v12198_v62 = vld [vmem:[#allocation22 + $0x3b0] ss:$12 sps:$4 sm:$0xff]  }
0x16c1   :  { %9244 = vmatprep.subr.bf16.mxu0 %v12153_v39  ;;  %v12202_v39 = vld [vmem:[#allocation22 + $0x458] ss:$12 sps:$4 sm:$0xff]  }
0x16c3   :  { %9272 = vmatpush1.bf16.msra.mxu1 %v12169_v4  ;;  %v5096_v4 = vrot.slane %v13526_v1, %v12859_v26 }
0x16c4   :  { %9245 = vmatpush2.bf16.msra.mxu0 %v12151_v42  ;;  %9273 = vmatprep.subr.bf16.mxu1 %v12176_v36 }
0x16c5   :  { %10653 = vmatprep.subr.bf16.mxu0 %v12157_v0 }
0x16c7   :  { %9247 = vmatmul.mubr.bf16.vlgmr.msra.gmra.mxu0 %v13539_v7  ;;  %9274 = vmatpush2.bf16.msra.mxu1 %v12174_v38  ;;  %v7060_v27 = vpop.f32.mrf.mxu0 }
0x16c8   :  { %10654 = vmatpush3.bf16.msra.mxu0 %v12158_v11  ;;  %9332 = vmatprep.mubr.bf16.mxu0 %v13462_v31  ;;  %v12177_v31 = vld [vmem:[#allocation22 + $0x110] ss:$12 sps:$4 sm:$0xff]  }
0x16c9   :  { %10655 = vmatprep.subr.bf16.mxu0 %v12162_v49  ;;  %9275 = vmatprep.subr.bf16.mxu1 %v12181_v2  ;;  %v7062_v3 = vpop.f32.mrf.mxu0  ;;  %v12208_v2 = vld [vmem:[#allocation22 + $0x380] ss:$12 sps:$4 sm:$0xff]  }
0x16cb   :  { %9276 = vmatpush2.bf16.msra.mxu1 %v12179_v5  ;;  %v7064_v38 = vpop.f32.mrf.mxu0 }
0x16cc   :  { %10656 = vmatpush3.bf16.msra.mxu0 %v12163_v21  ;;  %9277 = vmatprep.subr.bf16.mxu1 %v12186_v16 }
0x16cd   :  { %10657 = vmatprep.subr.bf16.mxu0 %v12167_v9  ;;  %v7066_v16 = vpop.f32.mrf.mxu0 }
0x16cf   :  { %9278 = vmatpush2.bf16.msra.mxu1 %v12184_v54 }
0x16d0   :  { %10658 = vmatpush3.bf16.msra.mxu0 %v12168_v35  ;;  %9279 = vmatprep.subr.bf16.mxu1 %v12191_v12  ;;  %v12213_v35 = vld [vmem:[#allocation22 + $0x368] ss:$12 sps:$4 sm:$0xff]  }
0x16d1   :  { %10659 = vmatprep.subr.bf16.mxu0 %v12172_v60 }
0x16d3   :  { %9280 = vmatpush2.bf16.msra.mxu1 %v12189_v32  ;;  %v12216_v32 = vld [vmem:[#allocation22 + $0x410] ss:$12 sps:$4 sm:$0xff]  }
0x16d4   :  { %10660 = vmatpush3.bf16.msra.mxu0 %v12173_v30  ;;  %9281 = vmatprep.subr.bf16.mxu1 %v12196_v55 }
0x16d5   :  { %10661 = vmatprep.subr.bf16.mxu0 %v12177_v31  ;;  %v12215_v31 = vld [vmem:[#allocation22 + $0x230] ss:$12 sps:$4 sm:$0xff]  }
0x16d7   :  { %9282 = vmatpush2.bf16.msra.mxu1 %v12194_v43 }
0x16d8   :  { %10662 = vmatpush3.bf16.msra.mxu0 %v12178_v18  ;;  %9283 = vmatprep.subr.bf16.mxu1 %v12201_v10  ;;  %v12217_v18 = vld [vmem:[#allocation22 + $0x350] ss:$12 sps:$4 sm:$0xff]   ;;  %v12218_v10 = vld [vmem:[#allocation22 + $0x2d8] ss:$12 sps:$4 sm:$0xff]  }
0x16d9   :  { %10663 = vmatprep.subr.bf16.mxu0 %v12182_v51  ;;  %v12220_v51 = vld [vmem:[#allocation22 + $0x3f8] ss:$12 sps:$4 sm:$0xff]  }
0x16db   :  { %9284 = vmatpush2.bf16.msra.mxu1 %v12199_v61  ;;  %v12219_v61 = vld [vmem:[#allocation22 + $0x218] ss:$12 sps:$4 sm:$0xff]  }
0x16dc   :  { %10664 = vmatpush3.bf16.msra.mxu0 %v12183_v46  ;;  %9285 = vmatprep.subr.bf16.mxu1 %v12206_v29  ;;  %v12221_v46 = vld [vmem:[#allocation22 + $0x338] ss:$12 sps:$4 sm:$0xff]   ;;  %v12222_v29 = vld [vmem:[#allocation22 + $0x2c0] ss:$12 sps:$4 sm:$0xff]  }
0x16dd   :  { %10665 = vmatprep.subr.bf16.mxu0 %v12187_v17  ;;  %v12224_v17 = vld [vmem:[#allocation22 + $0x3e0] ss:$12 sps:$4 sm:$0xff]  }
0x16df   :  { %9286 = vmatpush2.bf16.msra.mxu1 %v12204_v56  ;;  %v12223_v56 = vld [vmem:[#allocation22 + $0x200] ss:$12 sps:$4 sm:$0xff]  }
0x16e0   :  { %10666 = vmatpush3.bf16.msra.mxu0 %v12188_v63  ;;  %9287 = vmatprep.subr.bf16.mxu1 %v12211_v59  ;;  %v12225_v63 = vld [vmem:[#allocation22 + $0x320] ss:$12 sps:$4 sm:$0xff]   ;;  %v12226_v59 = vld [vmem:[#allocation22 + $0x2a8] ss:$12 sps:$4 sm:$0xff]  }
0x16e1   :  { %10667 = vmatprep.subr.bf16.mxu0 %v12192_v57  ;;  %v12228_v57 = vld [vmem:[#allocation22 + $0x3c8] ss:$12 sps:$4 sm:$0xff]  }
0x16e3   :  { %9288 = vmatpush2.bf16.msra.mxu1 %v12209_v50  ;;  %v12227_v50 = vld [vmem:[#allocation22 + $0x1e8] ss:$12 sps:$4 sm:$0xff]  }
0x16e4   :  { %10668 = vmatpush3.bf16.msra.mxu0 %v12193_v23  ;;  %10675 = vmatprep.subr.bf16.mxu1 %v12214_v53  ;;  %v12230_v23 = vld [vmem:[#allocation22 + $0x290] ss:$12 sps:$4 sm:$0xff]  }
0x16e5   :  { %10697 = vmatprep.subr.bf16.mxu0 %v12197_v41  ;;  %v12232_v53 = vld [vmem:[#allocation22 + $0x770] ss:$12 sps:$4 sm:$0xff]  }
0x16e6   :  { %v7017_v42 = vpop.f32.mrf.mxu1  ;;  %v12231_v41 = vld [vmem:[#allocation22 + $0x1d0] ss:$12 sps:$4 sm:$0xff]  }
0x16e7   :  { %9333 = vmatmul.mubr.bf16.vlgmr.msra.gmra.mxu0 %v13458_v44  ;;  %v7018_v24 = vadd.f32 %v7017_v42, %v5096_v4  ;;  %v12212_v44 = vld [vmem:[#allocation22 + $0x428] ss:$12 sps:$4 sm:$0xff]   ;;  %v12240_v42 = vld [vmem:[#allocation22 + $0x740] ss:$12 sps:$4 sm:$0xff]  }
0x16e8   :  { %v7019_v36 = vpop.f32.mrf.mxu1  ;;  %10698 = vmatpush3.bf16.msra.mxu0 %v12198_v62  ;;  %9414 = vmatprep.mubr.bf16.mxu0 %v13493_v20  ;;  %v12234_v62 = vld [vmem:[#allocation22 + $0x278] ss:$12 sps:$4 sm:$0xff]  }
0x16e9   :  { %v7020_v0 = vadd.f32 %v7019_v36, %v5100_v15  ;;  %10699 = vmatprep.subr.bf16.mxu0 %v12202_v39  ;;  %v7061_v9 = vadd.f32 %v7060_v27, %v7018_v24  ;;  %v12233_v27 = vld [vmem:[#allocation22 + $0x6b0] ss:$12 sps:$4 sm:$0xff]   ;;  %v12235_v39 = vld [vmem:[#allocation22 + $0x1b8] ss:$12 sps:$4 sm:$0xff]   ;;  %v12239_v36 = vld [vmem:[#allocation22 + $0x1a0] ss:$12 sps:$4 sm:$0xff]  }
0x16ea   :  { %v7021_v11 = vpop.f32.mrf.mxu1  ;;  %v12246_v24 = vld [vmem:[#allocation22 + $0x5f0] ss:$12 sps:$4 sm:$0xff]  }
0x16eb   :  { %v7022_v48 = vadd.f32 %v7021_v11, %v5096_v4  ;;  %v7063_v5 = vadd.f32 %v7062_v3, %v7020_v0  ;;  %v7079_v30 = vmax.f32 %v7061_v9, 0.0  ;;  %v12237_v3 = vld [vmem:[#allocation22 + $0x698] ss:$12 sps:$4 sm:$0xff]   ;;  %v12238_v4 = vld [vmem:[#allocation22 + $0x260] ss:$12 sps:$4 sm:$0xff]  }
0x16ec   :  { %v7023_v49 = vpop.f32.mrf.mxu1  ;;  %10700 = vmatpush3.bf16.msra.mxu0 %v12203_v33  ;;  %v12241_v33 = vld [vmem:[#allocation22 + $0x680] ss:$12 sps:$4 sm:$0xff]   ;;  %v12242_v0 = vld [vmem:[#allocation22 + $0x248] ss:$12 sps:$4 sm:$0xff]   ;;  %v12247_v11 = vld [vmem:[#allocation22 + $0x530] ss:$12 sps:$4 sm:$0xff]  }
0x16ed   :  { %v7065_v1 = vadd.f32 %v7064_v38, %v7022_v48  ;;  %v7024_v21 = vadd.f32 %v7023_v49, %v5100_v15  ;;  %10701 = vmatprep.subr.bf16.mxu0 %v12207_v34  ;;  %v7080_v12 = vmax.f32 %v7063_v5, 0.0  ;;  %v12236_v15 = vld [vmem:[#allocation22 + $0x758] ss:$12 sps:$4 sm:$0xff]   ;;  %v12244_v34 = vld [vmem:[#allocation22 + $0x728] ss:$12 sps:$4 sm:$0xff]  }
0x16ee   :  { %v12243_v38 = vld [vmem:[#allocation22 + $0x188] ss:$12 sps:$4 sm:$0xff]   ;;  %v12249_v48 = vld [vmem:[#allocation22 + $0x650] ss:$12 sps:$4 sm:$0xff]   ;;  %v12250_v49 = vld [vmem:[#allocation22 + $0x5d8] ss:$12 sps:$4 sm:$0xff]  }
0x16ef   :  { %v7067_v54 = vadd.f32 %v7066_v16, %v7024_v21  ;;  %v7091_v20 = vmax.f32 %v7065_v1, 0.0  ;;  %v12251_v5 = vld [vmem:[#allocation22 + $0x518] ss:$12 sps:$4 sm:$0xff]   ;;  %v12254_v21 = vld [vmem:[#allocation22 + $0x5c0] ss:$12 sps:$4 sm:$0xff]  }
0x16f0   :  { %10702 = vmatpush3.bf16.msra.mxu0 %v12208_v2  ;;  %v12252_v2 = vld [vmem:[#allocation22 + $0x6f8] ss:$12 sps:$4 sm:$0xff]   ;;  %v12255_v16 = vld [vmem:[#allocation22 + $0x500] ss:$12 sps:$4 sm:$0xff]  }
0x16f1   :  { %v7092_v60 = vmax.f32 %v7067_v54, 0.0  ;;  %10703 = vmatprep.subr.bf16.mxu0 %v12212_v44  ;;  %v13552_v43 = vpack.c.bf16 %v7091_v20, %v7079_v30  ;;  %v12253_v1 = vld [vmem:[#allocation22 + $0x638] ss:$12 sps:$4 sm:$0xff]   ;;  %v12256_v44 = vld [vmem:[#allocation22 + $0x6e0] ss:$12 sps:$4 sm:$0xff]  }
0x16f2   :  { %v12257_v9 = vld [vmem:[#allocation22 + $0x620] ss:$12 sps:$4 sm:$0xff]   ;;  %v12258_v54 = vld [vmem:[#allocation22 + $0x5a8] ss:$12 sps:$4 sm:$0xff]  }
0x16f3   :  { %v13550_v55 = vpack.c.bf16 %v7092_v60, %v7080_v12  ;;  %v12260_v20 = vld [vmem:[#allocation22 + $0x6c8] ss:$12 sps:$4 sm:$0xff]   ;;  %v12263_v12 = vld [vmem:[#allocation22 + $0x4d0] ss:$12 sps:$4 sm:$0xff]   ;;  %v12264_v60 = vld [vmem:[#allocation22 + $0x578] ss:$12 sps:$4 sm:$0xff]  }
0x16f4   :  { %10704 = vmatpush3.bf16.msra.mxu0 %v12213_v35  ;;  %v12262_v35 = vld [vmem:[#allocation22 + $0x590] ss:$12 sps:$4 sm:$0xff]   ;;  %v12266_v30 = vld [vmem:[#allocation22 + $0x560] ss:$12 sps:$4 sm:$0xff]  }
0x16f5   :  { %9289 = vmatprep.mubr.bf16.mxu1 %v13550_v55  ;;  %10705 = vmatprep.subr.bf16.mxu0 %v12216_v32  ;;  %v12265_v32 = vld [vmem:[#allocation22 + $0x4b8] ss:$12 sps:$4 sm:$0xff]  }
0x16f6   :  { %9290 = vmatmul.mubr.bf16.vlgmr.msra.gmra.mxu1 %v13552_v43 }
0x16f7   :  { %10676 = vmatpush3.bf16.msra.mxu1 %v12215_v31  ;;  %9373 = vmatprep.mubr.bf16.mxu1 %v13479_v47  ;;  %v12229_v47 = vld [vmem:[#allocation22 + $0x308] ss:$12 sps:$4 sm:$0xff]   ;;  %v12267_v31 = vld [vmem:[#allocation22 + $0x4a0] ss:$12 sps:$4 sm:$0xff]  }
0x16f8   :  { %10706 = vmatpush3.bf16.msra.mxu0 %v12217_v18  ;;  %10677 = vmatprep.subr.bf16.mxu1 %v12218_v10  ;;  %v12268_v18 = vld [vmem:[#allocation22 + $0x548] ss:$12 sps:$4 sm:$0xff]  }
0x16f9   :  { %10707 = vmatprep.subr.bf16.mxu0 %v12220_v51  ;;  %v12269_v10 = vld [vmem:[#allocation22 + $0x488] ss:$12 sps:$4 sm:$0xff]   ;;  %v12270_v51 = vld [vmem:[#allocation22 + $0x8f0] ss:$12 sps:$4 sm:$0xff]  }
0x16fb   :  { %10678 = vmatpush3.bf16.msra.mxu1 %v12219_v61  ;;  %v12271_v61 = vld [vmem:[#allocation22 + $0x830] ss:$12 sps:$4 sm:$0xff]  }
0x16fc   :  { %10708 = vmatpush3.bf16.msra.mxu0 %v12221_v46  ;;  %10679 = vmatprep.subr.bf16.mxu1 %v12222_v29  ;;  %v12272_v46 = vld [vmem:[#allocation22 + $0x8d8] ss:$12 sps:$4 sm:$0xff]   ;;  %v12274_v29 = vld [vmem:[#allocation22 + $0x8c0] ss:$12 sps:$4 sm:$0xff]  }
0x16fd   :  { %10709 = vmatprep.subr.bf16.mxu0 %v12224_v17  ;;  %v12275_v17 = vld [vmem:[#allocation22 + $0x800] ss:$12 sps:$4 sm:$0xff]  }
0x16ff   :  { %10680 = vmatpush3.bf16.msra.mxu1 %v12223_v56  ;;  %v12276_v56 = vld [vmem:[#allocation22 + $0x8a8] ss:$12 sps:$4 sm:$0xff]  }
0x1700   :  { %10710 = vmatpush3.bf16.msra.mxu0 %v12225_v63  ;;  %10681 = vmatprep.subr.bf16.mxu1 %v12226_v59  ;;  %v12277_v63 = vld [vmem:[#allocation22 + $0x7e8] ss:$12 sps:$4 sm:$0xff]   ;;  %v12278_v59 = vld [vmem:[#allocation22 + $0x890] ss:$12 sps:$4 sm:$0xff]  }
0x1701   :  { %10711 = vmatprep.subr.bf16.mxu0 %v12228_v57  ;;  %v12279_v57 = vld [vmem:[#allocation22 + $0x7d0] ss:$12 sps:$4 sm:$0xff]  }
0x1703   :  { %10682 = vmatpush3.bf16.msra.mxu1 %v12227_v50  ;;  %v12280_v50 = vld [vmem:[#allocation22 + $0x878] ss:$12 sps:$4 sm:$0xff]  }
0x1704   :  { %10712 = vmatpush3.bf16.msra.mxu0 %v12229_v47  ;;  %10683 = vmatprep.subr.bf16.mxu1 %v12230_v23  ;;  %v12282_v47 = vld [vmem:[#allocation22 + $0x860] ss:$12 sps:$4 sm:$0xff]   ;;  %v12284_v23 = vld [vmem:[#allocation22 + $0x848] ss:$12 sps:$4 sm:$0xff]  }
0x1705   :  { %10741 = vmatprep.subr.bf16.mxu0 %v12232_v53  ;;  %v12285_v53 = vld [vmem:[#allocation22 + $0x788] ss:$12 sps:$4 sm:$0xff]  }
0x1707   :  { %10684 = vmatpush3.bf16.msra.mxu1 %v12231_v41  ;;  %9415 = vmatmul.mubr.bf16.vlgmr.msra.gmra.mxu0 %v13514_v8  ;;  %v12245_v8 = vld [vmem:[#allocation22 + $0x668] ss:$12 sps:$4 sm:$0xff]   ;;  %v9076_v41 = vpop.f32.mrf.mxu0 }
0x1708   :  { %10742 = vmatpush3.bf16.msra.mxu0 %v12233_v27  ;;  %9496 = vmatprep.mubr.bf16.mxu0 %v13533_v52  ;;  %v12248_v52 = vld [vmem:[#allocation22 + $0x710] ss:$12 sps:$4 sm:$0xff]  }
0x1709   :  { %10685 = vmatprep.subr.bf16.mxu1 %v12234_v62  ;;  %10743 = vmatprep.subr.bf16.mxu0 %v12236_v15  ;;  %v9078_v27 = vpop.f32.mrf.mxu0 }
0x170b   :  { %10686 = vmatpush3.bf16.msra.mxu1 %v12235_v39  ;;  %v9080_v62 = vpop.f32.mrf.mxu0 }
0x170c   :  { %10744 = vmatpush3.bf16.msra.mxu0 %v12237_v3  ;;  %10687 = vmatprep.subr.bf16.mxu1 %v12238_v4 }
0x170d   :  { %10745 = vmatprep.subr.bf16.mxu0 %v12240_v42  ;;  %v9082_v39 = vpop.f32.mrf.mxu0 }
0x170f   :  { %10688 = vmatpush3.bf16.msra.mxu1 %v12239_v36 }
0x1710   :  { %10746 = vmatpush3.bf16.msra.mxu0 %v12241_v33  ;;  %10689 = vmatprep.subr.bf16.mxu1 %v12242_v0  ;;  %v7489_v33 = vld [vmem:[#allocation23] sm:$0x7] }
0x1711   :  { %10747 = vmatprep.subr.bf16.mxu0 %v12244_v34 }
0x1713   :  { %10690 = vmatpush3.bf16.msra.mxu1 %v12243_v38 }
0x1714   :  { %10748 = vmatpush3.bf16.msra.mxu0 %v12245_v8  ;;  %10719 = vmatprep.subr.bf16.mxu1 %v12246_v24  ;;  %v7494_v8 = vrot.slane %v7489_v33, %v12862_v28 }
0x1715   :  { %10749 = vmatprep.subr.bf16.mxu0 %v12248_v52  ;;  %v7498_v52 = vrot.slane %v7489_v33, %v12856_v25 }
0x1716   :  { %9374 = vmatmul.mubr.bf16.vlgmr.msra.gmra.mxu1 %v13502_v19  ;;  %v12259_v19 = vld [vmem:[#allocation22 + $0x4e8] ss:$12 sps:$4 sm:$0xff]  }
0x1717   :  { %10720 = vmatpush3.bf16.msra.mxu1 %v12247_v11  ;;  %9455 = vmatprep.mubr.bf16.mxu1 %v13519_v22  ;;  %v12261_v22 = vld [vmem:[#allocation22 + $0x608] ss:$12 sps:$4 sm:$0xff]  }
0x1718   :  { %10750 = vmatpush3.bf16.msra.mxu0 %v12249_v48  ;;  %10721 = vmatprep.subr.bf16.mxu1 %v12250_v49  ;;  %v9077_v48 = vadd.f32 %v9076_v41, %v7494_v8  ;;  %v9079_v49 = vadd.f32 %v9078_v27, %v7498_v52 }
0x1719   :  { %10751 = vmatprep.subr.bf16.mxu0 %v12252_v2 }
0x171b   :  { %10722 = vmatpush3.bf16.msra.mxu1 %v12251_v5 }
0x171c   :  { %10752 = vmatpush3.bf16.msra.mxu0 %v12253_v1  ;;  %10723 = vmatprep.subr.bf16.mxu1 %v12254_v21  ;;  %v9081_v21 = vadd.f32 %v9080_v62, %v7494_v8 }
0x171d   :  { %10753 = vmatprep.subr.bf16.mxu0 %v12256_v44 }
0x171f   :  { %10724 = vmatpush3.bf16.msra.mxu1 %v12255_v16 }
0x1720   :  { %10754 = vmatpush3.bf16.msra.mxu0 %v12257_v9  ;;  %10725 = vmatprep.subr.bf16.mxu1 %v12258_v54  ;;  %v9083_v9 = vadd.f32 %v9082_v39, %v7498_v52 }
0x1721   :  { %10755 = vmatprep.subr.bf16.mxu0 %v12260_v20 }
0x1723   :  { %10726 = vmatpush3.bf16.msra.mxu1 %v12259_v19 }
0x1724   :  { %10756 = vmatpush3.bf16.msra.mxu0 %v12261_v22  ;;  %10727 = vmatprep.subr.bf16.mxu1 %v12262_v35 }
0x1726   :  { %v9119_v15 = vpop.f32.mrf.mxu1 }
0x1727   :  { %10728 = vmatpush3.bf16.msra.mxu1 %v12263_v12  ;;  %9497 = vmatmul.mubr.bf16.vlgmr.msra.gmra.mxu0 %v13539_v7  ;;  %v12273_v7 = vld [vmem:[#allocation22 + $0x818] ss:$12 sps:$4 sm:$0xff]   ;;  %v9120_v2 = vadd.f32 %v9119_v15, %v9077_v48 }
0x1728   :  { %10729 = vmatprep.subr.bf16.mxu1 %v12264_v60  ;;  %v9121_v3 = vpop.f32.mrf.mxu1 }
0x1729   :  { %v9122_v44 = vadd.f32 %v9121_v3, %v9079_v49 }
0x172a   :  { %v9123_v42 = vpop.f32.mrf.mxu1 }
0x172b   :  { %10730 = vmatpush3.bf16.msra.mxu1 %v12265_v32  ;;  %v9124_v54 = vadd.f32 %v9123_v42, %v9081_v21 }
0x172c   :  { %10731 = vmatprep.subr.bf16.mxu1 %v12266_v30  ;;  %v9125_v0 = vpop.f32.mrf.mxu1 }
0x172d   :  { %v9126_v28 = vadd.f32 %v9125_v0, %v9083_v9 }
0x172f   :  { %10732 = vmatpush3.bf16.msra.mxu1 %v12267_v31 }
0x1730   :  { %10733 = vmatprep.subr.bf16.mxu1 %v12268_v18 }
0x1733   :  { %10734 = vmatpush3.bf16.msra.mxu1 %v12269_v10 }
0x1734   :  { %10763 = vmatprep.subr.bf16.mxu1 %v12270_v51 }
0x1736   :  { %9456 = vmatmul.mubr.bf16.vlgmr.msra.gmra.mxu1 %v13524_v14  ;;  %v12281_v14 = vld [vmem:[#allocation22 + $0x7b8] ss:$12 sps:$4 sm:$0xff]  }
0x1737   :  { %10764 = vmatpush3.bf16.msra.mxu1 %v12271_v61  ;;  %9537 = vmatprep.mubr.bf16.mxu1 %v13550_v55  ;;  %v12283_v55 = vld [vmem:[#allocation22 + $0x7a0] ss:$12 sps:$4 sm:$0xff]  }
0x1738   :  { %10765 = vmatprep.subr.bf16.mxu1 %v12272_v46 }
0x173b   :  { %10766 = vmatpush3.bf16.msra.mxu1 %v12273_v7 }
0x173c   :  { %10767 = vmatprep.subr.bf16.mxu1 %v12274_v29 }
0x173f   :  { %10768 = vmatpush3.bf16.msra.mxu1 %v12275_v17 }
0x1740   :  { %10769 = vmatprep.subr.bf16.mxu1 %v12276_v56 }
0x1743   :  { %10770 = vmatpush3.bf16.msra.mxu1 %v12277_v63 }
0x1744   :  { %10771 = vmatprep.subr.bf16.mxu1 %v12278_v59 }
0x1747   :  { %10772 = vmatpush3.bf16.msra.mxu1 %v12279_v57  ;;  %v9162_v4 = vpop.f32.mrf.mxu0 }
0x1748   :  { %10773 = vmatprep.subr.bf16.mxu1 %v12280_v50  ;;  %v9163_v16 = vadd.f32 %v9162_v4, %v9120_v2 }
0x1749   :  { %v9164_v36 = vpop.f32.mrf.mxu0 }
0x174a   :  { %v9165_v20 = vadd.f32 %v9164_v36, %v9122_v44  ;;  %v7502_v36 = vrot.slane %v7489_v33, %v12859_v26 }
0x174b   :  { %10774 = vmatpush3.bf16.msra.mxu1 %v12281_v14  ;;  %v9166_v34 = vpop.f32.mrf.mxu0 }
0x174c   :  { %10775 = vmatprep.subr.bf16.mxu1 %v12282_v47  ;;  %v9167_v12 = vadd.f32 %v9166_v34, %v9124_v54 }
0x174d   :  { %v9168_v24 = vpop.f32.mrf.mxu0 }
0x174e   :  { %v9169_v30 = vadd.f32 %v9168_v24, %v9126_v28 }
0x174f   :  { %10776 = vmatpush3.bf16.msra.mxu1 %v12283_v55 }
0x1750   :  { %10777 = vmatprep.subr.bf16.mxu1 %v12284_v23 }
0x1753   :  { %10778 = vmatpush3.bf16.msra.mxu1 %v12285_v53 }
0x1756   :  { %9538 = vmatmul.mubr.bf16.vlgmr.msra.gmra.mxu1 %v13552_v43 }
0x1766   :  { %v9205_v38 = vpop.f32.mrf.mxu1 }
0x1767   :  { %v9206_v19 = vadd.f32 %v9205_v38, %v9163_v16 }
0x1768   :  { %v9207_v11 = vpop.f32.mrf.mxu1 }
0x1769   :  { %v9208_v60 = vadd.f32 %v9207_v11, %v9165_v20 }
0x176a   :  { %v9209_v5 = vpop.f32.mrf.mxu1 }
0x176b   :  { %v9210_v31 = vadd.f32 %v9209_v5, %v9167_v12 }
0x176c   :  { %v9211_v22 = vpop.f32.mrf.mxu1 }
0x176d   :  { %v9212_v46 = vadd.f32 %v9211_v22, %v9169_v30 }
0x1787   :  { %v9248_v43 = vpop.f32.mrf.mxu0 }
0x1788   :  { %v9249_v25 = vadd.f32 %v9248_v43, %v9206_v19 }
0x1789   :  { %v9250_v1 = vpop.f32.mrf.mxu0 }
0x178a   :  { %v9251_v18 = vadd.f32 %v9250_v1, %v9208_v60 }
0x178b   :  { %v9252_v35 = vpop.f32.mrf.mxu0 }
0x178c   :  { %v9253_v7 = vadd.f32 %v9252_v35, %v9210_v31 }
0x178d   :  { %v9254_v51 = vpop.f32.mrf.mxu0 }
0x178e   :  { %v9255_v63 = vadd.f32 %v9254_v51, %v9212_v46 }
0x17a7   :  { %v10669_v23 = vpop.f32.mrf.mxu0 }
0x17a9   :  { %v10670_v53 = vpop.f32.mrf.mxu0 }
0x17ab   :  { %v10672_v41 = vpop.f32.mrf.mxu0 }
0x17ad   :  { %v10673_v27 = vpop.f32.mrf.mxu0 }
0x17ae   :  { %v10674_v24 = vadd.f32 %v10673_v27, %v10672_v41 }
0x17b0   :  { %v9338_v49 = vadd.f32 %v10674_v24, %v7502_v36 }
0x17b6   :  { %v9291_v32 = vpop.f32.mrf.mxu1 }
0x17b7   :  { %v9292_v10 = vadd.f32 %v9291_v32, %v9249_v25 }
0x17b8   :  { %v9293_v61 = vpop.f32.mrf.mxu1 }
0x17b9   :  { %v9546_v29 = vadd.f32 %v9292_v10, %v13366_v6  ;;  %v9294_v17 = vadd.f32 %v9293_v61, %v9251_v18 }
0x17ba   :  { %v9295_v56 = vpop.f32.mrf.mxu1 }
0x17bb   :  { %9552 = vst [vmem:[#allocation25] sm:$0xff] %v9546_v29  ;;  %v9547_v59 = vadd.f32 %v9294_v17, %v13368_v45  ;;  %v9296_v57 = vadd.f32 %v9295_v56, %v9253_v7 }
0x17bc   :  { %v9297_v50 = vpop.f32.mrf.mxu1 }
0x17bd   :  { %9553 = vst [vmem:[#allocation25 + $0x8] sm:$0xff] %v9547_v59  ;;  %v9549_v14 = vadd.f32 %v9296_v57, %v13375_v37  ;;  %v9298_v47 = vadd.f32 %v9297_v50, %v9255_v63  ;;  %v10671_v37 = vadd.f32 %v10670_v53, %v10669_v23 }
0x17bf   :  { %9555 = vst [vmem:[#allocation25 + $0x18] sm:$0xff] %v9549_v14  ;;  %v9550_v55 = vadd.f32 %v9298_v47, %v13377_v58  ;;  %v9335_v8 = vadd.f32 %v10671_v37, %v7502_v36 }
0x17c1   :  { %9556 = vst [vmem:[#allocation25 + $0x20] sm:$0xff] %v9550_v55 }
0x17c7   :  { %v10713_v15 = vpop.f32.mrf.mxu0 }
0x17c9   :  { %v10714_v3 = vpop.f32.mrf.mxu0 }
0x17ca   :  { %v10715_v2 = vadd.f32 %v10714_v3, %v10713_v15 }
0x17cb   :  { %v10716_v4 = vpop.f32.mrf.mxu0 }
0x17cd   :  { %v10717_v0 = vpop.f32.mrf.mxu0 }
0x17ce   :  { %v10718_v9 = vadd.f32 %v10717_v0, %v10716_v4 }
0x17d6   :  { %v10691_v6 = vpop.f32.mrf.mxu1 }
0x17d8   :  { %v10692_v62 = vpop.f32.mrf.mxu1 }
0x17d9   :  { %v10693_v38 = vadd.f32 %v10692_v62, %v10691_v6 }
0x17da   :  { %v10694_v39 = vpop.f32.mrf.mxu1 }
0x17db   :  { %v9376_v11 = vadd.f32 %v10693_v38, %v9335_v8 }
0x17dc   :  { %v10695_v45 = vpop.f32.mrf.mxu1 }
0x17dd   :  { %v10696_v43 = vadd.f32 %v10695_v45, %v10694_v39  ;;  %v9417_v44 = vadd.f32 %v10715_v2, %v9376_v11 }
0x17df   :  { %v9379_v21 = vadd.f32 %v10696_v43, %v9338_v49 }
0x17e1   :  { %v9420_v19 = vadd.f32 %v10718_v9, %v9379_v21 }
0x17e7   :  { %v10757_v58 = vpop.f32.mrf.mxu0 }
0x17e9   :  { %v10758_v48 = vpop.f32.mrf.mxu0 }
0x17ea   :  { %v10759_v20 = vadd.f32 %v10758_v48, %v10757_v58 }
0x17eb   :  { %v10760_v16 = vpop.f32.mrf.mxu0 }
0x17ed   :  { %v10761_v22 = vpop.f32.mrf.mxu0 }
0x17ee   :  { %v10762_v32 = vadd.f32 %v10761_v22, %v10760_v16 }
0x17f6   :  { %v10735_v42 = vpop.f32.mrf.mxu1 }
0x17f8   :  { %v10736_v34 = vpop.f32.mrf.mxu1 }
0x17f9   :  { %v10737_v5 = vadd.f32 %v10736_v34, %v10735_v42 }
0x17fa   :  { %v10738_v52 = vpop.f32.mrf.mxu1 }
0x17fb   :  { %v9458_v26 = vadd.f32 %v10737_v5, %v9417_v44 }
0x17fc   :  { %v10739_v1 = vpop.f32.mrf.mxu1 }
0x17fd   :  { %v10740_v33 = vadd.f32 %v10739_v1, %v10738_v52  ;;  %v9499_v12 = vadd.f32 %v10759_v20, %v9458_v26 }
0x17ff   :  { %v9461_v28 = vadd.f32 %v10740_v33, %v9420_v19 }
0x1801   :  { %v9502_v10 = vadd.f32 %v10762_v32, %v9461_v28 }
0x1816   :  { %v10779_v54 = vpop.f32.mrf.mxu1 }
0x1818   :  { %v10780_v35 = vpop.f32.mrf.mxu1 }
0x1819   :  { %v10781_v60 = vadd.f32 %v10780_v35, %v10779_v54 }
0x181a   :  { %v10782_v25 = vpop.f32.mrf.mxu1 }
0x181b   :  { %v9540_v30 = vadd.f32 %v10781_v60, %v9499_v12 }
0x181c   :  { %v10783_v31 = vpop.f32.mrf.mxu1 }
0x181d   :  { %v9548_v18 = vadd.f32 %v9540_v30, %v13371_v13  ;;  %v10784_v51 = vadd.f32 %v10783_v31, %v10782_v25 }
0x181f   :  { %9554 = vst [vmem:[#allocation25 + $0x10] sm:$0xff] %v9548_v18  ;;  %v9543_v61 = vadd.f32 %v10784_v51, %v9502_v10 }
0x1821   :  { %v9551_v46 = vadd.f32 %v9543_v61, %v13380_v40 }
0x1823   :  { %9557 = vst [vmem:[#allocation25 + $0x28] sm:$0xff] %v9551_v46 }
0x1824   :  { %12639 = shalt.err (!%p12636_p4)
}
0x1825   :  { %9569 = dma.vmem_to_hbm [thread:$0]  %s9564_s16, 768, %s13594_s14, [#allocation4], %s12675_s9, %s12675_s9, %s12676_s18  }
0x1826   :  { %12664 = dma.done.wait [#allocation4], 768  }
0x1827   :  { %12665 = vsyncadd [#allocation4], 4294966528 }
0x1828   :  { %9573 = vsyncpa [#allocation3], 1 }
0x1829   :  { %9574 = vsyncpa [#allocation6], 1 }
0x182a   :  { %9575 = vsyncpa [#allocation9], 1 }
0x182b   :  { %9576 = vsyncpa [#allocation12], 1 }
0x182c   :  { %9577 = vsyncpa [#allocation15], 1 }
0x182d   :  { %9578 = vsyncpa [#allocation18], 1 }
0x182e   :  { %9579 = vsyncpa [#allocation21], 1 }
0x182f   :  { %9580 = vsyncpa [#allocation24], 1 }
0x1830   :  { %9581 = vsyncpa [#allocation4], 1 }

</bundles_post_ra>
